<compile_context>
chip_gen: v5e
topology: v5e:2x2
jax: 0.10.0
libtpu: 0.0.40
codegen_flags: <defaults>
</compile_context>

<pallas_src>
import jax
import jax.numpy as jnp
from jax import lax
from jax.experimental import pallas as pl
from jax.experimental.pallas import tpu as pltpu

# ---- static architecture constants (from the nn.Module) --------------------
OBS_SIZE = 100                     # obs length -> 32 * conv_out_width == 896
N_ACTIONS = 6
HIDDEN = 32                        # small test hidden size (module default 256)
K1, S1, P1, C1 = 8, 4, 7, 16       # Conv1d(1, 16, k=8, s=4, p=7)
K2, S2, P2, C2 = 4, 1, 2, 32       # Conv1d(16, 32, k=4, s=1, p=2)
L1 = (OBS_SIZE + 2 * P1 - K1) // S1 + 1      # 27
L2 = (L1 + 2 * P2 - K2) // S2 + 1            # 28
W1 = L1 * C1                                 # 432
FEAT = C2 * L2                               # 896 = 7*128  (lane-dense)
BN_EPS = 1e-5

# lane-padded sizes (every matmul lane dim is a multiple of 128)
OBS_PAD = 128                      # 100 -> 128
W1_PAD = 512                       # 432 -> 512
H_PAD = 128                        # 2*HIDDEN = 64 -> 128

# output-slab lane layout
OUT_LANES = 128
VALUE_SRC_LANE = N_ACTIONS         # col 6 of the packed head-2 matmul = critic value
ACTION_LANE = 8
PROB_LANE = 9
VALUE_LANE = 10

MAX_BATCH_TILE = 128


# ---------------------------------------------------------------------------
# single fused kernel: conv trunk + BN + policy/critic heads + sampling
# ---------------------------------------------------------------------------
def _actor_critic_kernel(nvalid_ref, x_ref, gum_ref,
                         t1_ref, b1_ref, g1_ref, be1_ref, pool1_ref, pool1t_ref,
                         t2_ref, b2_ref, g2_ref, be2_ref, pool2_ref, pool2t_ref,
                         wh1_ref, bh1_ref, w2p_ref, b2p_ref,
                         out_ref):
    f32 = jnp.float32
    bf16 = jnp.bfloat16
    TB = x_ref.shape[0]

    # Rows of this batch tile holding real (non padding) samples.
    i = pl.program_id(0)
    nv = jnp.clip(nvalid_ref[0] - i * TB, 1, TB)            # int32 scalar
    nv_f = nv.astype(f32)
    rows = lax.broadcasted_iota(jnp.int32, (TB, 1), 0)
    rmask = (rows < nv).astype(f32)                         # (TB, 1)

    # TODO(synk): when B > the batch tile (128), BatchNorm statistics are
    # computed per batch tile rather than over the whole batch (exact for
    # B <= 128, as in the test below).
    def batchnorm(y, pool, poolt, gamma, beta, n_positions):
        # One-pass training-mode batch statistics over the valid rows only:
        #   [sum(y); sum(y^2)] --(1 matmul)--> (2, C) stats
        #   [scale; shift]     --(1 matmul)--> (2, W)  broadcast coefficients
        ym = y * rmask
        s = jnp.concatenate([jnp.sum(ym, axis=0, keepdims=True),
                             jnp.sum(ym * y, axis=0, keepdims=True)], axis=0)
        st = jnp.dot(s, pool, preferred_element_type=f32) * (1.0 / (nv_f * n_positions))
        mean = st[0:1, :]
        var = st[1:2, :] - mean * mean                      # biased (training mode)
        scale = gamma * lax.rsqrt(var + BN_EPS)
        shift = beta - mean * scale
        cw = jnp.dot(jnp.concatenate([scale, shift], axis=0), poolt,
                     preferred_element_type=f32)            # (2, W)
        return y * cw[0:1, :] + cw[1:2, :]

    # ---- Conv1d(1->16, k=8, s=4, p=7) as one Toeplitz matmul, ReLU, BN1.
    y1 = jnp.dot(x_ref[...], t1_ref[...], preferred_element_type=f32) + b1_ref[...]
    y1 = jnp.maximum(y1, 0.0)                               # (TB, 512)
    z1 = batchnorm(y1, pool1_ref[...], pool1t_ref[...],
                   g1_ref[...], be1_ref[...], float(L1))

    # ---- Conv1d(16->32, k=4, s=1, p=2) as one Toeplitz matmul, ReLU, BN2.
    y2 = jnp.dot(z1.astype(bf16), t2_ref[...], preferred_element_type=f32) + b2_ref[...]
    y2 = jnp.maximum(y2, 0.0)                               # (TB, 896)
    feat = batchnorm(y2, pool2_ref[...], pool2t_ref[...],
                     g2_ref[...], be2_ref[...], float(L2))

    # ---- heads: fused policy+critic layer 1, block-diagonal packed layer 2.
    h = jnp.maximum(jnp.dot(feat.astype(bf16), wh1_ref[...],
                            preferred_element_type=f32) + bh1_ref[...], 0.0)
    out2 = jnp.dot(h.astype(bf16), w2p_ref[...], preferred_element_type=f32) + b2p_ref[...]
    # out2: (TB, 128); lanes 0..5 = policy logits, lane 6 = critic value, rest 0.

    lane = lax.broadcasted_iota(jnp.int32, (TB, OUT_LANES), 1)
    act_mask = lane < N_ACTIONS

    # torch.nan_to_num on the logits only, then mask invalid lanes to -inf.
    logits = jnp.where(act_mask, jnp.nan_to_num(out2), -jnp.inf)

    # Categorical(logits): stable log-softmax.
    m = jnp.max(logits, axis=1, keepdims=True)
    lse = m + jnp.log(jnp.sum(jnp.exp(logits - m), axis=1, keepdims=True))
    logp = logits - lse                                     # (TB, 128)

    # dist.sample() via Gumbel-max (noise streamed from the wrapper).
    zg = logits + gum_ref[...]
    zmax = jnp.max(zg, axis=1, keepdims=True)
    action = jnp.min(jnp.where(zg >= zmax, lane, OUT_LANES),
                     axis=1, keepdims=True)                 # (TB, 1) int32

    # dist.log_prob(action) and critic value (value is NOT nan_to_num'ed).
    prob = jnp.sum(jnp.where(lane == action, logp, 0.0), axis=1, keepdims=True)
    value = jnp.sum(jnp.where(lane == VALUE_SRC_LANE, out2, 0.0),
                    axis=1, keepdims=True)

    # ---- pack everything into one lane-dense (TB, 128) output slab.
    slab = jnp.where(act_mask, logp, 0.0)
    slab = jnp.where(lane == ACTION_LANE, action.astype(f32), slab)
    slab = jnp.where(lane == PROB_LANE, prob, slab)
    slab = jnp.where(lane == VALUE_LANE, value, slab)
    out_ref[...] = slab


# ---------------------------------------------------------------------------
# wrapper
# ---------------------------------------------------------------------------
def actor_critic_forward(x, params, sample_key):
    # mirrors `if x.dim() == 1: x = x[None, ...][None, ...]` (channel dim implicit)
    if x.ndim == 1:
        x = x[None, :]
    x = x.astype(jnp.float32)
    B = x.shape[0]

    # batch tiling: pad to a multiple of 8, tile at <=128 rows, pad to the tile
    B8 = ((B + 7) // 8) * 8
    TB = min(MAX_BATCH_TILE, B8)
    Bp = ((B8 + TB - 1) // TB) * TB
    grid = (Bp // TB,)

    xp = jnp.pad(x, ((0, Bp - B), (0, OBS_PAD - OBS_SIZE))).astype(jnp.bfloat16)
    gumbel = jax.random.gumbel(sample_key, (Bp, OUT_LANES), jnp.float32)
    nvalid = jnp.full((1,), B, jnp.int32)                   # scalar-prefetch arg

    weight_order = ('t1', 'b1t', 'g1', 'be1', 'pool1', 'pool1t',
                    't2', 'b2t', 'g2', 'be2', 'pool2', 'pool2t',
                    'wh1', 'bh1', 'w2p', 'b2p')
    weights = [params[k] for k in weight_order]

    row_map = lambda i, nv: (i, 0)      # activations: tiled over the batch grid
    w_map = lambda i, nv: (0, 0)        # weights: resident (same block every step)

    in_specs = ([pl.BlockSpec((TB, OBS_PAD), row_map),       # x
                 pl.BlockSpec((TB, OUT_LANES), row_map)]     # gumbel noise
                + [pl.BlockSpec(w.shape, w_map) for w in weights])
    out_specs = pl.BlockSpec((TB, OUT_LANES), row_map)

    wbytes = sum(int(w.size) * w.dtype.itemsize for w in weights)
    cost = pl.CostEstimate(
        flops=2 * Bp * (OBS_PAD * W1_PAD + W1_PAD * FEAT + FEAT * H_PAD
                        + H_PAD * OUT_LANES),
        transcendentals=Bp * 2 * OUT_LANES,
        bytes_accessed=wbytes + Bp * (OBS_PAD * 2 + 2 * OUT_LANES * 4),
    )

    out = pl.pallas_call(
        _actor_critic_kernel,
        out_shape=jax.ShapeDtypeStruct((Bp, OUT_LANES), jnp.float32),
        grid_spec=pltpu.PrefetchScalarGridSpec(
            num_scalar_prefetch=1,
            grid=grid,
            in_specs=in_specs,
            out_specs=out_specs,
        ),
        compiler_params=pltpu.CompilerParams(
            dimension_semantics=("parallel",),
            vmem_limit_bytes=32 * 1024 * 1024,
        ),
        cost_estimate=cost,
    )(nvalid, xp, gumbel, *weights)

    logp = out[:B, :N_ACTIONS]
    action = out[:B, ACTION_LANE].astype(jnp.int32)
    prob = out[:B, PROB_LANE]
    value = out[:B, VALUE_LANE:VALUE_LANE + 1]
    # TODO(synk): torch returns a Categorical distribution object; here `logp`
    # (normalized log-probabilities) stands in for `dist`.
    return logp, action, prob, value


# ---------------------------------------------------------------------------
# parameter construction: PyTorch-shaped synthetic weights, packed for the TPU
# ---------------------------------------------------------------------------
def init_params(key, hidden=HIDDEN, n_actions=N_ACTIONS):
    ks = jax.random.split(key, 12)
    # raw parameters in PyTorch shapes
    w1 = jax.random.normal(ks[0], (C1, 1, K1), jnp.float32) * 0.1
    b1 = jax.random.normal(ks[1], (C1,), jnp.float32) * 0.01
    w2 = jax.random.normal(ks[2], (C2, C1, K2), jnp.float32) * 0.1
    b2 = jax.random.normal(ks[3], (C2,), jnp.float32) * 0.01
    wp1 = jax.random.normal(ks[4], (hidden, FEAT), jnp.float32) * 0.03
    bp1 = jax.random.normal(ks[5], (hidden,), jnp.float32) * 0.01
    wp2 = jax.random.normal(ks[6], (n_actions, hidden), jnp.float32) * 0.1
    bp2 = jax.random.normal(ks[7], (n_actions,), jnp.float32) * 0.01
    wc1 = jax.random.normal(ks[8], (hidden, FEAT), jnp.float32) * 0.03
    bc1 = jax.random.normal(ks[9], (hidden,), jnp.float32) * 0.01
    wc2 = jax.random.normal(ks[10], (1, hidden), jnp.float32) * 0.1
    bc2 = jax.random.normal(ks[11], (1,), jnp.float32) * 0.01
    raw = dict(w1=w1, b1=b1, w2=w2, b2=b2, wp1=wp1, bp1=bp1, wp2=wp2, bp2=bp2,
               wc1=wc1, bc1=bc1, wc2=wc2, bc2=bc2)

    # conv1 as Toeplitz: T1[i, l1*C1 + c] = w1[c, 0, i + P1 - S1*l1] (if valid),
    # zero-padded to (128, 512).
    i_idx = jnp.arange(OBS_SIZE)[:, None]
    l1_idx = jnp.arange(L1)[None, :]
    k1 = i_idx + P1 - S1 * l1_idx                              # (100, 27)
    valid1 = (k1 >= 0) & (k1 < K1)
    w1k = jnp.transpose(w1[:, 0, :], (1, 0))                   # (K1, C1)
    t1 = jnp.where(valid1[:, :, None], w1k[jnp.clip(k1, 0, K1 - 1)], 0.0)
    t1 = t1.reshape(OBS_SIZE, W1)                              # (100, 432)
    t1p = jnp.zeros((OBS_PAD, W1_PAD), jnp.float32).at[:OBS_SIZE, :W1].set(t1)
    b1t = jnp.zeros((1, W1_PAD), jnp.float32).at[0, :W1].set(jnp.tile(b1, L1))

    # conv2 as Toeplitz: T2[l1*C1+ci, l2*C2+co] = w2[co, ci, l1+P2-l2] (if valid),
    # rows zero-padded to 512; cols are already lane-dense 896 = 7*128.
    l1g = jnp.arange(L1)[:, None]
    l2g = jnp.arange(L2)[None, :]
    k2 = l1g + P2 - l2g                                        # (27, 28)
    valid2 = (k2 >= 0) & (k2 < K2)
    w2k = jnp.transpose(w2, (2, 1, 0))                         # (K2, C1, C2)
    blocks = jnp.where(valid2[:, :, None, None],
                       w2k[jnp.clip(k2, 0, K2 - 1)], 0.0)      # (27, 28, 16, 32)
    t2 = jnp.transpose(blocks, (0, 2, 1, 3)).reshape(W1, FEAT) # (432, 896)
    t2p = jnp.zeros((W1_PAD, FEAT), jnp.float32).at[:W1, :].set(t2)
    b2t = jnp.tile(b2, L2)[None, :]                            # (1, 896)

    # per-channel pooling / broadcast matrices for the in-kernel BatchNorm
    pool1 = jnp.zeros((W1_PAD, C1), jnp.float32).at[:W1, :].set(
        jnp.tile(jnp.eye(C1, dtype=jnp.float32), (L1, 1)))     # (512, 16)
    pool2 = jnp.tile(jnp.eye(C2, dtype=jnp.float32), (L2, 1))  # (896, 32)

    # heads: permute the 896-feature axis from torch (c, l2) flatten order to
    # the kernel's (l2, c) order; fuse policy+critic layer 1 (cols padded to
    # 128); pack layer 2 block-diagonally into one (128, 128) matrix.
    f_our = jnp.arange(FEAT)
    perm = (f_our % C2) * L2 + (f_our // C2)
    wh1 = jnp.zeros((FEAT, H_PAD), jnp.float32)
    wh1 = wh1.at[:, :hidden].set(wp1.T[perm, :])
    wh1 = wh1.at[:, hidden:2 * hidden].set(wc1.T[perm, :])
    bh1 = jnp.zeros((1, H_PAD), jnp.float32)
    bh1 = bh1.at[0, :hidden].set(bp1).at[0, hidden:2 * hidden].set(bc1)

    w2p = jnp.zeros((H_PAD, OUT_LANES), jnp.float32)
    w2p = w2p.at[:hidden, :n_actions].set(wp2.T)               # policy logits
    w2p = w2p.at[hidden:2 * hidden, VALUE_SRC_LANE].set(wc2[0, :])  # critic value
    b2p = jnp.zeros((1, OUT_LANES), jnp.float32)
    b2p = b2p.at[0, :n_actions].set(bp2).at[0, VALUE_SRC_LANE].set(bc2[0])

    bf16 = jnp.bfloat16
    packed = {
        't1': t1p.astype(bf16), 'b1t': b1t,
        'g1': jnp.ones((1, C1), jnp.float32),                  # BN default weight=1
        'be1': jnp.zeros((1, C1), jnp.float32),                # BN default bias=0
        'pool1': pool1, 'pool1t': pool1.T,
        't2': t2p.astype(bf16), 'b2t': b2t,
        'g2': jnp.ones((1, C2), jnp.float32),
        'be2': jnp.zeros((1, C2), jnp.float32),
        'pool2': pool2, 'pool2t': pool2.T,
        'wh1': wh1.astype(bf16), 'bh1': bh1,
        'w2p': w2p.astype(bf16), 'b2p': b2p,
    }
    return packed, raw


# ---------------------------------------------------------------------------
# pure-JAX f32 reference of the PyTorch forward (for the correctness check)
# ---------------------------------------------------------------------------
def _reference_forward(x, raw):
    if x.ndim == 1:
        x = x[None, :]
    xc = x[:, None, :].astype(jnp.float32)
    dn = ('NCH', 'OIH', 'NCH')

    def bn(y):  # training-mode batch stats, gamma=1 / beta=0 (default init)
        mean = jnp.mean(y, axis=(0, 2), keepdims=True)
        var = jnp.mean((y - mean) ** 2, axis=(0, 2), keepdims=True)
        return (y - mean) * lax.rsqrt(var + BN_EPS)

    y = lax.conv_general_dilated(xc, raw['w1'], (S1,), [(P1, P1)],
                                 dimension_numbers=dn)
    y = bn(jnp.maximum(y + raw['b1'][None, :, None], 0.0))
    y = lax.conv_general_dilated(y, raw['w2'], (S2,), [(P2, P2)],
                                 dimension_numbers=dn)
    y = bn(jnp.maximum(y + raw['b2'][None, :, None], 0.0))
    feat = y.reshape(y.shape[0], -1)                           # (B, 896), torch order
    logits = jnp.maximum(feat @ raw['wp1'].T + raw['bp1'], 0.0) @ raw['wp2'].T + raw['bp2']
    logits = jnp.nan_to_num(logits)
    logp = jax.nn.log_softmax(logits, axis=-1)
    value = jnp.maximum(feat @ raw['wc1'].T + raw['bc1'], 0.0) @ raw['wc2'].T + raw['bc2']
    return logp, value


if __name__ == "__main__":
    key = jax.random.PRNGKey(0)
    pkey, xkey, skey = jax.random.split(key, 3)
    params, raw = init_params(pkey)
    B = 4
    x = jax.random.normal(xkey, (B, OBS_SIZE), jnp.float32)

    fwd = jax.jit(actor_critic_forward)
    logp, action, prob, value = fwd(x, params, skey)
    jax.block_until_ready((logp, action, prob, value))

    assert logp.shape == (B, N_ACTIONS)
    assert action.shape == (B,)
    assert prob.shape == (B,)
    assert value.shape == (B, 1)
    assert bool(jnp.all(jnp.isfinite(logp)))
    assert bool(jnp.all((action >= 0) & (action < N_ACTIONS)))
    assert bool(jnp.all(jnp.isfinite(value)))

    # internal consistency: prob == logp[b, action[b]]
    gathered = jnp.take_along_axis(logp, action[:, None], axis=1)[:, 0]
    assert bool(jnp.max(jnp.abs(prob - gathered)) < 1e-5)

    # match the pure-JAX f32 reference (bf16 matmul operands -> loose tolerance)
    logp_ref, value_ref = _reference_forward(x, raw)
    assert bool(jnp.max(jnp.abs(logp - logp_ref)) < 0.1), "log-prob mismatch"
    assert bool(jnp.max(jnp.abs(value - value_ref)) < 0.1), "value mismatch"

    print("KERNEL_OK")
</pallas_src>

<mosaic_0001>
module attributes {stable_mosaic.version = 11 : i64} {
  func.func @_actor_critic_kernel(%arg0: i32, %arg1: memref<1xi32, #tpu.memory_space<smem>>, %arg2: memref<8x128xbf16, #tpu.memory_space<vmem>>, %arg3: memref<8x128xf32, #tpu.memory_space<vmem>>, %arg4: memref<128x512xbf16, #tpu.memory_space<vmem>>, %arg5: memref<1x512xf32, #tpu.memory_space<vmem>>, %arg6: memref<1x16xf32, #tpu.memory_space<vmem>>, %arg7: memref<1x16xf32, #tpu.memory_space<vmem>>, %arg8: memref<512x16xf32, #tpu.memory_space<vmem>>, %arg9: memref<16x512xf32, #tpu.memory_space<vmem>>, %arg10: memref<512x896xbf16, #tpu.memory_space<vmem>>, %arg11: memref<1x896xf32, #tpu.memory_space<vmem>>, %arg12: memref<1x32xf32, #tpu.memory_space<vmem>>, %arg13: memref<1x32xf32, #tpu.memory_space<vmem>>, %arg14: memref<896x32xf32, #tpu.memory_space<vmem>>, %arg15: memref<32x896xf32, #tpu.memory_space<vmem>>, %arg16: memref<896x128xbf16, #tpu.memory_space<vmem>>, %arg17: memref<1x128xf32, #tpu.memory_space<vmem>>, %arg18: memref<128x128xbf16, #tpu.memory_space<vmem>>, %arg19: memref<1x128xf32, #tpu.memory_space<vmem>>, %arg20: memref<8x128xf32, #tpu.memory_space<vmem>>) attributes {dimension_semantics = [#tpu.dimension_semantics<parallel>], iteration_bounds = array<i64: 1>, scalar_prefetch = 1 : i64, scratch_operands = 0 : i64, tpu.core_type = #tpu.core_type<tc>, window_params = [{transform_indices = @transform_0, window_bounds = array<i64: 8, 128>}, {transform_indices = @transform_1, window_bounds = array<i64: 8, 128>}, {pipeline_mode = #tpu.pipeline_mode<synchronous>, transform_indices = @transform_2, window_bounds = array<i64: 128, 512>}, {pipeline_mode = #tpu.pipeline_mode<synchronous>, transform_indices = @transform_3, window_bounds = array<i64: 1, 512>}, {pipeline_mode = #tpu.pipeline_mode<synchronous>, transform_indices = @transform_4, window_bounds = array<i64: 1, 16>}, {pipeline_mode = #tpu.pipeline_mode<synchronous>, transform_indices = @transform_5, window_bounds = array<i64: 1, 16>}, {pipeline_mode = #tpu.pipeline_mode<synchronous>, transform_indices = @transform_6, window_bounds = array<i64: 512, 16>}, {pipeline_mode = #tpu.pipeline_mode<synchronous>, transform_indices = @transform_7, window_bounds = array<i64: 16, 512>}, {pipeline_mode = #tpu.pipeline_mode<synchronous>, transform_indices = @transform_8, window_bounds = array<i64: 512, 896>}, {pipeline_mode = #tpu.pipeline_mode<synchronous>, transform_indices = @transform_9, window_bounds = array<i64: 1, 896>}, {pipeline_mode = #tpu.pipeline_mode<synchronous>, transform_indices = @transform_10, window_bounds = array<i64: 1, 32>}, {pipeline_mode = #tpu.pipeline_mode<synchronous>, transform_indices = @transform_11, window_bounds = array<i64: 1, 32>}, {pipeline_mode = #tpu.pipeline_mode<synchronous>, transform_indices = @transform_12, window_bounds = array<i64: 896, 32>}, {pipeline_mode = #tpu.pipeline_mode<synchronous>, transform_indices = @transform_13, window_bounds = array<i64: 32, 896>}, {pipeline_mode = #tpu.pipeline_mode<synchronous>, transform_indices = @transform_14, window_bounds = array<i64: 896, 128>}, {pipeline_mode = #tpu.pipeline_mode<synchronous>, transform_indices = @transform_15, window_bounds = array<i64: 1, 128>}, {pipeline_mode = #tpu.pipeline_mode<synchronous>, transform_indices = @transform_16, window_bounds = array<i64: 128, 128>}, {pipeline_mode = #tpu.pipeline_mode<synchronous>, transform_indices = @transform_17, window_bounds = array<i64: 1, 128>}, {transform_indices = @transform_18, window_bounds = array<i64: 8, 128>}]} {
    %c0 = arith.constant 0 : index
    %0 = memref.load %arg1[%c0] : memref<1xi32, #tpu.memory_space<smem>>
    %c8_i32 = arith.constant 8 : i32
    %1 = arith.muli %arg0, %c8_i32 : i32
    %2 = arith.subi %0, %1 : i32
    %c1_i32 = arith.constant 1 : i32
    %c8_i32_0 = arith.constant 8 : i32
    %3 = arith.maxsi %c1_i32, %2 : i32
    %4 = arith.minsi %c8_i32_0, %3 : i32
    %5 = arith.sitofp %4 : i32 to f32
    %6 = tpu.iota {dimensions = array<i32: 0>} : vector<8x1xi32>
    %7 = vector.broadcast %4 : i32 to vector<8x1xi32>
    %8 = arith.cmpi slt, %6, %7 : vector<8x1xi32>
    %9 = arith.extui %8 : vector<8x1xi1> to vector<8x1xi32>
    %10 = arith.sitofp %9 : vector<8x1xi32> to vector<8x1xf32>
    %c0_1 = arith.constant 0 : index
    %c0_2 = arith.constant 0 : index
    %11 = vector.load %arg2[%c0_1, %c0_2] : memref<8x128xbf16, #tpu.memory_space<vmem>>, vector<8x128xbf16>
    %c0_3 = arith.constant 0 : index
    %c0_4 = arith.constant 0 : index
    %12 = vector.load %arg4[%c0_3, %c0_4] : memref<128x512xbf16, #tpu.memory_space<vmem>>, vector<128x512xbf16>
    %cst = arith.constant dense<0.000000e+00> : vector<8x512xf32>
    %13 = tpu.matmul %11, %12, %cst {dimension_numbers = #tpu.dot_dimension_numbers<[1], [0], [0], [1], [0, 0, 1, 1], [], []>} : vector<8x128xbf16>, vector<128x512xbf16>, vector<8x512xf32> -> vector<8x512xf32>
    %c0_5 = arith.constant 0 : index
    %c0_6 = arith.constant 0 : index
    %14 = vector.load %arg5[%c0_5, %c0_6] : memref<1x512xf32, #tpu.memory_space<vmem>>, vector<1x512xf32>
    %15 = vector.broadcast %14 : vector<1x512xf32> to vector<8x512xf32>
    %16 = arith.addf %13, %15 : vector<8x512xf32>
    %cst_7 = arith.constant 0.000000e+00 : f32
    %17 = vector.broadcast %cst_7 : f32 to vector<8x512xf32>
    %18 = arith.maximumf %16, %17 : vector<8x512xf32>
    %c0_8 = arith.constant 0 : index
    %c0_9 = arith.constant 0 : index
    %19 = vector.load %arg8[%c0_8, %c0_9] : memref<512x16xf32, #tpu.memory_space<vmem>>, vector<512x16xf32>
    %c0_10 = arith.constant 0 : index
    %c0_11 = arith.constant 0 : index
    %20 = vector.load %arg9[%c0_10, %c0_11] : memref<16x512xf32, #tpu.memory_space<vmem>>, vector<16x512xf32>
    %c0_12 = arith.constant 0 : index
    %c0_13 = arith.constant 0 : index
    %21 = vector.load %arg6[%c0_12, %c0_13] : memref<1x16xf32, #tpu.memory_space<vmem>>, vector<1x16xf32>
    %c0_14 = arith.constant 0 : index
    %c0_15 = arith.constant 0 : index
    %22 = vector.load %arg7[%c0_14, %c0_15] : memref<1x16xf32, #tpu.memory_space<vmem>>, vector<1x16xf32>
    %23 = vector.broadcast %10 : vector<8x1xf32> to vector<8x512xf32>
    %24 = arith.mulf %18, %23 : vector<8x512xf32>
    %cst_16 = arith.constant dense<0.000000e+00> : vector<512xf32>
    %25 = vector.multi_reduction <add>, %24, %cst_16 [0] : vector<8x512xf32> to vector<512xf32>
    %26 = vector.shape_cast %25 : vector<512xf32> to vector<1x512xf32>
    %27 = arith.mulf %24, %18 : vector<8x512xf32>
    %cst_17 = arith.constant dense<0.000000e+00> : vector<512xf32>
    %28 = vector.multi_reduction <add>, %27, %cst_17 [0] : vector<8x512xf32> to vector<512xf32>
    %29 = vector.shape_cast %28 : vector<512xf32> to vector<1x512xf32>
    %30 = tpu.concatenate %26, %29 in 0 : vector<1x512xf32>, vector<1x512xf32> -> vector<2x512xf32>
    %cst_18 = arith.constant dense<0.000000e+00> : vector<2x16xf32>
    %31 = tpu.matmul %30, %19, %cst_18 {dimension_numbers = #tpu.dot_dimension_numbers<[1], [0], [0], [1], [0, 0, 1, 1], [], []>} : vector<2x512xf32>, vector<512x16xf32>, vector<2x16xf32> -> vector<2x16xf32>
    %cst_19 = arith.constant 2.700000e+01 : f32
    %32 = arith.mulf %5, %cst_19 : f32
    %cst_20 = arith.constant 1.000000e+00 : f32
    %33 = arith.divf %cst_20, %32 : f32
    %34 = vector.broadcast %33 : f32 to vector<2x16xf32>
    %35 = arith.mulf %31, %34 : vector<2x16xf32>
    %36 = vector.extract_strided_slice %35 {offsets = [0, 0], sizes = [1, 16], strides = [1, 1]} : vector<2x16xf32> to vector<1x16xf32>
    %37 = vector.extract_strided_slice %35 {offsets = [1, 0], sizes = [1, 16], strides = [1, 1]} : vector<2x16xf32> to vector<1x16xf32>
    %38 = arith.mulf %36, %36 : vector<1x16xf32>
    %39 = arith.subf %37, %38 : vector<1x16xf32>
    %cst_21 = arith.constant 9.99999974E-6 : f32
    %40 = vector.broadcast %cst_21 : f32 to vector<1x16xf32>
    %41 = arith.addf %39, %40 : vector<1x16xf32>
    %42 = math.rsqrt %41 : vector<1x16xf32>
    %43 = arith.mulf %21, %42 : vector<1x16xf32>
    %44 = arith.mulf %36, %43 : vector<1x16xf32>
    %45 = arith.subf %22, %44 : vector<1x16xf32>
    %46 = tpu.concatenate %43, %45 in 0 : vector<1x16xf32>, vector<1x16xf32> -> vector<2x16xf32>
    %cst_22 = arith.constant dense<0.000000e+00> : vector<2x512xf32>
    %47 = tpu.matmul %46, %20, %cst_22 {dimension_numbers = #tpu.dot_dimension_numbers<[1], [0], [0], [1], [0, 0, 1, 1], [], []>} : vector<2x16xf32>, vector<16x512xf32>, vector<2x512xf32> -> vector<2x512xf32>
    %48 = vector.extract_strided_slice %47 {offsets = [0, 0], sizes = [1, 512], strides = [1, 1]} : vector<2x512xf32> to vector<1x512xf32>
    %49 = vector.broadcast %48 : vector<1x512xf32> to vector<8x512xf32>
    %50 = arith.mulf %18, %49 : vector<8x512xf32>
    %51 = vector.extract_strided_slice %47 {offsets = [1, 0], sizes = [1, 512], strides = [1, 1]} : vector<2x512xf32> to vector<1x512xf32>
    %52 = vector.broadcast %51 : vector<1x512xf32> to vector<8x512xf32>
    %53 = arith.addf %50, %52 : vector<8x512xf32>
    %54 = arith.truncf %53 : vector<8x512xf32> to vector<8x512xbf16>
    %c0_23 = arith.constant 0 : index
    %c0_24 = arith.constant 0 : index
    %55 = vector.load %arg10[%c0_23, %c0_24] : memref<512x896xbf16, #tpu.memory_space<vmem>>, vector<512x896xbf16>
    %cst_25 = arith.constant dense<0.000000e+00> : vector<8x896xf32>
    %56 = tpu.matmul %54, %55, %cst_25 {dimension_numbers = #tpu.dot_dimension_numbers<[1], [0], [0], [1], [0, 0, 1, 1], [], []>} : vector<8x512xbf16>, vector<512x896xbf16>, vector<8x896xf32> -> vector<8x896xf32>
    %c0_26 = arith.constant 0 : index
    %c0_27 = arith.constant 0 : index
    %57 = vector.load %arg11[%c0_26, %c0_27] : memref<1x896xf32, #tpu.memory_space<vmem>>, vector<1x896xf32>
    %58 = vector.broadcast %57 : vector<1x896xf32> to vector<8x896xf32>
    %59 = arith.addf %56, %58 : vector<8x896xf32>
    %cst_28 = arith.constant 0.000000e+00 : f32
    %60 = vector.broadcast %cst_28 : f32 to vector<8x896xf32>
    %61 = arith.maximumf %59, %60 : vector<8x896xf32>
    %c0_29 = arith.constant 0 : index
    %c0_30 = arith.constant 0 : index
    %62 = vector.load %arg14[%c0_29, %c0_30] : memref<896x32xf32, #tpu.memory_space<vmem>>, vector<896x32xf32>
    %c0_31 = arith.constant 0 : index
    %c0_32 = arith.constant 0 : index
    %63 = vector.load %arg15[%c0_31, %c0_32] : memref<32x896xf32, #tpu.memory_space<vmem>>, vector<32x896xf32>
    %c0_33 = arith.constant 0 : index
    %c0_34 = arith.constant 0 : index
    %64 = vector.load %arg12[%c0_33, %c0_34] : memref<1x32xf32, #tpu.memory_space<vmem>>, vector<1x32xf32>
    %c0_35 = arith.constant 0 : index
    %c0_36 = arith.constant 0 : index
    %65 = vector.load %arg13[%c0_35, %c0_36] : memref<1x32xf32, #tpu.memory_space<vmem>>, vector<1x32xf32>
    %66 = vector.broadcast %10 : vector<8x1xf32> to vector<8x896xf32>
    %67 = arith.mulf %61, %66 : vector<8x896xf32>
    %cst_37 = arith.constant dense<0.000000e+00> : vector<896xf32>
    %68 = vector.multi_reduction <add>, %67, %cst_37 [0] : vector<8x896xf32> to vector<896xf32>
    %69 = vector.shape_cast %68 : vector<896xf32> to vector<1x896xf32>
    %70 = arith.mulf %67, %61 : vector<8x896xf32>
    %cst_38 = arith.constant dense<0.000000e+00> : vector<896xf32>
    %71 = vector.multi_reduction <add>, %70, %cst_38 [0] : vector<8x896xf32> to vector<896xf32>
    %72 = vector.shape_cast %71 : vector<896xf32> to vector<1x896xf32>
    %73 = tpu.concatenate %69, %72 in 0 : vector<1x896xf32>, vector<1x896xf32> -> vector<2x896xf32>
    %cst_39 = arith.constant dense<0.000000e+00> : vector<2x32xf32>
    %74 = tpu.matmul %73, %62, %cst_39 {dimension_numbers = #tpu.dot_dimension_numbers<[1], [0], [0], [1], [0, 0, 1, 1], [], []>} : vector<2x896xf32>, vector<896x32xf32>, vector<2x32xf32> -> vector<2x32xf32>
    %cst_40 = arith.constant 2.800000e+01 : f32
    %75 = arith.mulf %5, %cst_40 : f32
    %cst_41 = arith.constant 1.000000e+00 : f32
    %76 = arith.divf %cst_41, %75 : f32
    %77 = vector.broadcast %76 : f32 to vector<2x32xf32>
    %78 = arith.mulf %74, %77 : vector<2x32xf32>
    %79 = vector.extract_strided_slice %78 {offsets = [0, 0], sizes = [1, 32], strides = [1, 1]} : vector<2x32xf32> to vector<1x32xf32>
    %80 = vector.extract_strided_slice %78 {offsets = [1, 0], sizes = [1, 32], strides = [1, 1]} : vector<2x32xf32> to vector<1x32xf32>
    %81 = arith.mulf %79, %79 : vector<1x32xf32>
    %82 = arith.subf %80, %81 : vector<1x32xf32>
    %cst_42 = arith.constant 9.99999974E-6 : f32
    %83 = vector.broadcast %cst_42 : f32 to vector<1x32xf32>
    %84 = arith.addf %82, %83 : vector<1x32xf32>
    %85 = math.rsqrt %84 : vector<1x32xf32>
    %86 = arith.mulf %64, %85 : vector<1x32xf32>
    %87 = arith.mulf %79, %86 : vector<1x32xf32>
    %88 = arith.subf %65, %87 : vector<1x32xf32>
    %89 = tpu.concatenate %86, %88 in 0 : vector<1x32xf32>, vector<1x32xf32> -> vector<2x32xf32>
    %cst_43 = arith.constant dense<0.000000e+00> : vector<2x896xf32>
    %90 = tpu.matmul %89, %63, %cst_43 {dimension_numbers = #tpu.dot_dimension_numbers<[1], [0], [0], [1], [0, 0, 1, 1], [], []>} : vector<2x32xf32>, vector<32x896xf32>, vector<2x896xf32> -> vector<2x896xf32>
    %91 = vector.extract_strided_slice %90 {offsets = [0, 0], sizes = [1, 896], strides = [1, 1]} : vector<2x896xf32> to vector<1x896xf32>
    %92 = vector.broadcast %91 : vector<1x896xf32> to vector<8x896xf32>
    %93 = arith.mulf %61, %92 : vector<8x896xf32>
    %94 = vector.extract_strided_slice %90 {offsets = [1, 0], sizes = [1, 896], strides = [1, 1]} : vector<2x896xf32> to vector<1x896xf32>
    %95 = vector.broadcast %94 : vector<1x896xf32> to vector<8x896xf32>
    %96 = arith.addf %93, %95 : vector<8x896xf32>
    %97 = arith.truncf %96 : vector<8x896xf32> to vector<8x896xbf16>
    %c0_44 = arith.constant 0 : index
    %c0_45 = arith.constant 0 : index
    %98 = vector.load %arg16[%c0_44, %c0_45] : memref<896x128xbf16, #tpu.memory_space<vmem>>, vector<896x128xbf16>
    %cst_46 = arith.constant dense<0.000000e+00> : vector<8x128xf32>
    %99 = tpu.matmul %97, %98, %cst_46 {dimension_numbers = #tpu.dot_dimension_numbers<[1], [0], [0], [1], [0, 0, 1, 1], [], []>} : vector<8x896xbf16>, vector<896x128xbf16>, vector<8x128xf32> -> vector<8x128xf32>
    %c0_47 = arith.constant 0 : index
    %c0_48 = arith.constant 0 : index
    %100 = vector.load %arg17[%c0_47, %c0_48] : memref<1x128xf32, #tpu.memory_space<vmem>>, vector<1x128xf32>
    %101 = vector.broadcast %100 : vector<1x128xf32> to vector<8x128xf32>
    %102 = arith.addf %99, %101 : vector<8x128xf32>
    %cst_49 = arith.constant 0.000000e+00 : f32
    %103 = vector.broadcast %cst_49 : f32 to vector<8x128xf32>
    %104 = arith.maximumf %102, %103 : vector<8x128xf32>
    %105 = arith.truncf %104 : vector<8x128xf32> to vector<8x128xbf16>
    %c0_50 = arith.constant 0 : index
    %c0_51 = arith.constant 0 : index
    %106 = vector.load %arg18[%c0_50, %c0_51] : memref<128x128xbf16, #tpu.memory_space<vmem>>, vector<128x128xbf16>
    %cst_52 = arith.constant dense<0.000000e+00> : vector<8x128xf32>
    %107 = tpu.matmul %105, %106, %cst_52 {dimension_numbers = #tpu.dot_dimension_numbers<[1], [0], [0], [1], [0, 0, 1, 1], [], []>} : vector<8x128xbf16>, vector<128x128xbf16>, vector<8x128xf32> -> vector<8x128xf32>
    %c0_53 = arith.constant 0 : index
    %c0_54 = arith.constant 0 : index
    %108 = vector.load %arg19[%c0_53, %c0_54] : memref<1x128xf32, #tpu.memory_space<vmem>>, vector<1x128xf32>
    %109 = vector.broadcast %108 : vector<1x128xf32> to vector<8x128xf32>
    %110 = arith.addf %107, %109 : vector<8x128xf32>
    %111 = tpu.iota {dimensions = array<i32: 1>} : vector<8x128xi32>
    %c6_i32 = arith.constant 6 : i32
    %112 = vector.broadcast %c6_i32 : i32 to vector<8x128xi32>
    %113 = arith.cmpi slt, %111, %112 : vector<8x128xi32>
    %114 = arith.cmpf one, %110, %110 : vector<8x128xf32>
    %cst_55 = arith.constant 0.000000e+00 : f32
    %115 = vector.broadcast %cst_55 : f32 to vector<8x128xf32>
    %116 = arith.select %114, %115, %110 : vector<8x128xi1>, vector<8x128xf32>
    %cst_56 = arith.constant 0x7F800000 : f32
    %117 = vector.broadcast %cst_56 : f32 to vector<8x128xf32>
    %118 = arith.cmpf oeq, %116, %117 : vector<8x128xf32>
    %cst_57 = arith.constant 3.40282347E+38 : f32
    %119 = vector.broadcast %cst_57 : f32 to vector<8x128xf32>
    %120 = arith.select %118, %119, %116 : vector<8x128xi1>, vector<8x128xf32>
    %cst_58 = arith.constant 0xFF800000 : f32
    %121 = vector.broadcast %cst_58 : f32 to vector<8x128xf32>
    %122 = arith.cmpf oeq, %120, %121 : vector<8x128xf32>
    %cst_59 = arith.constant -3.40282347E+38 : f32
    %123 = vector.broadcast %cst_59 : f32 to vector<8x128xf32>
    %124 = arith.select %122, %123, %120 : vector<8x128xi1>, vector<8x128xf32>
    %cst_60 = arith.constant 0xFF800000 : f32
    %125 = vector.broadcast %cst_60 : f32 to vector<8x128xf32>
    %126 = arith.select %113, %124, %125 : vector<8x128xi1>, vector<8x128xf32>
    %cst_61 = arith.constant dense<0xFF800000> : vector<8xf32>
    %127 = vector.multi_reduction <maximumf>, %126, %cst_61 [1] : vector<8x128xf32> to vector<8xf32>
    %128 = vector.shape_cast %127 : vector<8xf32> to vector<8x1xf32>
    %129 = vector.broadcast %128 : vector<8x1xf32> to vector<8x128xf32>
    %130 = arith.subf %126, %129 : vector<8x128xf32>
    %131 = math.exp %130 : vector<8x128xf32>
    %cst_62 = arith.constant dense<0.000000e+00> : vector<8xf32>
    %132 = vector.multi_reduction <add>, %131, %cst_62 [1] : vector<8x128xf32> to vector<8xf32>
    %133 = vector.shape_cast %132 : vector<8xf32> to vector<8x1xf32>
    %134 = math.log %133 : vector<8x1xf32>
    %135 = arith.addf %128, %134 : vector<8x1xf32>
    %136 = vector.broadcast %135 : vector<8x1xf32> to vector<8x128xf32>
    %137 = arith.subf %126, %136 : vector<8x128xf32>
    %c0_63 = arith.constant 0 : index
    %c0_64 = arith.constant 0 : index
    %138 = vector.load %arg3[%c0_63, %c0_64] : memref<8x128xf32, #tpu.memory_space<vmem>>, vector<8x128xf32>
    %139 = arith.addf %126, %138 : vector<8x128xf32>
    %cst_65 = arith.constant dense<0xFF800000> : vector<8xf32>
    %140 = vector.multi_reduction <maximumf>, %139, %cst_65 [1] : vector<8x128xf32> to vector<8xf32>
    %141 = vector.shape_cast %140 : vector<8xf32> to vector<8x1xf32>
    %142 = vector.broadcast %141 : vector<8x1xf32> to vector<8x128xf32>
    %143 = arith.cmpf oge, %139, %142 : vector<8x128xf32>
    %c128_i32 = arith.constant 128 : i32
    %144 = vector.broadcast %c128_i32 : i32 to vector<8x128xi32>
    %145 = arith.select %143, %111, %144 : vector<8x128xi1>, vector<8x128xi32>
    %cst_66 = arith.constant dense<2147483647> : vector<8xi32>
    %146 = vector.multi_reduction <minsi>, %145, %cst_66 [1] : vector<8x128xi32> to vector<8xi32>
    %147 = vector.shape_cast %146 : vector<8xi32> to vector<8x1xi32>
    %148 = vector.broadcast %147 : vector<8x1xi32> to vector<8x128xi32>
    %149 = arith.cmpi eq, %111, %148 : vector<8x128xi32>
    %cst_67 = arith.constant 0.000000e+00 : f32
    %150 = vector.broadcast %cst_67 : f32 to vector<8x128xf32>
    %151 = arith.select %149, %137, %150 : vector<8x128xi1>, vector<8x128xf32>
    %cst_68 = arith.constant dense<0.000000e+00> : vector<8xf32>
    %152 = vector.multi_reduction <add>, %151, %cst_68 [1] : vector<8x128xf32> to vector<8xf32>
    %153 = vector.shape_cast %152 : vector<8xf32> to vector<8x1xf32>
    %c6_i32_69 = arith.constant 6 : i32
    %154 = vector.broadcast %c6_i32_69 : i32 to vector<8x128xi32>
    %155 = arith.cmpi eq, %111, %154 : vector<8x128xi32>
    %cst_70 = arith.constant 0.000000e+00 : f32
    %156 = vector.broadcast %cst_70 : f32 to vector<8x128xf32>
    %157 = arith.select %155, %110, %156 : vector<8x128xi1>, vector<8x128xf32>
    %cst_71 = arith.constant dense<0.000000e+00> : vector<8xf32>
    %158 = vector.multi_reduction <add>, %157, %cst_71 [1] : vector<8x128xf32> to vector<8xf32>
    %159 = vector.shape_cast %158 : vector<8xf32> to vector<8x1xf32>
    %cst_72 = arith.constant 0.000000e+00 : f32
    %160 = vector.broadcast %cst_72 : f32 to vector<8x128xf32>
    %161 = arith.select %113, %137, %160 : vector<8x128xi1>, vector<8x128xf32>
    %c8_i32_73 = arith.constant 8 : i32
    %162 = vector.broadcast %c8_i32_73 : i32 to vector<8x128xi32>
    %163 = arith.cmpi eq, %111, %162 : vector<8x128xi32>
    %164 = arith.sitofp %147 : vector<8x1xi32> to vector<8x1xf32>
    %165 = vector.shape_cast %164 : vector<8x1xf32> to vector<8x1xf32>
    %166 = vector.broadcast %165 : vector<8x1xf32> to vector<8x128xf32>
    %167 = arith.select %163, %166, %161 : vector<8x128xi1>, vector<8x128xf32>
    %c9_i32 = arith.constant 9 : i32
    %168 = vector.broadcast %c9_i32 : i32 to vector<8x128xi32>
    %169 = arith.cmpi eq, %111, %168 : vector<8x128xi32>
    %170 = vector.shape_cast %153 : vector<8x1xf32> to vector<8x1xf32>
    %171 = vector.broadcast %170 : vector<8x1xf32> to vector<8x128xf32>
    %172 = arith.select %169, %171, %167 : vector<8x128xi1>, vector<8x128xf32>
    %c10_i32 = arith.constant 10 : i32
    %173 = vector.broadcast %c10_i32 : i32 to vector<8x128xi32>
    %174 = arith.cmpi eq, %111, %173 : vector<8x128xi32>
    %175 = vector.shape_cast %159 : vector<8x1xf32> to vector<8x1xf32>
    %176 = vector.broadcast %175 : vector<8x1xf32> to vector<8x128xf32>
    %177 = arith.select %174, %176, %172 : vector<8x128xi1>, vector<8x128xf32>
    %c0_74 = arith.constant 0 : index
    %c0_75 = arith.constant 0 : index
    %178 = vector.load %arg20[%c0_74, %c0_75] : memref<8x128xf32, #tpu.memory_space<vmem>>, vector<8x128xf32>
    tpu.vector_store %arg20[%c0_74, %c0_75], %177 {strides = array<i32>} : memref<8x128xf32, #tpu.memory_space<vmem>>, vector<8x128xf32>,
    return
  }
  func.func @transform_0(%arg0: i32, %arg1: memref<1xi32, #tpu.memory_space<smem>>) -> (i32, i32) {
    %c0_i32 = arith.constant 0 : i32
    %c0_i32_0 = arith.constant 0 : i32
    return %arg0, %c0_i32 : i32, i32
  }
  func.func @transform_1(%arg0: i32, %arg1: memref<1xi32, #tpu.memory_space<smem>>) -> (i32, i32) {
    %c0_i32 = arith.constant 0 : i32
    %c0_i32_0 = arith.constant 0 : i32
    return %arg0, %c0_i32 : i32, i32
  }
  func.func @transform_2(%arg0: i32, %arg1: memref<1xi32, #tpu.memory_space<smem>>) -> (i32, i32) {
    %c0_i32 = arith.constant 0 : i32
    %c0_i32_0 = arith.constant 0 : i32
    %c0_i32_1 = arith.constant 0 : i32
    return %c0_i32, %c0_i32_0 : i32, i32
  }
  func.func @transform_3(%arg0: i32, %arg1: memref<1xi32, #tpu.memory_space<smem>>) -> (i32, i32) {
    %c0_i32 = arith.constant 0 : i32
    %c0_i32_0 = arith.constant 0 : i32
    %c0_i32_1 = arith.constant 0 : i32
    return %c0_i32, %c0_i32_0 : i32, i32
  }
  func.func @transform_4(%arg0: i32, %arg1: memref<1xi32, #tpu.memory_space<smem>>) -> (i32, i32) {
    %c0_i32 = arith.constant 0 : i32
    %c0_i32_0 = arith.constant 0 : i32
    %c0_i32_1 = arith.constant 0 : i32
    return %c0_i32, %c0_i32_0 : i32, i32
  }
  func.func @transform_5(%arg0: i32, %arg1: memref<1xi32, #tpu.memory_space<smem>>) -> (i32, i32) {
    %c0_i32 = arith.constant 0 : i32
    %c0_i32_0 = arith.constant 0 : i32
    %c0_i32_1 = arith.constant 0 : i32
    return %c0_i32, %c0_i32_0 : i32, i32
  }
  func.func @transform_6(%arg0: i32, %arg1: memref<1xi32, #tpu.memory_space<smem>>) -> (i32, i32) {
    %c0_i32 = arith.constant 0 : i32
    %c0_i32_0 = arith.constant 0 : i32
    %c0_i32_1 = arith.constant 0 : i32
    return %c0_i32, %c0_i32_0 : i32, i32
  }
  func.func @transform_7(%arg0: i32, %arg1: memref<1xi32, #tpu.memory_space<smem>>) -> (i32, i32) {
    %c0_i32 = arith.constant 0 : i32
    %c0_i32_0 = arith.constant 0 : i32
    %c0_i32_1 = arith.constant 0 : i32
    return %c0_i32, %c0_i32_0 : i32, i32
  }
  func.func @transform_8(%arg0: i32, %arg1: memref<1xi32, #tpu.memory_space<smem>>) -> (i32, i32) {
    %c0_i32 = arith.constant 0 : i32
    %c0_i32_0 = arith.constant 0 : i32
    %c0_i32_1 = arith.constant 0 : i32
    return %c0_i32, %c0_i32_0 : i32, i32
  }
  func.func @transform_9(%arg0: i32, %arg1: memref<1xi32, #tpu.memory_space<smem>>) -> (i32, i32) {
    %c0_i32 = arith.constant 0 : i32
    %c0_i32_0 = arith.constant 0 : i32
    %c0_i32_1 = arith.constant 0 : i32
    return %c0_i32, %c0_i32_0 : i32, i32
  }
  func.func @transform_10(%arg0: i32, %arg1: memref<1xi32, #tpu.memory_space<smem>>) -> (i32, i32) {
    %c0_i32 = arith.constant 0 : i32
    %c0_i32_0 = arith.constant 0 : i32
    %c0_i32_1 = arith.constant 0 : i32
    return %c0_i32, %c0_i32_0 : i32, i32
  }
  func.func @transform_11(%arg0: i32, %arg1: memref<1xi32, #tpu.memory_space<smem>>) -> (i32, i32) {
    %c0_i32 = arith.constant 0 : i32
    %c0_i32_0 = arith.constant 0 : i32
    %c0_i32_1 = arith.constant 0 : i32
    return %c0_i32, %c0_i32_0 : i32, i32
  }
  func.func @transform_12(%arg0: i32, %arg1: memref<1xi32, #tpu.memory_space<smem>>) -> (i32, i32) {
    %c0_i32 = arith.constant 0 : i32
    %c0_i32_0 = arith.constant 0 : i32
    %c0_i32_1 = arith.constant 0 : i32
    return %c0_i32, %c0_i32_0 : i32, i32
  }
  func.func @transform_13(%arg0: i32, %arg1: memref<1xi32, #tpu.memory_space<smem>>) -> (i32, i32) {
    %c0_i32 = arith.constant 0 : i32
    %c0_i32_0 = arith.constant 0 : i32
    %c0_i32_1 = arith.constant 0 : i32
    return %c0_i32, %c0_i32_0 : i32, i32
  }
  func.func @transform_14(%arg0: i32, %arg1: memref<1xi32, #tpu.memory_space<smem>>) -> (i32, i32) {
    %c0_i32 = arith.constant 0 : i32
    %c0_i32_0 = arith.constant 0 : i32
    %c0_i32_1 = arith.constant 0 : i32
    return %c0_i32, %c0_i32_0 : i32, i32
  }
  func.func @transform_15(%arg0: i32, %arg1: memref<1xi32, #tpu.memory_space<smem>>) -> (i32, i32) {
    %c0_i32 = arith.constant 0 : i32
    %c0_i32_0 = arith.constant 0 : i32
    %c0_i32_1 = arith.constant 0 : i32
    return %c0_i32, %c0_i32_0 : i32, i32
  }
  func.func @transform_16(%arg0: i32, %arg1: memref<1xi32, #tpu.memory_space<smem>>) -> (i32, i32) {
    %c0_i32 = arith.constant 0 : i32
    %c0_i32_0 = arith.constant 0 : i32
    %c0_i32_1 = arith.constant 0 : i32
    return %c0_i32, %c0_i32_0 : i32, i32
  }
  func.func @transform_17(%arg0: i32, %arg1: memref<1xi32, #tpu.memory_space<smem>>) -> (i32, i32) {
    %c0_i32 = arith.constant 0 : i32
    %c0_i32_0 = arith.constant 0 : i32
    %c0_i32_1 = arith.constant 0 : i32
    return %c0_i32, %c0_i32_0 : i32, i32
  }
  func.func @transform_18(%arg0: i32, %arg1: memref<1xi32, #tpu.memory_space<smem>>) -> (i32, i32) {
    %c0_i32 = arith.constant 0 : i32
    %c0_i32_0 = arith.constant 0 : i32
    return %arg0, %c0_i32 : i32, i32
  }
}

</mosaic_0001>

<bundles_post_ra>
// kernel: actor_critic_forward.1
= control target key start
LH: loop header
LB: loop body
LE: loop exit
PB: predicated region body
PF: predicated region fallthrough
CT: control target
= control target key end

     0   :  { %s6870_s0 = inlined_call_operand.<no memory space> [shape: s32[1], index: 0, kind: input, shape index: {}]   ;;  %s6871_s1 = inlined_call_operand.vmem [shape: bf16[8,128], index: 1, kind: input, shape index: {}]   ;;  %s6872_s2 = inlined_call_operand.vmem [shape: f32[8,128], index: 2, kind: input, shape index: {}]   ;;  %s6873_s3 = inlined_call_operand.vmem [shape: bf16[128,512], index: 3, kind: input, shape index: {}]   ;;  %s6874_s4 = inlined_call_operand.vmem [shape: f32[1,512], index: 4, kind: input, shape index: {}]   ;;  %s6875_s5 = inlined_call_operand.vmem [shape: f32[1,16], index: 5, kind: input, shape index: {}]   ;;  %s6876_s6 = inlined_call_operand.vmem [shape: f32[1,16], index: 6, kind: input, shape index: {}]   ;;  %s6877_s7 = inlined_call_operand.vmem [shape: f32[512,16], index: 7, kind: input, shape index: {}]   ;;  %s6878_s8 = inlined_call_operand.vmem [shape: f32[16,512], index: 8, kind: input, shape index: {}]   ;;  %s6879_s9 = inlined_call_operand.hbm [shape: bf16[512,896], index: 9, kind: input, shape index: {}]   ;;  %s6880_s10 = inlined_call_operand.vmem [shape: f32[1,896], index: 10, kind: input, shape index: {}]   ;;  %s6881_s11 = inlined_call_operand.vmem [shape: f32[1,32], index: 11, kind: input, shape index: {}]   ;;  %s6882_s12 = inlined_call_operand.vmem [shape: f32[1,32], index: 12, kind: input, shape index: {}]   ;;  %s6883_s13 = inlined_call_operand.vmem [shape: f32[896,32], index: 13, kind: input, shape index: {}]   ;;  %s6884_s14 = inlined_call_operand.vmem [shape: f32[32,896], index: 14, kind: input, shape index: {}]   ;;  %s6885_s15 = inlined_call_operand.vmem [shape: bf16[896,128], index: 15, kind: input, shape index: {}]   ;;  %s6886_s16 = inlined_call_operand.vmem [shape: f32[1,128], index: 16, kind: input, shape index: {}]   ;;  %s6887_s17 = inlined_call_operand.vmem [shape: bf16[128,128], index: 17, kind: input, shape index: {}]   ;;  %s6888_s18 = inlined_call_operand.vmem [shape: f32[1,128], index: 18, kind: input, shape index: {}]   ;;  %s6889_s19 = inlined_call_operand.vmem [shape: f32[8,128], index: 19, kind: output, shape index: {}]  }
   0x1   :  { %6892 = sst [smem:[#allocation7_spill]] %s6870_s0 }
   0x2   :  { %6893 = sst [smem:[#allocation8_spill]] %s6871_s1 }
   0x3   :  { %6894 = sst [smem:[#allocation9_spill]] %s6872_s2 }
   0x4   :  { %6895 = sst [smem:[#allocation10_spill]] %s6873_s3 }
   0x5   :  { %25 = vsyncpa [#allocation5], 0  ;;  %s46_s20 = sshll.u32 %s6879_s9, 4  ;;  %s5480_s21 = smov [#allocation4]   ;;  %s47_s20 = int_to_ptr.hbm [resolvable:$true] %s46_s20 }
   0x6   :  { %s48_s1 = sshll.u32 %s5480_s21, 4  ;;  %s5481_s22 = smov 448   ;;  %s49_s1 = int_to_ptr.vmem [resolvable:$true] %s48_s1 }
   0x7   :  { %s5482_s2 = smov 28  }
   0x8   :  { %54 = dma.hbm_to_vmem [thread:$0]  %s47_s20, 28672, %s49_s1, [#allocation5], %s5481_s22, %s5481_s22, %s5482_s2  }
   0x9   :  { %5478 = dma.done.wait [#allocation5], 28672  }
   0xa   :  { %5479 = vsyncadd [#allocation5], 4294938624  ;;  %s6896_s25 = sld [smem:[#allocation10_spill]]  ;;  %vm480_vm3 = vcmask 1040384   ;;  %vm612_vm9 = vcmask 130048  }
   0xb   :  { %s6897_s1 = sld [smem:[#allocation8_spill]] }
   0xc   :  { %s6898_s22 = sld [smem:[#allocation7_spill]] }
   0xd   :  { %s6905_s3 = sld [smem:[#allocation9_spill]] }
  0x10   :  { %v3941_v0 = vld [vmem:[%s6896_s25 + $0xe8] sm:$0xf]  ;;  %v5143_v1 = vld [vmem:[%s6896_s25 + $0xf4] sm:$0xf0]  ;;  %v5141_v2 = vld [vmem:[%s6896_s25 + $0xec] sm:$0xf] }
  0x11   :  { %v3942_v3 = vor.u32 %v5143_v1, %v3941_v0  ;;  %v3943_v4 = vld [vmem:[%s6896_s25 + $0xf8] sm:$0xf0]  ;;  %v3933_v5 = vld [vmem:[%s6896_s25 + $0xe0] sm:$0xf]  ;;  %v5142_v6 = vld [vmem:[%s6896_s25 + $0xec] sm:$0xf0] }
  0x12   :  { %v3946_v7 = vor.u32 %v5141_v2, %v3943_v4  ;;  %v3934_v8 = vor.u32 %v5142_v6, %v3933_v5  ;;  %v5140_v9 = vld [vmem:[%s6896_s25 + $0xe4] sm:$0xf]  ;;  %v3935_v10 = vld [vmem:[%s6896_s25 + $0xf0] sm:$0xf0]  ;;  %v3925_v11 = vld [vmem:[%s6896_s25 + $0xc8] sm:$0xf] }
  0x13   :  { %320 = vmatpush.bf16.msra.mxu2 %v3942_v3  ;;  %v3938_v12 = vor.u32 %v5140_v9, %v3935_v10  ;;  %v5139_v13 = vld [vmem:[%s6896_s25 + $0xd4] sm:$0xf0]  ;;  %v5137_v14 = vld [vmem:[%s6896_s25 + $0xcc] sm:$0xf]  ;;  %v3927_v15 = vld [vmem:[%s6896_s25 + $0xd8] sm:$0xf0] }
  0x14   :  { %333 = vmatpush.bf16.msra.mxu3 %v3946_v7  ;;  %294 = vmatpush.bf16.msra.mxu0 %v3934_v8  ;;  %v3926_v16 = vor.u32 %v5139_v13, %v3925_v11  ;;  %v3930_v17 = vor.u32 %v5137_v14, %v3927_v15  ;;  %v3917_v18 = vld [vmem:[%s6896_s25 + $0xc0] sm:$0xf]  ;;  %v5138_v19 = vld [vmem:[%s6896_s25 + $0xcc] sm:$0xf0]  ;;  %v5136_v20 = vld [vmem:[%s6896_s25 + $0xc4] sm:$0xf] }
  0x15   :  { %307 = vmatpush.bf16.msra.mxu1 %v3938_v12  ;;  %v3918_v21 = vor.u32 %v5138_v19, %v3917_v18  ;;  %v3919_v22 = vld [vmem:[%s6896_s25 + $0xd0] sm:$0xf0]  ;;  %v3909_v23 = vld [vmem:[%s6896_s25 + $0xa8] sm:$0xf]  ;;  %v5135_v24 = vld [vmem:[%s6896_s25 + $0xb4] sm:$0xf0] }
  0x16   :  { %v3922_v25 = vor.u32 %v5136_v20, %v3919_v22  ;;  %v5133_v26 = vld [vmem:[%s6896_s25 + $0xac] sm:$0xf]  ;;  %v3911_v27 = vld [vmem:[%s6896_s25 + $0xb8] sm:$0xf0]  ;;  %v3901_v28 = vld [vmem:[%s6896_s25 + $0xa0] sm:$0xf]  ;;  %v3910_v29 = vor.u32 %v5135_v24, %v3909_v23 }
  0x17   :  { %321 = vmatpush.bf16.msra.mxu2 %v3926_v16  ;;  %v5134_v30 = vld [vmem:[%s6896_s25 + $0xac] sm:$0xf0]  ;;  %v5132_v31 = vld [vmem:[%s6896_s25 + $0xa4] sm:$0xf]  ;;  %v3903_v32 = vld [vmem:[%s6896_s25 + $0xb0] sm:$0xf0]  ;;  %v3914_v33 = vor.u32 %v5133_v26, %v3911_v27 }
  0x18   :  { %334 = vmatpush.bf16.msra.mxu3 %v3930_v17  ;;  %295 = vmatpush.bf16.msra.mxu0 %v3918_v21  ;;  %v3902_v34 = vor.u32 %v5134_v30, %v3901_v28  ;;  %v3893_v35 = vld [vmem:[%s6896_s25 + $0x88] sm:$0xf]  ;;  %v5131_v36 = vld [vmem:[%s6896_s25 + $0x94] sm:$0xf0]  ;;  %v5129_v37 = vld [vmem:[%s6896_s25 + $0x8c] sm:$0xf]  ;;  %v3906_v38 = vor.u32 %v5132_v31, %v3903_v32 }
  0x19   :  { %308 = vmatpush.bf16.msra.mxu1 %v3922_v25  ;;  %v3895_v39 = vld [vmem:[%s6896_s25 + $0x98] sm:$0xf0]  ;;  %v3885_v40 = vld [vmem:[%s6896_s25 + $0x80] sm:$0xf]  ;;  %v5130_v41 = vld [vmem:[%s6896_s25 + $0x8c] sm:$0xf0]  ;;  %v3894_v44 = vor.u32 %v5131_v36, %v3893_v35 }
  0x1a   :  { %v5128_v42 = vld [vmem:[%s6896_s25 + $0x84] sm:$0xf]  ;;  %v3887_v43 = vld [vmem:[%s6896_s25 + $0x90] sm:$0xf0]  ;;  %v3898_v45 = vor.u32 %v5129_v37, %v3895_v39  ;;  %v3886_v46 = vor.u32 %v5130_v41, %v3885_v40  ;;  %v3877_v47 = vld [vmem:[%s6896_s25 + $0x68] sm:$0xf] }
  0x1b   :  { %322 = vmatpush.bf16.msra.mxu2 %v3910_v29  ;;  %v5127_v48 = vld [vmem:[%s6896_s25 + $0x74] sm:$0xf0]  ;;  %v5125_v49 = vld [vmem:[%s6896_s25 + $0x6c] sm:$0xf]  ;;  %v3890_v50 = vor.u32 %v5128_v42, %v3887_v43  ;;  %v3879_v51 = vld [vmem:[%s6896_s25 + $0x78] sm:$0xf0] }
  0x1c   :  { %335 = vmatpush.bf16.msra.mxu3 %v3914_v33  ;;  %296 = vmatpush.bf16.msra.mxu0 %v3902_v34  ;;  %v3869_v52 = vld [vmem:[%s6896_s25 + $0x60] sm:$0xf]  ;;  %v5126_v53 = vld [vmem:[%s6896_s25 + $0x6c] sm:$0xf0]  ;;  %v5124_v54 = vld [vmem:[%s6896_s25 + $0x64] sm:$0xf]  ;;  %v3878_v56 = vor.u32 %v5127_v48, %v3877_v47  ;;  %v3882_v57 = vor.u32 %v5125_v49, %v3879_v51 }
  0x1d   :  { %309 = vmatpush.bf16.msra.mxu1 %v3906_v38  ;;  %v3871_v55 = vld [vmem:[%s6896_s25 + $0x70] sm:$0xf0]  ;;  %v3870_v58 = vor.u32 %v5126_v53, %v3869_v52  ;;  %v3861_v59 = vld [vmem:[%s6896_s25 + $0x48] sm:$0xf]  ;;  %v5123_v60 = vld [vmem:[%s6896_s25 + $0x54] sm:$0xf0] }
  0x1e   :  { %v5121_v61 = vld [vmem:[%s6896_s25 + $0x4c] sm:$0xf]  ;;  %v3874_v62 = vor.u32 %v5124_v54, %v3871_v55  ;;  %v3863_v63 = vld [vmem:[%s6896_s25 + $0x58] sm:$0xf0]  ;;  %v3853_v0 = vld [vmem:[%s6896_s25 + $0x40] sm:$0xf]  ;;  %v3862_v4 = vor.u32 %v5123_v60, %v3861_v59 }
  0x1f   :  { %323 = vmatpush.bf16.msra.mxu2 %v3894_v44  ;;  %v5122_v1 = vld [vmem:[%s6896_s25 + $0x4c] sm:$0xf0]  ;;  %v5120_v2 = vld [vmem:[%s6896_s25 + $0x44] sm:$0xf]  ;;  %v3855_v3 = vld [vmem:[%s6896_s25 + $0x50] sm:$0xf0]  ;;  %v3866_v5 = vor.u32 %v5121_v61, %v3863_v63 }
  0x20   :  { %336 = vmatpush.bf16.msra.mxu3 %v3898_v45  ;;  %297 = vmatpush.bf16.msra.mxu0 %v3886_v46  ;;  %v3854_v6 = vor.u32 %v5122_v1, %v3853_v0  ;;  %v3845_v7 = vld [vmem:[%s6896_s25 + $0x28] sm:$0xf]  ;;  %v5119_v8 = vld [vmem:[%s6896_s25 + $0x34] sm:$0xf0]  ;;  %v5117_v9 = vld [vmem:[%s6896_s25 + $0x2c] sm:$0xf]  ;;  %v3858_v10 = vor.u32 %v5120_v2, %v3855_v3 }
  0x21   :  { %310 = vmatpush.bf16.msra.mxu1 %v3890_v50  ;;  %v3847_v11 = vld [vmem:[%s6896_s25 + $0x38] sm:$0xf0]  ;;  %v3837_v12 = vld [vmem:[%s6896_s25 + $0x20] sm:$0xf]  ;;  %v5118_v13 = vld [vmem:[%s6896_s25 + $0x2c] sm:$0xf0]  ;;  %v3846_v16 = vor.u32 %v5119_v8, %v3845_v7 }
  0x22   :  { %v5116_v14 = vld [vmem:[%s6896_s25 + $0x24] sm:$0xf]  ;;  %v3839_v15 = vld [vmem:[%s6896_s25 + $0x30] sm:$0xf0]  ;;  %v3850_v17 = vor.u32 %v5117_v9, %v3847_v11  ;;  %v3838_v18 = vor.u32 %v5118_v13, %v3837_v12  ;;  %v3829_v19 = vld [vmem:[%s6896_s25 + $0x8] sm:$0xf] }
  0x23   :  { %324 = vmatpush.bf16.msra.mxu2 %v3878_v56  ;;  %v5115_v20 = vld [vmem:[%s6896_s25 + $0x14] sm:$0xf0]  ;;  %v5113_v21 = vld [vmem:[%s6896_s25 + $0xc] sm:$0xf]  ;;  %v3842_v22 = vor.u32 %v5116_v14, %v3839_v15  ;;  %v3831_v23 = vld [vmem:[%s6896_s25 + $0x18] sm:$0xf0] }
  0x24   :  { %337 = vmatpush.bf16.msra.mxu3 %v3882_v57  ;;  %298 = vmatpush.bf16.msra.mxu0 %v3870_v58  ;;  %v3821_v24 = vld [vmem:[%s6896_s25] sm:$0xf]  ;;  %v5114_v25 = vld [vmem:[%s6896_s25 + $0xc] sm:$0xf0]  ;;  %v5112_v26 = vld [vmem:[%s6896_s25 + $0x4] sm:$0xf]  ;;  %v3830_v28 = vor.u32 %v5115_v20, %v3829_v19  ;;  %v3834_v29 = vor.u32 %v5113_v21, %v3831_v23 }
  0x25   :  { %311 = vmatpush.bf16.msra.mxu1 %v3874_v62  ;;  %v3823_v27 = vld [vmem:[%s6896_s25 + $0x10] sm:$0xf0]  ;;  %v3822_v30 = vor.u32 %v5114_v25, %v3821_v24  ;;  %v365_v32 = vld [vmem:[%s6877_s7 + $0x78] sm:$0xff]  ;;  %v91_v33 = vld [vmem:[%s6897_s1] sm:$0xf]  ;;  %p80_p0 = scmp.gt.s32.totalorder %s6898_s22, 1 }
  0x26   :  { %v3826_v31 = vor.u32 %v5112_v26, %v3823_v27  ;;  %v381_v34 = vld [vmem:[%s6877_s7 + $0xf8] sm:$0xff]  ;;  %v364_v35 = vld [vmem:[%s6877_s7 + $0x70] sm:$0xff]  ;;  %v363_v38 = vld [vmem:[%s6877_s7 + $0x68] sm:$0xff]  ;;  %p3813_p1 = scmp.lt.s32.totalorder %s6898_s22, 8 }
  0x27   :  { %325 = vmatpush.bf16.msra.mxu2 %v3862_v4  ;;  %v380_v36 = vld [vmem:[%s6877_s7 + $0xf0] sm:$0xff]  ;;  %v397_v37 = vld [vmem:[%s6877_s7 + $0x178] sm:$0xff]  ;;  %v379_v40 = vld [vmem:[%s6877_s7 + $0xe8] sm:$0xff]  ;;  %s81_s28 = scalar_select %p80_p0, %s6898_s22, 1 }
  0x28   :  { %338 = vmatpush.bf16.msra.mxu3 %v3866_v5  ;;  %299 = vmatpush.bf16.msra.mxu0 %v3854_v6  ;;  %v413_v39 = vld [vmem:[%s6877_s7 + $0x1f8] sm:$0xff]  ;;  %v396_v41 = vld [vmem:[%s6877_s7 + $0x170] sm:$0xff]  ;;  %v362_v42 = vld [vmem:[%s6877_s7 + $0x60] sm:$0xff] }
  0x29   :  { %312 = vmatpush.bf16.msra.mxu1 %v3858_v10  ;;  %v412_v43 = vld [vmem:[%s6877_s7 + $0x1f0] sm:$0xff]  ;;  %v378_v44 = vld [vmem:[%s6877_s7 + $0xe0] sm:$0xff]  ;;  %v395_v45 = vld [vmem:[%s6877_s7 + $0x168] sm:$0xff]  ;;  %s6907_s28 = smov (!%p3813_p1, %s81_s28), 8 }
  0x2a   :  { %v361_v46 = vld [vmem:[%s6877_s7 + $0x58] sm:$0xff]  ;;  %v411_v47 = vld [vmem:[%s6877_s7 + $0x1e8] sm:$0xff]  ;;  %v360_v49 = vld [vmem:[%s6877_s7 + $0x50] sm:$0xff]  ;;  %s84_s23 = scvt.s32.f32 %s6907_s28 }
  0x2b   :  { %326 = vmatpush.bf16.msra.mxu2 %v3846_v16  ;;  %v377_v48 = vld [vmem:[%s6877_s7 + $0xd8] sm:$0xff]  ;;  %v376_v50 = vld [vmem:[%s6877_s7 + $0xd0] sm:$0xff]  ;;  %v394_v51 = vld [vmem:[%s6877_s7 + $0x160] sm:$0xff] }
  0x2c   :  { %339 = vmatpush.bf16.msra.mxu3 %v3850_v17  ;;  %300 = vmatpush.bf16.msra.mxu0 %v3838_v18  ;;  %v410_v52 = vld [vmem:[%s6877_s7 + $0x1e0] sm:$0xff]  ;;  %v359_v53 = vld [vmem:[%s6877_s7 + $0x48] sm:$0xff]  ;;  %v393_v55 = vld [vmem:[%s6877_s7 + $0x158] sm:$0xff]  ;;  %s565_s30 = smul.f32 27.0, %s84_s23 }
  0x2d   :  { %313 = vmatpush.bf16.msra.mxu1 %v3842_v22  ;;  %v375_v54 = vld [vmem:[%s6877_s7 + $0xc8] sm:$0xff]  ;;  %v409_v56 = vld [vmem:[%s6877_s7 + $0x1d8] sm:$0xff]  ;;  %v358_v57 = vld [vmem:[%s6877_s7 + $0x40] sm:$0xff] }
  0x2e   :  { %v374_v58 = vld [vmem:[%s6877_s7 + $0xc0] sm:$0xff]  ;;  %v392_v59 = vld [vmem:[%s6877_s7 + $0x150] sm:$0xff]  ;;  %v357_v61 = vld [vmem:[%s6877_s7 + $0x38] sm:$0xff] }
  0x2f   :  { %327 = vmatpush.bf16.msra.mxu2 %v3830_v28  ;;  %v408_v60 = vld [vmem:[%s6877_s7 + $0x1d0] sm:$0xff]  ;;  %v373_v62 = vld [vmem:[%s6877_s7 + $0xb8] sm:$0xff]  ;;  %v391_v63 = vld [vmem:[%s6877_s7 + $0x148] sm:$0xff] }
  0x30   :  { %340 = vmatpush.bf16.msra.mxu3 %v3834_v29  ;;  %301 = vmatpush.bf16.msra.mxu0 %v3822_v30  ;;  %v407_v0 = vld [vmem:[%s6877_s7 + $0x1c8] sm:$0xff]  ;;  %v356_v1 = vld [vmem:[%s6877_s7 + $0x30] sm:$0xff]  ;;  %v390_v3 = vld [vmem:[%s6877_s7 + $0x140] sm:$0xff]  ;;  %v85_v29 = vlaneseq }
  0x31   :  { %314 = vmatpush.bf16.msra.mxu1 %v3826_v31  ;;  %v372_v2 = vld [vmem:[%s6877_s7 + $0xb0] sm:$0xff]  ;;  %v406_v4 = vld [vmem:[%s6877_s7 + $0x1c0] sm:$0xff]  ;;  %v355_v5 = vld [vmem:[%s6877_s7 + $0x28] sm:$0xff] }
  0x32   :  { %328 = vmatmul.bf16.vlgmr.msra.gmra.mxu2 %v91_v33  ;;  %v371_v6 = vld [vmem:[%s6877_s7 + $0xa8] sm:$0xff]  ;;  %v389_v7 = vld [vmem:[%s6877_s7 + $0x138] sm:$0xff]  ;;  %v354_v9 = vld [vmem:[%s6877_s7 + $0x20] sm:$0xff] }
  0x33   :  { %341 = vmatmul.bf16.vlgmr.msra.gmra.mxu3 %v91_v33  ;;  %302 = vmatmul.bf16.vlgmr.msra.gmra.mxu0 %v91_v33  ;;  %v405_v8 = vld [vmem:[%s6877_s7 + $0x1b8] sm:$0xff]  ;;  %v370_v10 = vld [vmem:[%s6877_s7 + $0xa0] sm:$0xff]  ;;  %v388_v11 = vld [vmem:[%s6877_s7 + $0x130] sm:$0xff] }
  0x34   :  { %485 = vmatpush.msrb.mxu0 %v365_v32  ;;  %315 = vmatmul.bf16.vlgmr.msra.gmra.mxu1 %v91_v33  ;;  %v404_v12 = vld [vmem:[%s6877_s7 + $0x1b0] sm:$0xff]  ;;  %v353_v13 = vld [vmem:[%s6877_s7 + $0x18] sm:$0xff]  ;;  %v387_v15 = vld [vmem:[%s6877_s7 + $0x128] sm:$0xff] }
  0x35   :  { %505 = vmatpush.msrb.mxu1 %v381_v34  ;;  %525 = vmatpush.msrb.mxu2 %v397_v37  ;;  %v369_v14 = vld [vmem:[%s6877_s7 + $0x98] sm:$0xff]  ;;  %v403_v16 = vld [vmem:[%s6877_s7 + $0x1a8] sm:$0xff]  ;;  %v352_v17 = vld [vmem:[%s6877_s7 + $0x10] sm:$0xff]  ;;  %v6001_v37 = vstv %s565_s30 }
  0x36   :  { %486 = vmatpush.msrb.mxu0 %v364_v35  ;;  %545 = vmatpush.msrb.mxu3 %v413_v39  ;;  %v368_v18 = vld [vmem:[%s6877_s7 + $0x90] sm:$0xff]  ;;  %v386_v19 = vld [vmem:[%s6877_s7 + $0x120] sm:$0xff]  ;;  %v351_v21 = vld [vmem:[%s6877_s7 + $0x8] sm:$0xff]  ;;  %v86_v35 = vshrl.u32 %v85_v29, 7  ;;  %5442 = vrcp.f32 %v6001_v37  ;;  %vm572_vm1 = vweird.f32 %v6001_v37 }
  0x37   :  { %506 = vmatpush.msrb.mxu1 %v380_v36  ;;  %526 = vmatpush.msrb.mxu2 %v396_v41  ;;  %v402_v20 = vld [vmem:[%s6877_s7 + $0x1a0] sm:$0xff]  ;;  %v367_v22 = vld [vmem:[%s6877_s7 + $0x88] sm:$0xff]  ;;  %v385_v23 = vld [vmem:[%s6877_s7 + $0x118] sm:$0xff]  ;;  %v87_v36 = vstv %s6907_s28 }
  0x38   :  { %487 = vmatpush.msrb.mxu0 %v363_v38  ;;  %546 = vmatpush.msrb.mxu3 %v412_v43  ;;  %v401_v24 = vld [vmem:[%s6877_s7 + $0x198] sm:$0xff]  ;;  %v350_v25 = vld [vmem:[%s6877_s7] sm:$0xff]  ;;  %v384_v27 = vld [vmem:[%s6877_s7 + $0x110] sm:$0xff]  ;;  %vm88_vm0 = vcmp.lt.s32.totalorder %v86_v35, %v87_v36  ;;  %v5483_v43 = vmov 0.0  }
  0x39   :  { %507 = vmatpush.msrb.mxu1 %v379_v40  ;;  %527 = vmatpush.msrb.mxu2 %v395_v45  ;;  %v366_v26 = vld [vmem:[%s6877_s7 + $0x80] sm:$0xff]  ;;  %v400_v28 = vld [vmem:[%s6877_s7 + $0x190] sm:$0xff]  ;;  %v383_v30 = vld [vmem:[%s6877_s7 + $0x108] sm:$0xff] }
  0x3a   :  { %488 = vmatpush.msrb.mxu0 %v362_v42  ;;  %547 = vmatpush.msrb.mxu3 %v411_v47  ;;  %v399_v31 = vld [vmem:[%s6877_s7 + $0x188] sm:$0xff]  ;;  %v382_v32 = vld [vmem:[%s6877_s7 + $0x100] sm:$0xff] }
  0x3b   :  { %508 = vmatpush.msrb.mxu1 %v378_v44  ;;  %528 = vmatpush.msrb.mxu2 %v394_v51  ;;  %v398_v33 = vld [vmem:[%s6877_s7 + $0x180] sm:$0xff]  ;;  %v6004_v44 = vsel %vm88_vm0, 1.0, %v5483_v43 }
  0x3c   :  { %489 = vmatpush.msrb.mxu0 %v361_v46  ;;  %548 = vmatpush.msrb.mxu3 %v410_v52  ;;  %v124_v34 = vld [vmem:[%s6874_s4] sm:$0xf]  ;;  %v6006_v47 = vpop.eup %5442 }
  0x3d   :  { %509 = vmatpush.msrb.mxu1 %v377_v48  ;;  %529 = vmatpush.msrb.mxu2 %v393_v55  ;;  %v126_v38 = vperm.slane %v124_v34, 0  ;;  %v127_v39 = vperm.slane %v124_v34, 1  ;;  %v128_v46 = vperm.slane %v124_v34, 2  ;;  %v568_v51 = vmul.f32 %v6006_v47, %v6001_v37 }
  0x3e   :  { %490 = vmatpush.msrb.mxu0 %v360_v49  ;;  %549 = vmatpush.msrb.mxu3 %v409_v56  ;;  %v129_v49 = vperm.slane %v124_v34, 3  ;;  %v578_v55 = vand.u32 2147483648, %v6001_v37  ;;  %vm573_vm4 = vweird.f32 %v6006_v47 }
  0x3f   :  { %510 = vmatpush.msrb.mxu1 %v376_v50  ;;  %530 = vmatpush.msrb.mxu2 %v392_v59  ;;  %v569_v59 = vsub.f32 1.0, %v568_v51  ;;  %vm6044_vm5 = vmor %vm572_vm1, %vm573_vm4  ;;  %vm2945_vm1 = vcmask 261120  }
  0x40   :  { %491 = vmatpush.msrb.mxu0 %v359_v53  ;;  %550 = vmatpush.msrb.mxu3 %v408_v60 }
  0x41   :  { %511 = vmatpush.msrb.mxu1 %v375_v54  ;;  %531 = vmatpush.msrb.mxu2 %v391_v63  ;;  %v576_v54 = vand.u32 2147483647, %v6001_v37 }
  0x42   :  { %492 = vmatpush.msrb.mxu0 %v358_v57  ;;  %551 = vmatpush.msrb.mxu3 %v407_v0 }
  0x43   :  { %512 = vmatpush.msrb.mxu1 %v374_v58  ;;  %532 = vmatpush.msrb.mxu2 %v390_v3  ;;  %v570_v3 = vmul.f32 %v6006_v47, %v569_v59  ;;  %vm6028_vm2 = vcmp.eq.f32.partialorder %v576_v54, 8.507059e+37 }
  0x44   :  { %493 = vmatpush.msrb.mxu0 %v357_v61  ;;  %552 = vmatpush.msrb.mxu3 %v406_v4 }
  0x45   :  { %513 = vmatpush.msrb.mxu1 %v373_v62  ;;  %533 = vmatpush.msrb.mxu2 %v389_v7 }
  0x46   :  { %494 = vmatpush.msrb.mxu0 %v356_v1  ;;  %553 = vmatpush.msrb.mxu3 %v405_v8 }
  0x47   :  { %514 = vmatpush.msrb.mxu1 %v372_v2  ;;  %534 = vmatpush.msrb.mxu2 %v388_v11 }
  0x48   :  { %495 = vmatpush.msrb.mxu0 %v355_v5  ;;  %554 = vmatpush.msrb.mxu3 %v404_v12 }
  0x49   :  { %515 = vmatpush.msrb.mxu1 %v371_v6  ;;  %535 = vmatpush.msrb.mxu2 %v387_v15 }
  0x4a   :  { %496 = vmatpush.msrb.mxu0 %v354_v9  ;;  %555 = vmatpush.msrb.mxu3 %v403_v16  ;;  %v579_v9 = vor.u32 1.1754944e-38, %v578_v55  ;;  %v571_v16 = vadd.f32 %v6006_v47, %v570_v3 }
  0x4b   :  { %516 = vmatpush.msrb.mxu1 %v370_v10  ;;  %536 = vmatpush.msrb.mxu2 %v386_v19 }
  0x4c   :  { %497 = vmatpush.msrb.mxu0 %v353_v13  ;;  %556 = vmatpush.msrb.mxu3 %v402_v20 }
  0x4d   :  { %517 = vmatpush.msrb.mxu1 %v369_v14  ;;  %537 = vmatpush.msrb.mxu2 %v385_v23 }
  0x4e   :  { %498 = vmatpush.msrb.mxu0 %v352_v17  ;;  %557 = vmatpush.msrb.mxu3 %v401_v24 }
  0x4f   :  { %518 = vmatpush.msrb.mxu1 %v368_v18  ;;  %538 = vmatpush.msrb.mxu2 %v384_v27 }
  0x50   :  { %499 = vmatpush.msrb.mxu0 %v351_v21  ;;  %558 = vmatpush.msrb.mxu3 %v400_v28 }
  0x51   :  { %519 = vmatpush.msrb.mxu1 %v367_v22  ;;  %539 = vmatpush.msrb.mxu2 %v383_v30 }
  0x52   :  { %500 = vmatpush.msrb.mxu0 %v350_v25  ;;  %559 = vmatpush.msrb.mxu3 %v399_v31 }
  0x53   :  { %520 = vmatpush.msrb.mxu1 %v366_v26  ;;  %540 = vmatpush.msrb.mxu2 %v382_v32 }
  0x54   :  { %560 = vmatpush.msrb.mxu3 %v398_v33 }
  0xb0   :  { %v303_v40 = vpop.f32.mrf.mxu0 }
  0xb1   :  { %v304_v41 = vadd.f32 %v303_v40, %v126_v38  ;;  %v316_v42 = vpop.f32.mrf.mxu1 }
  0xb2   :  { %v317_v45 = vadd.f32 %v316_v42, %v127_v39 }
  0xb3   :  { %v6008_v48 = vmax.f32 %v304_v41, 0.0 }
  0xb4   :  { %v6010_v50 = vmax.f32 %v317_v45, 0.0 }
  0xb5   :  { %v424_v52 = vmul.f32 %v6004_v44, %v6008_v48  ;;  %v329_v53 = vpop.f32.mrf.mxu2 }
  0xb6   :  { %v425_v56 = vmul.f32 %v6004_v44, %v6010_v50  ;;  %v330_v57 = vadd.f32 %v329_v53, %v128_v46  ;;  %v342_v58 = vpop.f32.mrf.mxu3 }
  0xb7   :  { %v428_v60 = vrot.slane %v424_v52, 4  ;;  %v452_v61 = vmul.f32 %v424_v52, %v6008_v48  ;;  %v343_v62 = vadd.f32 %v342_v58, %v129_v49 }
  0xb8   :  { %v434_v63 = vrot.slane %v425_v56, 4  ;;  %v453_v0 = vmul.f32 %v425_v56, %v6010_v50  ;;  %v6023_v1 = vmax.f32 %v330_v57, 0.0  ;;  %v305_v2 = vpop.f32.mrf.mxu0  ;;  %v575_v57 = vsel %vm6044_vm5, %v6006_v47, %v571_v16 }
  0xb9   :  { %v456_v4 = vrot.slane %v452_v61, 4  ;;  %v6026_v5 = vmax.f32 %v343_v62, 0.0  ;;  %v318_v6 = vpop.f32.mrf.mxu1  ;;  %v429_v7 = vadd.f32 %v428_v60, %v424_v52  ;;  %v580_v60 = vsel %vm6028_vm2, %v579_v9, %v575_v57  ;;  %v4093_v57 = vld [vmem:[#allocation4 + $0x118] sm:$0xf] }
  0xba   :  { %v462_v10 = vrot.slane %v453_v0, 4  ;;  %v426_v11 = vmul.f32 %v6004_v44, %v6023_v1  ;;  %v435_v12 = vadd.f32 %v434_v63, %v425_v56  ;;  %5432 = vpush %v580_v60  ;;  %v5238_v60 = vld [vmem:[#allocation4 + $0x2f0] sm:$0xf0] }
  0xbb   :  { %v457_v13 = vadd.f32 %v456_v4, %v452_v61  ;;  %v427_v14 = vmul.f32 %v6004_v44, %v6026_v5  ;;  %v430_v15 = vrot.slane %v429_v7, 2 }
  0xbc   :  { %v463_v17 = vadd.f32 %v462_v10, %v453_v0  ;;  %v440_v18 = vrot.slane %v426_v11, 4  ;;  %v454_v19 = vmul.f32 %v426_v11, %v6023_v1  ;;  %v436_v20 = vrot.slane %v435_v12, 2 }
  0xbd   :  { %v446_v21 = vrot.slane %v427_v14, 4  ;;  %v455_v22 = vmul.f32 %v427_v14, %v6026_v5  ;;  %v331_v23 = vpop.f32.mrf.mxu2  ;;  %v431_v24 = vadd.f32 %v430_v15, %v429_v7  ;;  %v458_v25 = vrot.slane %v457_v13, 2 }
  0xbe   :  { %v468_v26 = vrot.slane %v454_v19, 4  ;;  %v344_v27 = vpop.f32.mrf.mxu3  ;;  %v437_v28 = vadd.f32 %v436_v20, %v435_v12  ;;  %v464_v30 = vrot.slane %v463_v17, 2  ;;  %v441_v31 = vadd.f32 %v440_v18, %v426_v11  ;;  %v418_v23 = vld [vmem:[%s6878_s8 + $0x20] sm:$0xff] }
  0xbf   :  { %v474_v32 = vrot.slane %v455_v22, 4  ;;  %v432_v33 = vrot.slane %v431_v24, 1  ;;  %v459_v34 = vadd.f32 %v458_v25, %v457_v13  ;;  %v447_v35 = vadd.f32 %v446_v21, %v427_v14  ;;  %v420_v25 = vld [vmem:[%s6878_s8 + $0x30] sm:$0xff]  ;;  %630 = vmatpush.msra.mxu0 %v418_v23  ;;  %v414_v27 = vld [vmem:[%s6878_s8] sm:$0xff] }
  0xc0   :  { %v469_v36 = vadd.f32 %v468_v26, %v454_v19  ;;  %v438_v38 = vrot.slane %v437_v28, 1  ;;  %v465_v39 = vadd.f32 %v464_v30, %v463_v17  ;;  %v442_v40 = vrot.slane %v441_v31, 2  ;;  %v421_v26 = vld [vmem:[%s6878_s8 + $0x38] sm:$0xff]  ;;  %670 = vmatpush.msra.mxu2 %v420_v25  ;;  %v416_v30 = vld [vmem:[%s6878_s8 + $0x10] sm:$0xff] }
  0xc1   :  { %v475_v42 = vadd.f32 %v474_v32, %v455_v22  ;;  %v433_v43 = vadd.f32 %v432_v33, %v431_v24  ;;  %v460_v45 = vrot.slane %v459_v34, 1  ;;  %v448_v46 = vrot.slane %v447_v35, 2  ;;  %v419_v24 = vld [vmem:[%s6878_s8 + $0x28] sm:$0xff]  ;;  %690 = vmatpush.msra.mxu3 %v421_v26  ;;  %631 = vmatpush.msra.mxu0 %v414_v27  ;;  %v4149_v32 = vld [vmem:[#allocation4 + $0x188] sm:$0xf] }
  0xc2   :  { %v439_v49 = vadd.f32 %v438_v38, %v437_v28  ;;  %v466_v51 = vrot.slane %v465_v39, 1  ;;  %v443_v52 = vadd.f32 %v442_v40, %v441_v31  ;;  %v470_v53 = vrot.slane %v469_v36, 2  ;;  %650 = vmatpush.msra.mxu1 %v419_v24  ;;  %v415_v28 = vld [vmem:[%s6878_s8 + $0x8] sm:$0xff]  ;;  %v417_v31 = vld [vmem:[%s6878_s8 + $0x18] sm:$0xff]  ;;  %671 = vmatpush.msra.mxu2 %v416_v30  ;;  %v4037_v23 = vld [vmem:[#allocation4 + $0xa8] sm:$0xf] }
  0xc3   :  { %v461_v54 = vadd.f32 %v460_v45, %v459_v34  ;;  %v449_v55 = vadd.f32 %v448_v46, %v447_v35  ;;  %v476_v56 = vrot.slane %v475_v42, 2  ;;  %691 = vmatpush.msra.mxu3 %v417_v31  ;;  %v5196_v33 = vld [vmem:[#allocation4 + $0x1a0] sm:$0xf0]  ;;  %v4373_v34 = vld [vmem:[#allocation4 + $0x348] sm:$0xf] }
  0xc4   :  { %v467_v37 = vadd.f32 %v466_v51, %v465_v39  ;;  %v444_v58 = vrot.slane %v443_v52, 1  ;;  %v471_v59 = vadd.f32 %v470_v53, %v469_v36  ;;  %651 = vmatpush.msra.mxu1 %v415_v28  ;;  %v4150_v35 = vor.u32 %v5196_v33, %v4149_v32  ;;  %v5252_v36 = vld [vmem:[#allocation4 + $0x360] sm:$0xf0]  ;;  %v4121_v38 = vld [vmem:[#allocation4 + $0x150] sm:$0xf] }
  0xc5   :  { %v481_v61 = vsel %vm480_vm3, %v433_v43, %v461_v54  ;;  %v450_v62 = vrot.slane %v449_v55, 1  ;;  %v477_v63 = vadd.f32 %v476_v56, %v475_v42  ;;  %v5189_v39 = vld [vmem:[#allocation4 + $0x168] sm:$0xf0]  ;;  %v4374_v41 = vor.u32 %v5252_v36, %v4373_v34  ;;  %v4345_v42 = vld [vmem:[#allocation4 + $0x310] sm:$0xf] }
  0xc6   :  { %501 = vmatmul.f32.vlgmr.msrb.gmra.mxu0 %v481_v61  ;;  %v482_v0 = vsel %vm480_vm3, %v439_v49, %v467_v37  ;;  %v472_v2 = vrot.slane %v471_v59, 1  ;;  %v445_v4 = vadd.f32 %v444_v58, %v443_v52  ;;  %v5245_v43 = vld [vmem:[#allocation4 + $0x328] sm:$0xf0]  ;;  %v4597_v45 = vld [vmem:[#allocation4 + $0x508] sm:$0xf]  ;;  %v4122_v49 = vor.u32 %v5189_v39, %v4121_v38 }
  0xc7   :  { %521 = vmatmul.f32.vlgmr.msrb.gmra.mxu1 %v482_v0  ;;  %v478_v3 = vrot.slane %v477_v63, 1  ;;  %v451_v47 = vadd.f32 %v450_v62, %v449_v55  ;;  %2140 = vmatpush.bf16.msrb.mxu0 %v4150_v35  ;;  %v5308_v51 = vld [vmem:[#allocation4 + $0x520] sm:$0xf0]  ;;  %v4821_v52 = vld [vmem:[#allocation4 + $0x6c8] sm:$0xf]  ;;  %v4346_v54 = vor.u32 %v5245_v43, %v4345_v42 }
  0xc8   :  { %v473_v6 = vadd.f32 %v472_v2, %v471_v59  ;;  %v5364_v53 = vld [vmem:[#allocation4 + $0x6e0] sm:$0xf0]  ;;  %2153 = vmatpush.bf16.msrb.mxu1 %v4374_v41  ;;  %v4598_v55 = vor.u32 %v5308_v51, %v4597_v45  ;;  %v5182_v37 = vld [vmem:[#allocation4 + $0x130] sm:$0xf0]  ;;  %v4317_v59 = vld [vmem:[#allocation4 + $0x2d8] sm:$0xf] }
  0xc9   :  { %v479_v7 = vadd.f32 %v478_v3, %v477_v63  ;;  %v4822_v56 = vor.u32 %v5364_v53, %v4821_v52  ;;  %v4569_v61 = vld [vmem:[#allocation4 + $0x4d0] sm:$0xf]  ;;  %v5301_v62 = vld [vmem:[#allocation4 + $0x4e8] sm:$0xf0]  ;;  %v4094_v3 = vor.u32 %v5182_v37, %v4093_v57  ;;  %v5168_v24 = vld [vmem:[#allocation4 + $0xc0] sm:$0xf0] }
  0xca   :  { %v483_v10 = vsel %vm480_vm3, %v445_v4, %v473_v6  ;;  %v4793_v63 = vld [vmem:[#allocation4 + $0x690] sm:$0xf]  ;;  %v5357_v0 = vld [vmem:[#allocation4 + $0x6a8] sm:$0xf0]  ;;  %v4570_v4 = vor.u32 %v5301_v62, %v4569_v61  ;;  %v5287_v26 = vld [vmem:[#allocation4 + $0x478] sm:$0xf0]  ;;  %v4038_v36 = vor.u32 %v5168_v24, %v4037_v23 }
  0xcb   :  { %541 = vmatmul.f32.vlgmr.msrb.gmra.mxu2 %v483_v10  ;;  %v484_v8 = vsel %vm480_vm3, %v451_v47, %v479_v7  ;;  %2141 = vmatpush.bf16.msrb.mxu0 %v4122_v49  ;;  %v4794_v6 = vor.u32 %v5357_v0, %v4793_v63  ;;  %v4065_v47 = vld [vmem:[#allocation4 + $0xe0] sm:$0xf]  ;;  %v5175_v7 = vld [vmem:[#allocation4 + $0xf8] sm:$0xf0]  ;;  %v4318_v10 = vor.u32 %v5238_v60, %v4317_v59  ;;  %v4261_v31 = vld [vmem:[#allocation4 + $0x268] sm:$0xf] }
  0xcc   :  { %561 = vmatmul.f32.vlgmr.msrb.gmra.mxu3 %v484_v8  ;;  %2166 = vmatpush.bf16.msrb.mxu2 %v4598_v55  ;;  %v4289_v8 = vld [vmem:[#allocation4 + $0x2a0] sm:$0xf]  ;;  %v5343_v28 = vld [vmem:[#allocation4 + $0x638] sm:$0xf0]  ;;  %v5224_v32 = vld [vmem:[#allocation4 + $0x280] sm:$0xf0] }
  0xcd   :  { %2179 = vmatpush.bf16.msrb.mxu3 %v4822_v56  ;;  %2154 = vmatpush.bf16.msrb.mxu1 %v4346_v54  ;;  %v4737_v27 = vld [vmem:[#allocation4 + $0x620] sm:$0xf]  ;;  %v4485_v35 = vld [vmem:[#allocation4 + $0x428] sm:$0xf]  ;;  %v5280_v38 = vld [vmem:[#allocation4 + $0x440] sm:$0xf0]  ;;  %v4262_v42 = vor.u32 %v5224_v32, %v4261_v31 }
  0xce   :  { %v4738_v34 = vor.u32 %v5343_v28, %v4737_v27  ;;  %v4709_v39 = vld [vmem:[#allocation4 + $0x5e8] sm:$0xf]  ;;  %v5336_v41 = vld [vmem:[#allocation4 + $0x600] sm:$0xf0]  ;;  %v4009_v43 = vld [vmem:[#allocation4 + $0x70] sm:$0xf]  ;;  %v4486_v51 = vor.u32 %v5280_v38, %v4485_v35 }
  0xcf   :  { %2142 = vmatpush.bf16.msrb.mxu0 %v4094_v3  ;;  %v5161_v45 = vld [vmem:[#allocation4 + $0x88] sm:$0xf0]  ;;  %v4710_v52 = vor.u32 %v5336_v41, %v4709_v39  ;;  %v4457_v53 = vld [vmem:[#allocation4 + $0x3f0] sm:$0xf]  ;;  %v5154_v59 = vld [vmem:[#allocation4 + $0x50] sm:$0xf0] }
  0xd0   :  { %2167 = vmatpush.bf16.msrb.mxu2 %v4570_v4  ;;  %v5217_v49 = vld [vmem:[#allocation4 + $0x248] sm:$0xf0]  ;;  %v4010_v54 = vor.u32 %v5161_v45, %v4009_v43  ;;  %v4681_v56 = vld [vmem:[#allocation4 + $0x5b0] sm:$0xf]  ;;  %v4205_v61 = vld [vmem:[#allocation4 + $0x1f8] sm:$0xf] }
  0xd1   :  { %2180 = vmatpush.bf16.msrb.mxu3 %v4794_v6  ;;  %2155 = vmatpush.bf16.msrb.mxu1 %v4318_v10  ;;  %v5273_v55 = vld [vmem:[#allocation4 + $0x408] sm:$0xf0]  ;;  %v5210_v62 = vld [vmem:[#allocation4 + $0x210] sm:$0xf0]  ;;  %v423_v63 = vld [vmem:[%s6876_s6] sm:$0x1] }
  0xd2   :  { %v5329_v57 = vld [vmem:[#allocation4 + $0x5c8] sm:$0xf0]  ;;  %v4429_v4 = vld [vmem:[#allocation4 + $0x3b8] sm:$0xf]  ;;  %v5322_v10 = vld [vmem:[#allocation4 + $0x590] sm:$0xf0] }
  0xd3   :  { %v4682_v3 = vor.u32 %v5329_v57, %v4681_v56  ;;  %v4401_v24 = vld [vmem:[#allocation4 + $0x380] sm:$0xf]  ;;  %v5305_v27 = vld [vmem:[#allocation4 + $0x50c] sm:$0xf]  ;;  %v4599_v31 = vld [vmem:[#allocation4 + $0x524] sm:$0xf0] }
  0xd4   :  { %v5361_v32 = vld [vmem:[#allocation4 + $0x6cc] sm:$0xf]  ;;  %v5186_v38 = vld [vmem:[#allocation4 + $0x154] sm:$0xf]  ;;  %v4123_v39 = vld [vmem:[#allocation4 + $0x16c] sm:$0xf0] }
  0xd5   :  { %v5242_v41 = vld [vmem:[#allocation4 + $0x314] sm:$0xf]  ;;  %v5179_v56 = vld [vmem:[#allocation4 + $0x11c] sm:$0xf]  ;;  %v4095_v57 = vld [vmem:[#allocation4 + $0x134] sm:$0xf0] }
  0xeb   :  { %s5433_s4 = spop %5432 }
  0xec   :  { %v582_v16 = vstv %s5433_s4 }
 0x143   :  { %v502_v9 = vpop.f32.mrf.mxu0 }
 0x144   :  { %v522_v11 = vpop.f32.mrf.mxu1 }
 0x145   :  { %v523_v12 = vadd.f32 %v522_v11, %v502_v9  ;;  %v5231_v9 = vld [vmem:[#allocation4 + $0x2b8] sm:$0xf0]  ;;  %v4541_v11 = vld [vmem:[#allocation4 + $0x498] sm:$0xf] }
 0x146   :  { %v4290_v25 = vor.u32 %v5231_v9, %v4289_v8  ;;  %v4206_v9 = vor.u32 %v5210_v62, %v4205_v61  ;;  %v5291_v61 = vld [vmem:[#allocation4 + $0x49c] sm:$0xf]  ;;  %v4543_v62 = vld [vmem:[#allocation4 + $0x4b4] sm:$0xf0] }
 0x148   :  { %2156 = vmatpush.bf16.msrb.mxu1 %v4290_v25  ;;  %v4625_v25 = vld [vmem:[#allocation4 + $0x540] sm:$0xf] }
 0x14c   :  { %2157 = vmatpush.bf16.msrb.mxu1 %v4262_v42  ;;  %v4347_v42 = vld [vmem:[#allocation4 + $0x32c] sm:$0xf0] }
 0x14e   :  { %v542_v13 = vpop.f32.mrf.mxu2 }
 0x14f   :  { %v543_v14 = vadd.f32 %v542_v13, %v523_v12  ;;  %v562_v15 = vpop.f32.mrf.mxu3  ;;  %v5294_v13 = vld [vmem:[#allocation4 + $0x4b0] sm:$0xf0] }
 0x151   :  { %v563_v17 = vadd.f32 %v562_v15, %v543_v14  ;;  %v4765_v14 = vld [vmem:[#allocation4 + $0x658] sm:$0xf]  ;;  %v5193_v15 = vld [vmem:[#allocation4 + $0x18c] sm:$0xf] }
 0x153   :  { %v6057_v18 = vmul.f32 %v582_v16, %v563_v17  ;;  %v4542_v16 = vor.u32 %v5294_v13, %v4541_v11  ;;  %v5350_v17 = vld [vmem:[#allocation4 + $0x670] sm:$0xf0]  ;;  %v3953_v11 = vld [vmem:[#allocation4] sm:$0xf] }
 0x154   :  { %v4177_v13 = vld [vmem:[#allocation4 + $0x1c0] sm:$0xf] }
 0x155   :  { %v584_v19 = vmul.f32 %v6057_v18, %v6057_v18  ;;  %2168 = vmatpush.bf16.msrb.mxu2 %v4542_v16 }
 0x157   :  { %v586_v20 = vrot.slane %v584_v19, 7 }
 0x159   :  { %v588_v21 = vsub.f32 %v6057_v18, %v586_v20  ;;  %v4066_v20 = vor.u32 %v5175_v7, %v4065_v47  ;;  %v5266_v47 = vld [vmem:[#allocation4 + $0x3d0] sm:$0xf0]  ;;  %v4653_v7 = vld [vmem:[#allocation4 + $0x578] sm:$0xf] }
 0x15a   :  { %v4654_v23 = vor.u32 %v5322_v10, %v4653_v7  ;;  %v4291_v7 = vld [vmem:[#allocation4 + $0x2bc] sm:$0xf0]  ;;  %v4546_v10 = vor.u32 %v5291_v61, %v4543_v62  ;;  %v5319_v61 = vld [vmem:[#allocation4 + $0x57c] sm:$0xf]  ;;  %v4655_v62 = vld [vmem:[#allocation4 + $0x594] sm:$0xf0] }
 0x15b   :  { %v6062_v22 = vadd.f32 1e-05, %v588_v21  ;;  %v4766_v21 = vor.u32 %v5350_v17, %v4765_v14  ;;  %2143 = vmatpush.bf16.msrb.mxu0 %v4066_v20  ;;  %v5203_v14 = vld [vmem:[#allocation4 + $0x1d8] sm:$0xf0]  ;;  %v4151_v17 = vld [vmem:[#allocation4 + $0x1a4] sm:$0xf0] }
 0x15c   :  { %v4375_v20 = vld [vmem:[#allocation4 + $0x364] sm:$0xf0]  ;;  %v4154_v35 = vor.u32 %v5193_v15, %v4151_v17 }
 0x15d   :  { %5444 = vrsqrt.f32 %v6062_v22  ;;  %vm596_vm7 = vweird.f32 %v6062_v22  ;;  %2181 = vmatpush.bf16.msrb.mxu3 %v4766_v21  ;;  %v4430_v21 = vor.u32 %v5266_v47, %v4429_v4  ;;  %v5172_v4 = vld [vmem:[#allocation4 + $0xe4] sm:$0xf]  ;;  %v4039_v17 = vld [vmem:[#allocation4 + $0xc4] sm:$0xf0] }
 0x15e   :  { %v5228_v47 = vld [vmem:[#allocation4 + $0x2a4] sm:$0xf] }
 0x15f   :  { %2144 = vmatpush.bf16.msrb.mxu0 %v4038_v36  ;;  %v4294_v15 = vor.u32 %v5228_v47, %v4291_v7  ;;  %v4627_v47 = vld [vmem:[#allocation4 + $0x55c] sm:$0xf0] }
 0x161   :  { %2182 = vmatpush.bf16.msrb.mxu3 %v4738_v34 }
 0x163   :  { %v6089_v40 = vpop.eup %5444  ;;  %2145 = vmatpush.bf16.msrb.mxu0 %v4010_v54  ;;  %v4126_v54 = vor.u32 %v5186_v38, %v4123_v39  ;;  %v5151_v38 = vld [vmem:[#allocation4 + $0x3c] sm:$0xf]  ;;  %v3983_v39 = vld [vmem:[#allocation4 + $0x54] sm:$0xf0] }
 0x164   :  { %v591_v46 = vmul.f32 %v6089_v40, %v6062_v22  ;;  %vm597_vm6 = vweird.f32 %v6089_v40  ;;  %v4513_v22 = vld [vmem:[#allocation4 + $0x460] sm:$0xf] }
 0x165   :  { %vm6098_vm8 = vmor %vm596_vm7, %vm597_vm6  ;;  %v4514_v33 = vor.u32 %v5287_v26, %v4513_v22  ;;  %2183 = vmatpush.bf16.msrb.mxu3 %v4710_v52  ;;  %v5259_v22 = vld [vmem:[#allocation4 + $0x398] sm:$0xf0]  ;;  %v5354_v52 = vld [vmem:[#allocation4 + $0x694] sm:$0xf] }
 0x166   :  { %v592_v58 = vmul.f32 %v6089_v40, %v591_v46  ;;  %v4233_v46 = vld [vmem:[#allocation4 + $0x230] sm:$0xf]  ;;  %v5315_v26 = vld [vmem:[#allocation4 + $0x558] sm:$0xf0]  ;;  %v4402_v43 = vor.u32 %v5259_v22, %v4401_v24 }
 0x167   :  { %2169 = vmatpush.bf16.msrb.mxu2 %v4514_v33  ;;  %v4234_v37 = vor.u32 %v5217_v49, %v4233_v46  ;;  %v4823_v33 = vld [vmem:[#allocation4 + $0x6e4] sm:$0xf0]  ;;  %v4626_v45 = vor.u32 %v5315_v26, %v4625_v25  ;;  %v4602_v46 = vor.u32 %v5305_v27, %v4599_v31  ;;  %v5158_v25 = vld [vmem:[#allocation4 + $0x74] sm:$0xf]  ;;  %v5277_v31 = vld [vmem:[#allocation4 + $0x42c] sm:$0xf] }
 0x168   :  { %v593_v2 = vmul.f32 0.5, %v592_v58  ;;  %v3981_v58 = vld [vmem:[#allocation4 + $0x38] sm:$0xf]  ;;  %v4826_v49 = vor.u32 %v5361_v32, %v4823_v33  ;;  %v5214_v26 = vld [vmem:[#allocation4 + $0x234] sm:$0xf] }
 0x169   :  { %v3982_v6 = vor.u32 %v5154_v59, %v3981_v58  ;;  %2158 = vmatpush.bf16.msrb.mxu1 %v4234_v37  ;;  %2184 = vmatpush.bf16.msrb.mxu3 %v4682_v3  ;;  %v5235_v37 = vld [vmem:[#allocation4 + $0x2dc] sm:$0xf]  ;;  %v4319_v58 = vld [vmem:[#allocation4 + $0x2f4] sm:$0xf0]  ;;  %v4487_v32 = vld [vmem:[#allocation4 + $0x444] sm:$0xf0] }
 0x16a   :  { %v594_v12 = vsub.f32 1.5, %v593_v2  ;;  %v4458_v2 = vor.u32 %v5273_v55, %v4457_v53  ;;  %v4795_v53 = vld [vmem:[#allocation4 + $0x6ac] sm:$0xf0]  ;;  %v4350_v55 = vor.u32 %v5242_v41, %v4347_v42  ;;  %v4322_v3 = vor.u32 %v5235_v37, %v4319_v58  ;;  %v5333_v33 = vld [vmem:[#allocation4 + $0x5ec] sm:$0xf] }
 0x16b   :  { %2170 = vmatpush.bf16.msrb.mxu2 %v4486_v51  ;;  %2146 = vmatpush.bf16.msrb.mxu0 %v3982_v6  ;;  %v4571_v51 = vld [vmem:[#allocation4 + $0x4ec] sm:$0xf0]  ;;  %v4067_v6 = vld [vmem:[#allocation4 + $0xfc] sm:$0xf0]  ;;  %v5207_v41 = vld [vmem:[#allocation4 + $0x1fc] sm:$0xf]  ;;  %v3986_v42 = vor.u32 %v5151_v38, %v3983_v39 }
 0x16c   :  { %v595_v19 = vmul.f32 %v6089_v40, %v594_v12  ;;  %v5147_v12 = vld [vmem:[#allocation4 + $0x18] sm:$0xf0]  ;;  %v4179_v37 = vld [vmem:[#allocation4 + $0x1dc] sm:$0xf0]  ;;  %v4829_v38 = vld [vmem:[#allocation4 + $0x6d0] sm:$0xf] }
 0x16d   :  { %2159 = vmatpush.bf16.msrb.mxu1 %v4206_v9  ;;  %v3954_v28 = vor.u32 %v5147_v12, %v3953_v11  ;;  %2185 = vmatpush.bf16.msrb.mxu3 %v4654_v23  ;;  %v5284_v9 = vld [vmem:[#allocation4 + $0x464] sm:$0xf]  ;;  %v4515_v11 = vld [vmem:[#allocation4 + $0x47c] sm:$0xf0]  ;;  %v5365_v39 = vld [vmem:[#allocation4 + $0x6e8] sm:$0xf0] }
 0x16e   :  { %v599_v30 = vsel %vm6098_vm8, %v6089_v40, %v595_v19  ;;  %v422_v40 = vld [vmem:[%s6875_s5] sm:$0x1]  ;;  %v5249_v19 = vld [vmem:[#allocation4 + $0x34c] sm:$0xf]  ;;  %v5340_v12 = vld [vmem:[#allocation4 + $0x624] sm:$0xf] }
 0x16f   :  { %601 = vst [vmem:[#allocation1] sm:$0xff] %v599_v30  ;;  %2171 = vmatpush.bf16.msrb.mxu2 %v4458_v2  ;;  %v4178_v30 = vor.u32 %v5203_v14, %v4177_v13  ;;  %v4378_v36 = vor.u32 %v5249_v19, %v4375_v20  ;;  %2147 = vmatpush.bf16.msrb.mxu0 %v3954_v28  ;;  %v4739_v13 = vld [vmem:[#allocation4 + $0x63c] sm:$0xf0]  ;;  %v5221_v19 = vld [vmem:[#allocation4 + $0x26c] sm:$0xf] }
 0x170   :  { %v4098_v2 = vor.u32 %v5179_v56, %v4095_v57  ;;  %v4070_v14 = vor.u32 %v5172_v4, %v4067_v6  ;;  %v4263_v20 = vld [vmem:[#allocation4 + $0x284] sm:$0xf0]  ;;  %v4742_v23 = vor.u32 %v5340_v12, %v4739_v13  ;;  %v4235_v28 = vld [vmem:[#allocation4 + $0x24c] sm:$0xf0]  ;;  %v5200_v56 = vld [vmem:[#allocation4 + $0x1c4] sm:$0xf] }
 0x171   :  { %2160 = vmatpush.bf16.msrb.mxu1 %v4178_v30  ;;  %2186 = vmatpush.bf16.msrb.mxu3 %v4626_v45  ;;  %v4266_v22 = vor.u32 %v5221_v19, %v4263_v20  ;;  %v4238_v30 = vor.u32 %v5214_v26, %v4235_v28  ;;  %v4182_v58 = vor.u32 %v5200_v56, %v4179_v37  ;;  %v5312_v6 = vld [vmem:[#allocation4 + $0x544] sm:$0xf]  ;;  %v4157_v12 = vld [vmem:[#allocation4 + $0x190] sm:$0xf]  ;;  %v5197_v13 = vld [vmem:[#allocation4 + $0x1a8] sm:$0xf0] }
 0x172   :  { %v4630_v7 = vor.u32 %v5312_v6, %v4627_v47  ;;  %v4381_v19 = vld [vmem:[#allocation4 + $0x350] sm:$0xf]  ;;  %v5253_v20 = vld [vmem:[#allocation4 + $0x368] sm:$0xf0]  ;;  %v4353_v26 = vld [vmem:[#allocation4 + $0x318] sm:$0xf] }
 0x173   :  { %2172 = vmatpush.bf16.msrb.mxu2 %v4430_v21  ;;  %v4518_v21 = vor.u32 %v5284_v9, %v4515_v11  ;;  %v5302_v37 = vld [vmem:[#allocation4 + $0x4f0] sm:$0xf0] }
 0x176   :  { %v603_v60 = vld [vmem:[#allocation1 + $0x1] ss:$9 sm:$0xff] }
 0x177   :  { %v605_v0 = vmul.f32 %v603_v60, %v422_v40  ;;  %v5298_v40 = vld [vmem:[#allocation4 + $0x4d4] sm:$0xf]  ;;  %2173 = vmatpush.bf16.msrb.mxu2 %v4402_v43  ;;  %v4798_v60 = vor.u32 %v5354_v52, %v4795_v53  ;;  %v4207_v43 = vld [vmem:[#allocation4 + $0x214] sm:$0xf0]  ;;  %v4683_v52 = vld [vmem:[#allocation4 + $0x5cc] sm:$0xf0] }
 0x178   :  { %v4574_v59 = vor.u32 %v5298_v40, %v4571_v51  ;;  %v4210_v45 = vor.u32 %v5207_v41, %v4207_v43  ;;  %v5326_v40 = vld [vmem:[#allocation4 + $0x5b4] sm:$0xf] }
 0x179   :  { %v606_v8 = vmul.f32 %v605_v0, %v6057_v18  ;;  %v4686_v53 = vor.u32 %v5326_v40, %v4683_v52  ;;  %v4325_v40 = vld [vmem:[#allocation4 + $0x2e0] sm:$0xf] }
 0x17b   :  { %v607_v16 = vsub.f32 %v423_v63, %v606_v8  ;;  %v5347_v63 = vld [vmem:[#allocation4 + $0x65c] sm:$0xf] }
 0x17d   :  { %v609_v18 = vperm.slane %v607_v16, 0  ;;  %v5165_v16 = vld [vmem:[#allocation4 + $0xac] sm:$0xf] }
 0x17e   :  { %v4042_v24 = vor.u32 %v5165_v16, %v4039_v17 }
 0x17f   :  { %v611_v34 = vsel %vm480_vm3, %v605_v0, %v609_v18  ;;  %v4767_v0 = vld [vmem:[#allocation4 + $0x674] sm:$0xf0]  ;;  %v4011_v18 = vld [vmem:[#allocation4 + $0x8c] sm:$0xf0] }
 0x180   :  { %3947 = vmatmul.msk.f32.vlgmr.msra.gmra.mxu0 %vm612_vm9, %v611_v34  ;;  %3948 = vmatmul.msk.f32.vlgmr.msra.gmra.mxu1 %vm612_vm9, %v611_v34  ;;  %v4770_v8 = vor.u32 %v5347_v63, %v4767_v0  ;;  %v4014_v27 = vor.u32 %v5158_v25, %v4011_v18  ;;  %v4658_v0 = vor.u32 %v5319_v61, %v4655_v62  ;;  %v5190_v18 = vld [vmem:[#allocation4 + $0x170] sm:$0xf0]  ;;  %v4073_v61 = vld [vmem:[#allocation4 + $0xe8] sm:$0xf]  ;;  %v5176_v62 = vld [vmem:[#allocation4 + $0x100] sm:$0xf0] }
 0x181   :  { %3949 = vmatmul.msk.f32.vlgmr.msra.gmra.mxu2 %vm612_vm9, %v611_v34  ;;  %3950 = vmatmul.msk.f32.vlgmr.msra.gmra.mxu3 %vm612_vm9, %v611_v34  ;;  %v4490_v34 = vor.u32 %v5277_v31, %v4487_v32  ;;  %v4382_v25 = vor.u32 %v5253_v20, %v4381_v19  ;;  %v4074_v6 = vor.u32 %v5176_v62, %v4073_v61  ;;  %v4745_v19 = vld [vmem:[#allocation4 + $0x628] sm:$0xf]  ;;  %v5344_v20 = vld [vmem:[#allocation4 + $0x640] sm:$0xf0]  ;;  %v4437_v61 = vld [vmem:[#allocation4 + $0x3c0] sm:$0xf] }
 0x182   :  { %2192 = vmatpush.bf16.msra.mxu0 %v4154_v35  ;;  %2205 = vmatpush.bf16.msra.mxu1 %v4378_v36  ;;  %v4711_v35 = vld [vmem:[#allocation4 + $0x604] sm:$0xf0]  ;;  %v5267_v62 = vld [vmem:[#allocation4 + $0x3d8] sm:$0xf0] }
 0x183   :  { %2218 = vmatpush.bf16.msra.mxu2 %v4602_v46  ;;  %2231 = vmatpush.bf16.msra.mxu3 %v4826_v49  ;;  %v4714_v36 = vor.u32 %v5333_v33, %v4711_v35  ;;  %v5270_v46 = vld [vmem:[#allocation4 + $0x3f4] sm:$0xf]  ;;  %v4459_v49 = vld [vmem:[#allocation4 + $0x40c] sm:$0xf0] }
 0x184   :  { %v4462_v51 = vor.u32 %v5270_v46, %v4459_v49  ;;  %v4101_v46 = vld [vmem:[#allocation4 + $0x120] sm:$0xf]  ;;  %v5183_v49 = vld [vmem:[#allocation4 + $0x138] sm:$0xf0] }
 0x185   :  { %v4102_v56 = vor.u32 %v5183_v49, %v4101_v46  ;;  %v4689_v46 = vld [vmem:[#allocation4 + $0x5b8] sm:$0xf]  ;;  %v5330_v49 = vld [vmem:[#allocation4 + $0x5d0] sm:$0xf0] }
 0x186   :  { %2193 = vmatpush.bf16.msra.mxu0 %v4126_v54  ;;  %2206 = vmatpush.bf16.msra.mxu1 %v4350_v55  ;;  %v5144_v54 = vld [vmem:[#allocation4 + $0x4] sm:$0xf]  ;;  %v3955_v55 = vld [vmem:[#allocation4 + $0x1c] sm:$0xf0] }
 0x187   :  { %2219 = vmatpush.bf16.msra.mxu2 %v4574_v59  ;;  %2232 = vmatpush.bf16.msra.mxu3 %v4798_v60  ;;  %v3958_v57 = vor.u32 %v5144_v54, %v3955_v55  ;;  %v5263_v59 = vld [vmem:[#allocation4 + $0x3bc] sm:$0xf]  ;;  %v4431_v60 = vld [vmem:[#allocation4 + $0x3d4] sm:$0xf0]  ;;  %v4830_v55 = vor.u32 %v5365_v39, %v4829_v38  ;;  %v4213_v38 = vld [vmem:[#allocation4 + $0x200] sm:$0xf] }
 0x188   :  { %v4434_v63 = vor.u32 %v5263_v59, %v4431_v60  ;;  %v4801_v59 = vld [vmem:[#allocation4 + $0x698] sm:$0xf]  ;;  %v5358_v60 = vld [vmem:[#allocation4 + $0x6b0] sm:$0xf0]  ;;  %v5211_v39 = vld [vmem:[#allocation4 + $0x218] sm:$0xf0] }
 0x18a   :  { %2194 = vmatpush.bf16.msra.mxu0 %v4098_v2  ;;  %2207 = vmatpush.bf16.msra.mxu1 %v4322_v3  ;;  %v5256_v2 = vld [vmem:[#allocation4 + $0x384] sm:$0xf]  ;;  %v4403_v3 = vld [vmem:[#allocation4 + $0x39c] sm:$0xf0] }
 0x18b   :  { %2220 = vmatpush.bf16.msra.mxu2 %v4546_v10  ;;  %2233 = vmatpush.bf16.msra.mxu3 %v4770_v8  ;;  %v4406_v4 = vor.u32 %v5256_v2, %v4403_v3  ;;  %v4802_v3 = vor.u32 %v5358_v60, %v4801_v59  ;;  %v5250_v59 = vld [vmem:[#allocation4 + $0x354] sm:$0xf]  ;;  %v4383_v60 = vld [vmem:[#allocation4 + $0x36c] sm:$0xf0] }
 0x18e   :  { %2195 = vmatpush.bf16.msra.mxu0 %v4070_v14  ;;  %2208 = vmatpush.bf16.msra.mxu1 %v4294_v15 }
 0x18f   :  { %2221 = vmatpush.bf16.msra.mxu2 %v4518_v21  ;;  %2234 = vmatpush.bf16.msra.mxu3 %v4742_v23 }
 0x192   :  { %2196 = vmatpush.bf16.msra.mxu0 %v4042_v24  ;;  %2209 = vmatpush.bf16.msra.mxu1 %v4266_v22  ;;  %v4129_v24 = vld [vmem:[#allocation4 + $0x158] sm:$0xf]  ;;  %v4158_v22 = vor.u32 %v5197_v13, %v4157_v12  ;;  %v4269_v12 = vld [vmem:[#allocation4 + $0x270] sm:$0xf]  ;;  %v5225_v13 = vld [vmem:[#allocation4 + $0x288] sm:$0xf0] }
 0x193   :  { %2222 = vmatpush.bf16.msra.mxu2 %v4490_v34  ;;  %2235 = vmatpush.bf16.msra.mxu3 %v4714_v36  ;;  %v4130_v34 = vor.u32 %v5190_v18, %v4129_v24  ;;  %v5309_v36 = vld [vmem:[#allocation4 + $0x528] sm:$0xf0]  ;;  %v4017_v24 = vld [vmem:[#allocation4 + $0x78] sm:$0xf]  ;;  %v5218_v18 = vld [vmem:[#allocation4 + $0x250] sm:$0xf0] }
 0x196   :  { %2197 = vmatpush.bf16.msra.mxu0 %v4014_v27  ;;  %2210 = vmatpush.bf16.msra.mxu1 %v4238_v30  ;;  %v5246_v27 = vld [vmem:[#allocation4 + $0x330] sm:$0xf0] }
 0x197   :  { %2223 = vmatpush.bf16.msra.mxu2 %v4462_v51  ;;  %2236 = vmatpush.bf16.msra.mxu3 %v4686_v53  ;;  %v4354_v35 = vor.u32 %v5246_v27, %v4353_v26  ;;  %v5239_v51 = vld [vmem:[#allocation4 + $0x2f8] sm:$0xf0]  ;;  %v4746_v27 = vor.u32 %v5344_v20, %v4745_v19  ;;  %v5362_v19 = vld [vmem:[#allocation4 + $0x6d4] sm:$0xf]  ;;  %v4831_v20 = vld [vmem:[#allocation4 + $0x6ec] sm:$0xf0] }
 0x19a   :  { %2198 = vmatpush.bf16.msra.mxu0 %v3986_v42  ;;  %2211 = vmatpush.bf16.msra.mxu1 %v4210_v45 }
 0x19b   :  { %2224 = vmatpush.bf16.msra.mxu2 %v4434_v63  ;;  %2237 = vmatpush.bf16.msra.mxu3 %v4658_v0  ;;  %v4297_v63 = vld [vmem:[#allocation4 + $0x2a8] sm:$0xf]  ;;  %v5232_v0 = vld [vmem:[#allocation4 + $0x2c0] sm:$0xf0] }
 0x19c   :  { %v4298_v47 = vor.u32 %v5232_v0, %v4297_v63  ;;  %v4661_v63 = vld [vmem:[#allocation4 + $0x580] sm:$0xf]  ;;  %v5323_v0 = vld [vmem:[#allocation4 + $0x598] sm:$0xf0] }
 0x19e   :  { %2199 = vmatpush.bf16.msra.mxu0 %v3958_v57  ;;  %2212 = vmatpush.bf16.msra.mxu1 %v4182_v58  ;;  %v4577_v57 = vld [vmem:[#allocation4 + $0x4d8] sm:$0xf] }
 0x19f   :  { %2225 = vmatpush.bf16.msra.mxu2 %v4406_v4  ;;  %2238 = vmatpush.bf16.msra.mxu3 %v4630_v7  ;;  %v4578_v2 = vor.u32 %v5302_v37, %v4577_v57  ;;  %v4549_v4 = vld [vmem:[#allocation4 + $0x4a0] sm:$0xf]  ;;  %v5295_v7 = vld [vmem:[#allocation4 + $0x4b8] sm:$0xf0]  ;;  %v4159_v57 = vld [vmem:[#allocation4 + $0x1ac] sm:$0xf0] }
 0x1fd   :  { %v633_v10 = vpop.f32.mrf.mxu0  ;;  %v653_v8 = vpop.f32.mrf.mxu1 }
 0x1fe   :  { %v696_v9 = vperm.slane %v633_v10, 0  ;;  %v697_v11 = vperm.slane %v653_v8, 0  ;;  %v704_v15 = vperm.slane %v633_v10, 1  ;;  %v705_v17 = vperm.slane %v653_v8, 1  ;;  %v4773_v10 = vld [vmem:[#allocation4 + $0x660] sm:$0xf] }
 0x1ff   :  { %v5351_v8 = vld [vmem:[#allocation4 + $0x678] sm:$0xf0] }
 0x200   :  { %v700_v14 = vmul.f32 %v696_v9, %v6008_v48  ;;  %v701_v16 = vmul.f32 %v697_v11, %v6010_v50  ;;  %v4605_v50 = vld [vmem:[#allocation4 + $0x510] sm:$0xf]  ;;  %v5169_v11 = vld [vmem:[#allocation4 + $0xc8] sm:$0xf0] }
 0x201   :  { %v4606_v54 = vor.u32 %v5309_v36, %v4605_v50  ;;  %v4045_v9 = vld [vmem:[#allocation4 + $0xb0] sm:$0xf]  ;;  %v5155_v36 = vld [vmem:[#allocation4 + $0x58] sm:$0xf0] }
 0x202   :  { %v708_v21 = vadd.f32 %v704_v15, %v700_v14  ;;  %v709_v23 = vadd.f32 %v705_v17, %v701_v16  ;;  %v4550_v14 = vor.u32 %v5295_v7, %v4549_v4  ;;  %v4774_v15 = vor.u32 %v5351_v8, %v4773_v10  ;;  %v4521_v16 = vld [vmem:[#allocation4 + $0x468] sm:$0xf]  ;;  %v5288_v17 = vld [vmem:[#allocation4 + $0x480] sm:$0xf0]  ;;  %v4131_v7 = vld [vmem:[#allocation4 + $0x174] sm:$0xf0] }
 0x203   :  { %v4522_v26 = vor.u32 %v5288_v17, %v4521_v16  ;;  %v5243_v10 = vld [vmem:[#allocation4 + $0x31c] sm:$0xf]  ;;  %v4438_v8 = vor.u32 %v5267_v62, %v4437_v61  ;;  %v5306_v16 = vld [vmem:[#allocation4 + $0x514] sm:$0xf]  ;;  %v4607_v17 = vld [vmem:[#allocation4 + $0x52c] sm:$0xf0] }
 0x204   :  { %v6120_v28 = vpack.c.bf16 %v708_v21, %v708_v21  ;;  %v6122_v30 = vpack.c.bf16 %v709_v23, %v709_v23  ;;  %v673_v31 = vpop.f32.mrf.mxu2  ;;  %v693_v48 = vpop.f32.mrf.mxu3  ;;  %v4046_v21 = vor.u32 %v5169_v11, %v4045_v9  ;;  %v4270_v23 = vor.u32 %v5225_v13, %v4269_v12  ;;  %v4355_v11 = vld [vmem:[#allocation4 + $0x334] sm:$0xf0]  ;;  %v4409_v12 = vld [vmem:[#allocation4 + $0x388] sm:$0xf]  ;;  %v5260_v13 = vld [vmem:[#allocation4 + $0x3a0] sm:$0xf0] }
 0x205   :  { %v698_v32 = vperm.slane %v673_v31, 0  ;;  %v699_v33 = vperm.slane %v693_v48, 0  ;;  %v706_v42 = vperm.slane %v673_v31, 1  ;;  %v707_v45 = vperm.slane %v693_v48, 1  ;;  %v4493_v31 = vld [vmem:[#allocation4 + $0x430] sm:$0xf] }
 0x206   :  { %2148 = vmatmul.bf16.vlgmr.msrb.gmra.mxu0 %v6120_v28  ;;  %2161 = vmatmul.bf16.vlgmr.msrb.gmra.mxu1 %v6122_v30  ;;  %v5281_v48 = vld [vmem:[#allocation4 + $0x448] sm:$0xf0]  ;;  %v4662_v9 = vor.u32 %v5323_v0, %v4661_v63  ;;  %v4747_v62 = vld [vmem:[#allocation4 + $0x644] sm:$0xf0] }
 0x207   :  { %v702_v41 = vmul.f32 %v698_v32, %v6023_v1  ;;  %v703_v43 = vmul.f32 %v699_v33, %v6026_v5  ;;  %2244 = vmatpush.bf16.msrb.mxu0 %v4158_v22  ;;  %2257 = vmatpush.bf16.msrb.mxu1 %v4382_v25  ;;  %v4326_v5 = vor.u32 %v5239_v51, %v4325_v40  ;;  %v5162_v22 = vld [vmem:[#allocation4 + $0x90] sm:$0xf0]  ;;  %v4241_v25 = vld [vmem:[#allocation4 + $0x238] sm:$0xf]  ;;  %v4717_v32 = vld [vmem:[#allocation4 + $0x5f0] sm:$0xf] }
 0x208   :  { %v5337_v33 = vld [vmem:[#allocation4 + $0x608] sm:$0xf0]  ;;  %v4018_v50 = vor.u32 %v5162_v22, %v4017_v24  ;;  %v4214_v51 = vor.u32 %v5211_v39, %v4213_v38  ;;  %v5180_v24 = vld [vmem:[#allocation4 + $0x124] sm:$0xf]  ;;  %v4410_v22 = vor.u32 %v5260_v13, %v4409_v12  ;;  %v4075_v39 = vld [vmem:[#allocation4 + $0x104] sm:$0xf0] }
 0x209   :  { %v710_v52 = vadd.f32 %v706_v42, %v702_v41  ;;  %v711_v53 = vadd.f32 %v707_v45, %v703_v43  ;;  %v4494_v41 = vor.u32 %v5281_v48, %v4493_v31  ;;  %v4718_v42 = vor.u32 %v5337_v33, %v4717_v32  ;;  %v4465_v43 = vld [vmem:[#allocation4 + $0x3f8] sm:$0xf]  ;;  %v5274_v45 = vld [vmem:[#allocation4 + $0x410] sm:$0xf0]  ;;  %v5299_v32 = vld [vmem:[#allocation4 + $0x4dc] sm:$0xf] }
 0x20a   :  { %v4466_v37 = vor.u32 %v5274_v45, %v4465_v43  ;;  %v4610_v31 = vor.u32 %v5306_v16, %v4607_v17  ;;  %v4834_v48 = vor.u32 %v5362_v19, %v4831_v20  ;;  %v4579_v33 = vld [vmem:[#allocation4 + $0x4f4] sm:$0xf0]  ;;  %v5173_v38 = vld [vmem:[#allocation4 + $0xec] sm:$0xf]  ;;  %v5208_v16 = vld [vmem:[#allocation4 + $0x204] sm:$0xf] }
 0x20b   :  { %v6128_v58 = vpack.c.bf16 %v710_v52, %v710_v52  ;;  %v6130_v1 = vpack.c.bf16 %v711_v53, %v711_v53  ;;  %2245 = vmatpush.bf16.msrb.mxu0 %v4130_v34  ;;  %2258 = vmatpush.bf16.msrb.mxu1 %v4354_v35  ;;  %v4242_v34 = vor.u32 %v5218_v18, %v4241_v25  ;;  %v3989_v35 = vld [vmem:[#allocation4 + $0x40] sm:$0xf]  ;;  %v3961_v52 = vld [vmem:[#allocation4 + $0x8] sm:$0xf]  ;;  %v5148_v53 = vld [vmem:[#allocation4 + $0x20] sm:$0xf0] }
 0x20c   :  { %v3990_v40 = vor.u32 %v5155_v36, %v3989_v35  ;;  %v4103_v18 = vld [vmem:[#allocation4 + $0x13c] sm:$0xf0]  ;;  %v4582_v43 = vor.u32 %v5299_v32, %v4579_v33  ;;  %v5341_v61 = vld [vmem:[#allocation4 + $0x62c] sm:$0xf]  ;;  %v4165_v32 = vld [vmem:[#allocation4 + $0x198] sm:$0xf] }
 0x20d   :  { %2174 = vmatmul.bf16.vlgmr.msrb.gmra.mxu2 %v6128_v58  ;;  %2187 = vmatmul.bf16.vlgmr.msrb.gmra.mxu3 %v6130_v1  ;;  %v4106_v35 = vor.u32 %v5180_v24, %v4103_v18  ;;  %v4215_v17 = vld [vmem:[#allocation4 + $0x21c] sm:$0xf0]  ;;  %v5327_v24 = vld [vmem:[#allocation4 + $0x5bc] sm:$0xf]  ;;  %v5198_v33 = vld [vmem:[#allocation4 + $0x1b0] sm:$0xf0] }
 0x20e   :  { %2270 = vmatpush.bf16.msrb.mxu2 %v4606_v54  ;;  %2283 = vmatpush.bf16.msrb.mxu3 %v4830_v55  ;;  %v4185_v54 = vld [vmem:[#allocation4 + $0x1c8] sm:$0xf]  ;;  %v5204_v55 = vld [vmem:[#allocation4 + $0x1e0] sm:$0xf0]  ;;  %v4218_v18 = vor.u32 %v5208_v16, %v4215_v17  ;;  %v4081_v16 = vld [vmem:[#allocation4 + $0xf0] sm:$0xf] }
 0x20f   :  { %2246 = vmatpush.bf16.msrb.mxu0 %v4102_v56  ;;  %2259 = vmatpush.bf16.msrb.mxu1 %v4326_v5  ;;  %v5194_v56 = vld [vmem:[#allocation4 + $0x194] sm:$0xf]  ;;  %v4690_v5 = vor.u32 %v5330_v49, %v4689_v46  ;;  %v5292_v46 = vld [vmem:[#allocation4 + $0x4a4] sm:$0xf]  ;;  %v4551_v49 = vld [vmem:[#allocation4 + $0x4bc] sm:$0xf0] }
 0x210   :  { %v4162_v4 = vor.u32 %v5194_v56, %v4159_v57  ;;  %v5222_v56 = vld [vmem:[#allocation4 + $0x274] sm:$0xf]  ;;  %v4271_v57 = vld [vmem:[#allocation4 + $0x28c] sm:$0xf0]  ;;  %v5177_v17 = vld [vmem:[#allocation4 + $0x108] sm:$0xf0] }
 0x211   :  { %v4274_v0 = vor.u32 %v5222_v56, %v4271_v57  ;;  %v5257_v56 = vld [vmem:[#allocation4 + $0x38c] sm:$0xf]  ;;  %v4411_v57 = vld [vmem:[#allocation4 + $0x3a4] sm:$0xf0] }
 0x212   :  { %2271 = vmatpush.bf16.msrb.mxu2 %v4578_v2  ;;  %2284 = vmatpush.bf16.msrb.mxu3 %v4802_v3  ;;  %v3962_v2 = vor.u32 %v5148_v53, %v3961_v52  ;;  %v4186_v3 = vor.u32 %v5204_v55, %v4185_v54  ;;  %v4078_v52 = vor.u32 %v5173_v38, %v4075_v39  ;;  %v5166_v54 = vld [vmem:[#allocation4 + $0xb4] sm:$0xf]  ;;  %v4047_v55 = vld [vmem:[#allocation4 + $0xcc] sm:$0xf0]  ;;  %v5264_v38 = vld [vmem:[#allocation4 + $0x3c4] sm:$0xf] }
 0x213   :  { %2247 = vmatpush.bf16.msrb.mxu0 %v4074_v6  ;;  %2260 = vmatpush.bf16.msrb.mxu1 %v4298_v47  ;;  %v4386_v6 = vor.u32 %v5250_v59, %v4383_v60  ;;  %v5187_v47 = vld [vmem:[#allocation4 + $0x15c] sm:$0xf]  ;;  %v5285_v59 = vld [vmem:[#allocation4 + $0x46c] sm:$0xf]  ;;  %v4523_v60 = vld [vmem:[#allocation4 + $0x484] sm:$0xf0]  ;;  %v4050_v63 = vor.u32 %v5166_v54, %v4047_v55 }
 0x214   :  { %v4439_v39 = vld [vmem:[#allocation4 + $0x3dc] sm:$0xf0]  ;;  %v5247_v55 = vld [vmem:[#allocation4 + $0x338] sm:$0xf0] }
 0x216   :  { %2272 = vmatpush.bf16.msrb.mxu2 %v4550_v14  ;;  %2285 = vmatpush.bf16.msrb.mxu3 %v4774_v15  ;;  %v4633_v14 = vld [vmem:[#allocation4 + $0x548] sm:$0xf]  ;;  %v5316_v15 = vld [vmem:[#allocation4 + $0x560] sm:$0xf0] }
 0x217   :  { %2200 = vmatmul.bf16.vlgmr.msra.gmra.mxu0 %v6120_v28  ;;  %2213 = vmatmul.bf16.vlgmr.msra.gmra.mxu1 %v6122_v30  ;;  %v4634_v25 = vor.u32 %v5316_v15, %v4633_v14  ;;  %v5152_v14 = vld [vmem:[#allocation4 + $0x44] sm:$0xf]  ;;  %v3991_v15 = vld [vmem:[#allocation4 + $0x5c] sm:$0xf0] }
 0x218   :  { %2248 = vmatpush.bf16.msrb.mxu0 %v4046_v21  ;;  %2261 = vmatpush.bf16.msrb.mxu1 %v4270_v23  ;;  %v4134_v21 = vor.u32 %v5187_v47, %v4131_v7  ;;  %v4358_v23 = vor.u32 %v5243_v10, %v4355_v11  ;;  %v4526_v47 = vor.u32 %v5285_v59, %v4523_v60  ;;  %v5278_v10 = vld [vmem:[#allocation4 + $0x434] sm:$0xf]  ;;  %v4719_v11 = vld [vmem:[#allocation4 + $0x60c] sm:$0xf0]  ;;  %v4613_v59 = vld [vmem:[#allocation4 + $0x518] sm:$0xf] }
 0x219   :  { %v4750_v7 = vor.u32 %v5341_v61, %v4747_v62  ;;  %v5310_v60 = vld [vmem:[#allocation4 + $0x530] sm:$0xf0]  ;;  %v4837_v61 = vld [vmem:[#allocation4 + $0x6d8] sm:$0xf] }
 0x21a   :  { %2273 = vmatpush.bf16.msrb.mxu2 %v4522_v26  ;;  %2286 = vmatpush.bf16.msrb.mxu3 %v4746_v27  ;;  %v5236_v26 = vld [vmem:[#allocation4 + $0x2e4] sm:$0xf]  ;;  %v4327_v27 = vld [vmem:[#allocation4 + $0x2fc] sm:$0xf0]  ;;  %v5366_v62 = vld [vmem:[#allocation4 + $0x6f0] sm:$0xf0] }
 0x21b   :  { %v4330_v36 = vor.u32 %v5236_v26, %v4327_v27  ;;  %v5145_v26 = vld [vmem:[#allocation4 + $0xc] sm:$0xf]  ;;  %v3963_v27 = vld [vmem:[#allocation4 + $0x24] sm:$0xf0] }
 0x21c   :  { %2249 = vmatpush.bf16.msrb.mxu0 %v4018_v50  ;;  %2262 = vmatpush.bf16.msrb.mxu1 %v4242_v34  ;;  %v5355_v50 = vld [vmem:[#allocation4 + $0x69c] sm:$0xf]  ;;  %v4803_v34 = vld [vmem:[#allocation4 + $0x6b4] sm:$0xf0] }
 0x21d   :  { %2226 = vmatmul.bf16.vlgmr.msra.gmra.mxu2 %v6128_v58  ;;  %2239 = vmatmul.bf16.vlgmr.msra.gmra.mxu3 %v6130_v1  ;;  %v4806_v45 = vor.u32 %v5355_v50, %v4803_v34 }
 0x21e   :  { %2274 = vmatpush.bf16.msrb.mxu2 %v4494_v41  ;;  %2287 = vmatpush.bf16.msrb.mxu3 %v4718_v42  ;;  %v5229_v41 = vld [vmem:[#allocation4 + $0x2ac] sm:$0xf]  ;;  %v4299_v42 = vld [vmem:[#allocation4 + $0x2c4] sm:$0xf0] }
 0x21f   :  { %v4302_v53 = vor.u32 %v5229_v41, %v4299_v42  ;;  %v5320_v41 = vld [vmem:[#allocation4 + $0x584] sm:$0xf]  ;;  %v4663_v42 = vld [vmem:[#allocation4 + $0x59c] sm:$0xf0] }
 0x220   :  { %2250 = vmatpush.bf16.msrb.mxu0 %v3990_v40  ;;  %2263 = vmatpush.bf16.msrb.mxu1 %v4214_v51  ;;  %v5348_v40 = vld [vmem:[#allocation4 + $0x664] sm:$0xf]  ;;  %v4775_v51 = vld [vmem:[#allocation4 + $0x67c] sm:$0xf0]  ;;  %v4666_v54 = vor.u32 %v5320_v41, %v4663_v42 }
 0x222   :  { %2275 = vmatpush.bf16.msrb.mxu2 %v4466_v37  ;;  %2288 = vmatpush.bf16.msrb.mxu3 %v4690_v5  ;;  %v4554_v37 = vor.u32 %v5292_v46, %v4551_v49  ;;  %v4778_v5 = vor.u32 %v5348_v40, %v4775_v51  ;;  %v4166_v46 = vor.u32 %v5198_v33, %v4165_v32  ;;  %v4137_v40 = vld [vmem:[#allocation4 + $0x160] sm:$0xf]  ;;  %v5191_v51 = vld [vmem:[#allocation4 + $0x178] sm:$0xf0] }
 0x224   :  { %2251 = vmatpush.bf16.msrb.mxu0 %v3962_v2  ;;  %2264 = vmatpush.bf16.msrb.mxu1 %v4186_v3  ;;  %v5159_v2 = vld [vmem:[#allocation4 + $0x7c] sm:$0xf]  ;;  %v4019_v3 = vld [vmem:[#allocation4 + $0x94] sm:$0xf0] }
 0x225   :  { %v4022_v12 = vor.u32 %v5159_v2, %v4019_v3  ;;  %v4414_v2 = vor.u32 %v5257_v56, %v4411_v57 }
 0x226   :  { %2276 = vmatpush.bf16.msrb.mxu2 %v4438_v8  ;;  %2289 = vmatpush.bf16.msrb.mxu3 %v4662_v9  ;;  %v4495_v8 = vld [vmem:[#allocation4 + $0x44c] sm:$0xf0]  ;;  %v5334_v9 = vld [vmem:[#allocation4 + $0x5f4] sm:$0xf] }
 0x227   :  { %2252 = vmatmul.bf16.vlgmr.msrb.gmra.mxu0 %v6120_v28  ;;  %2265 = vmatmul.bf16.vlgmr.msrb.gmra.mxu1 %v6122_v30  ;;  %v4498_v19 = vor.u32 %v5278_v10, %v4495_v8  ;;  %v4722_v20 = vor.u32 %v5334_v9, %v4719_v11  ;;  %v4333_v10 = vld [vmem:[#allocation4 + $0x2e8] sm:$0xf]  ;;  %v5240_v8 = vld [vmem:[#allocation4 + $0x300] sm:$0xf0]  ;;  %v4585_v9 = vld [vmem:[#allocation4 + $0x4e0] sm:$0xf] }
 0x228   :  { %2296 = vmatpush.bf16.msra.mxu0 %v4162_v4  ;;  %2309 = vmatpush.bf16.msra.mxu1 %v4386_v6  ;;  %v5215_v4 = vld [vmem:[#allocation4 + $0x23c] sm:$0xf]  ;;  %v4243_v6 = vld [vmem:[#allocation4 + $0x254] sm:$0xf0] }
 0x229   :  { %v4246_v13 = vor.u32 %v5215_v4, %v4243_v6  ;;  %v4109_v4 = vld [vmem:[#allocation4 + $0x128] sm:$0xf]  ;;  %v5184_v6 = vld [vmem:[#allocation4 + $0x140] sm:$0xf0]  ;;  %v5303_v11 = vld [vmem:[#allocation4 + $0x4f8] sm:$0xf0] }
 0x22a   :  { %2277 = vmatpush.bf16.msrb.mxu2 %v4410_v22  ;;  %2290 = vmatpush.bf16.msrb.mxu3 %v4634_v25  ;;  %v4691_v22 = vld [vmem:[#allocation4 + $0x5d4] sm:$0xf0]  ;;  %v3994_v25 = vor.u32 %v5152_v14, %v3991_v15  ;;  %v4110_v14 = vor.u32 %v5184_v6, %v4109_v4  ;;  %v4334_v15 = vor.u32 %v5240_v8, %v4333_v10  ;;  %v4193_v10 = vld [vmem:[#allocation4 + $0x1d0] sm:$0xf] }
 0x22b   :  { %v4694_v34 = vor.u32 %v5327_v24, %v4691_v22  ;;  %v4557_v24 = vld [vmem:[#allocation4 + $0x4a8] sm:$0xf]  ;;  %v5296_v22 = vld [vmem:[#allocation4 + $0x4c0] sm:$0xf0] }
 0x22c   :  { %2297 = vmatpush.bf16.msra.mxu0 %v4134_v21  ;;  %2310 = vmatpush.bf16.msra.mxu1 %v4358_v23  ;;  %v5271_v21 = vld [vmem:[#allocation4 + $0x3fc] sm:$0xf]  ;;  %v4467_v23 = vld [vmem:[#allocation4 + $0x414] sm:$0xf0]  ;;  %v4558_v32 = vor.u32 %v5296_v22, %v4557_v24 }
 0x22d   :  { %2278 = vmatmul.bf16.vlgmr.msrb.gmra.mxu2 %v6128_v58  ;;  %2291 = vmatmul.bf16.vlgmr.msrb.gmra.mxu3 %v6130_v1  ;;  %v4470_v50 = vor.u32 %v5271_v21, %v4467_v23  ;;  %v4305_v21 = vld [vmem:[#allocation4 + $0x2b0] sm:$0xf]  ;;  %v5233_v23 = vld [vmem:[#allocation4 + $0x2c8] sm:$0xf0] }
 0x22e   :  { %2322 = vmatpush.bf16.msra.mxu2 %v4610_v31  ;;  %2335 = vmatpush.bf16.msra.mxu3 %v4834_v48  ;;  %v5201_v31 = vld [vmem:[#allocation4 + $0x1cc] sm:$0xf]  ;;  %v4187_v48 = vld [vmem:[#allocation4 + $0x1e4] sm:$0xf0] }
 0x230   :  { %2298 = vmatpush.bf16.msra.mxu0 %v4106_v35  ;;  %2311 = vmatpush.bf16.msra.mxu1 %v4330_v36  ;;  %v4389_v35 = vld [vmem:[#allocation4 + $0x358] sm:$0xf]  ;;  %v5254_v36 = vld [vmem:[#allocation4 + $0x370] sm:$0xf0] }
 0x231   :  { %v4390_v49 = vor.u32 %v5254_v36, %v4389_v35  ;;  %v4529_v35 = vld [vmem:[#allocation4 + $0x470] sm:$0xf]  ;;  %v5289_v36 = vld [vmem:[#allocation4 + $0x488] sm:$0xf0] }
 0x232   :  { %2323 = vmatpush.bf16.msra.mxu2 %v4582_v43  ;;  %2336 = vmatpush.bf16.msra.mxu3 %v4806_v45  ;;  %v3966_v43 = vor.u32 %v5145_v26, %v3963_v27  ;;  %v4190_v45 = vor.u32 %v5201_v31, %v4187_v48  ;;  %v4082_v26 = vor.u32 %v5177_v17, %v4081_v16  ;;  %v4053_v31 = vld [vmem:[#allocation4 + $0xb8] sm:$0xf]  ;;  %v5170_v48 = vld [vmem:[#allocation4 + $0xd0] sm:$0xf0]  ;;  %v4445_v16 = vld [vmem:[#allocation4 + $0x3c8] sm:$0xf] }
 0x233   :  { %v4306_v27 = vor.u32 %v5233_v23, %v4305_v21  ;;  %v4054_v41 = vor.u32 %v5170_v48, %v4053_v31  ;;  %v5268_v17 = vld [vmem:[#allocation4 + $0x3e0] sm:$0xf0]  ;;  %v4363_v48 = vld [vmem:[#allocation4 + $0x33c] sm:$0xf0] }
 0x234   :  { %2299 = vmatpush.bf16.msra.mxu0 %v4078_v52  ;;  %2312 = vmatpush.bf16.msra.mxu1 %v4302_v53  ;;  %v4361_v52 = vld [vmem:[#allocation4 + $0x320] sm:$0xf]  ;;  %v4442_v53 = vor.u32 %v5264_v38, %v4439_v39  ;;  %v4753_v38 = vld [vmem:[#allocation4 + $0x630] sm:$0xf]  ;;  %v5345_v39 = vld [vmem:[#allocation4 + $0x648] sm:$0xf0] }
 0x236   :  { %2324 = vmatpush.bf16.msra.mxu2 %v4554_v37  ;;  %2337 = vmatpush.bf16.msra.mxu3 %v4778_v5  ;;  %v5313_v37 = vld [vmem:[#allocation4 + $0x54c] sm:$0xf]  ;;  %v4635_v5 = vld [vmem:[#allocation4 + $0x564] sm:$0xf0] }
 0x237   :  { %v4638_v3 = vor.u32 %v5313_v37, %v4635_v5  ;;  %v3997_v37 = vld [vmem:[#allocation4 + $0x48] sm:$0xf]  ;;  %v5156_v5 = vld [vmem:[#allocation4 + $0x60] sm:$0xf0] }
 0x238   :  { %2300 = vmatpush.bf16.msra.mxu0 %v4050_v63  ;;  %2313 = vmatpush.bf16.msra.mxu1 %v4274_v0  ;;  %v4138_v63 = vor.u32 %v5191_v51, %v4137_v40  ;;  %v4362_v0 = vor.u32 %v5247_v55, %v4361_v52  ;;  %v4249_v40 = vld [vmem:[#allocation4 + $0x240] sm:$0xf]  ;;  %v5219_v51 = vld [vmem:[#allocation4 + $0x258] sm:$0xf0]  ;;  %v4501_v52 = vld [vmem:[#allocation4 + $0x438] sm:$0xf]  ;;  %v3998_v4 = vor.u32 %v5156_v5, %v3997_v37 }
 0x239   :  { %v5338_v55 = vld [vmem:[#allocation4 + $0x610] sm:$0xf0]  ;;  %v4250_v57 = vor.u32 %v5219_v51, %v4249_v40 }
 0x23a   :  { %2325 = vmatpush.bf16.msra.mxu2 %v4526_v47  ;;  %2338 = vmatpush.bf16.msra.mxu3 %v4750_v7  ;;  %v4614_v47 = vor.u32 %v5310_v60, %v4613_v59  ;;  %v4838_v7 = vor.u32 %v5366_v62, %v4837_v61  ;;  %v4221_v61 = vld [vmem:[#allocation4 + $0x208] sm:$0xf]  ;;  %v5212_v62 = vld [vmem:[#allocation4 + $0x220] sm:$0xf0] }
 0x23b   :  { %v4222_v6 = vor.u32 %v5212_v62, %v4221_v61 }
 0x23c   :  { %2301 = vmatpush.bf16.msra.mxu0 %v4022_v12  ;;  %2314 = vmatpush.bf16.msra.mxu1 %v4246_v13  ;;  %v4809_v12 = vld [vmem:[#allocation4 + $0x6a0] sm:$0xf]  ;;  %v5359_v13 = vld [vmem:[#allocation4 + $0x6b8] sm:$0xf0] }
 0x23e   :  { %2326 = vmatpush.bf16.msra.mxu2 %v4498_v19  ;;  %2339 = vmatpush.bf16.msra.mxu3 %v4722_v20  ;;  %v4586_v19 = vor.u32 %v5303_v11, %v4585_v9  ;;  %v4810_v20 = vor.u32 %v5359_v13, %v4809_v12  ;;  %v5205_v11 = vld [vmem:[#allocation4 + $0x1e8] sm:$0xf0]  ;;  %v5195_v12 = vld [vmem:[#allocation4 + $0x19c] sm:$0xf]  ;;  %v4167_v13 = vld [vmem:[#allocation4 + $0x1b4] sm:$0xf0] }
 0x23f   :  { %v4194_v23 = vor.u32 %v5205_v11, %v4193_v10  ;;  %v4170_v24 = vor.u32 %v5195_v12, %v4167_v13  ;;  %v5167_v10 = vld [vmem:[#allocation4 + $0xbc] sm:$0xf]  ;;  %v4279_v13 = vld [vmem:[#allocation4 + $0x294] sm:$0xf0] }
 0x240   :  { %2302 = vmatpush.bf16.msra.mxu0 %v3994_v25  ;;  %2315 = vmatpush.bf16.msra.mxu1 %v4218_v18  ;;  %v4781_v25 = vld [vmem:[#allocation4 + $0x668] sm:$0xf]  ;;  %v5352_v18 = vld [vmem:[#allocation4 + $0x680] sm:$0xf0]  ;;  %v5223_v12 = vld [vmem:[#allocation4 + $0x27c] sm:$0xf] }
 0x241   :  { %v4782_v33 = vor.u32 %v5352_v18, %v4781_v25  ;;  %v5188_v25 = vld [vmem:[#allocation4 + $0x164] sm:$0xf]  ;;  %v4139_v18 = vld [vmem:[#allocation4 + $0x17c] sm:$0xf0] }
 0x242   :  { %2327 = vmatpush.bf16.msra.mxu2 %v4470_v50  ;;  %2340 = vmatpush.bf16.msra.mxu3 %v4694_v34  ;;  %v4277_v50 = vld [vmem:[#allocation4 + $0x278] sm:$0xf]  ;;  %v5226_v34 = vld [vmem:[#allocation4 + $0x290] sm:$0xf0] }
 0x243   :  { %v4278_v42 = vor.u32 %v5226_v34, %v4277_v50  ;;  %v4641_v50 = vld [vmem:[#allocation4 + $0x550] sm:$0xf]  ;;  %v5317_v34 = vld [vmem:[#allocation4 + $0x568] sm:$0xf0] }
 0x244   :  { %2303 = vmatpush.bf16.msra.mxu0 %v3966_v43  ;;  %2316 = vmatpush.bf16.msra.mxu1 %v4190_v45  ;;  %v4025_v43 = vld [vmem:[#allocation4 + $0x80] sm:$0xf]  ;;  %v5163_v45 = vld [vmem:[#allocation4 + $0x98] sm:$0xf0] }
 0x245   :  { %v4026_v56 = vor.u32 %v5163_v45, %v4025_v43  ;;  %v4642_v45 = vor.u32 %v5317_v34, %v4641_v50  ;;  %v5153_v50 = vld [vmem:[#allocation4 + $0x4c] sm:$0xf]  ;;  %v3999_v34 = vld [vmem:[#allocation4 + $0x64] sm:$0xf0] }
 0x246   :  { %2328 = vmatpush.bf16.msra.mxu2 %v4442_v53  ;;  %2341 = vmatpush.bf16.msra.mxu3 %v4666_v54  ;;  %v5282_v53 = vld [vmem:[#allocation4 + $0x450] sm:$0xf0]  ;;  %v4725_v54 = vld [vmem:[#allocation4 + $0x5f8] sm:$0xf] }
 0x247   :  { %2304 = vmatmul.bf16.vlgmr.msra.gmra.mxu0 %v6120_v28  ;;  %2317 = vmatmul.bf16.vlgmr.msra.gmra.mxu1 %v6122_v30  ;;  %v4502_v59 = vor.u32 %v5282_v53, %v4501_v52  ;;  %v4726_v60 = vor.u32 %v5338_v55, %v4725_v54  ;;  %v5237_v52 = vld [vmem:[#allocation4 + $0x2ec] sm:$0xf]  ;;  %v4335_v53 = vld [vmem:[#allocation4 + $0x304] sm:$0xf0]  ;;  %v5300_v54 = vld [vmem:[#allocation4 + $0x4e4] sm:$0xf] }
 0x248   :  { %2348 = vmatpush.bf16.msrb.mxu0 %v4166_v46  ;;  %2361 = vmatpush.bf16.msrb.mxu1 %v4390_v49  ;;  %v4530_v46 = vor.u32 %v5289_v36, %v4529_v35  ;;  %v4754_v49 = vor.u32 %v5345_v39, %v4753_v38  ;;  %v5307_v35 = vld [vmem:[#allocation4 + $0x51c] sm:$0xf]  ;;  %v4615_v36 = vld [vmem:[#allocation4 + $0x534] sm:$0xf0]  ;;  %v4587_v55 = vld [vmem:[#allocation4 + $0x4fc] sm:$0xf0]  ;;  %v4338_v5 = vor.u32 %v5237_v52, %v4335_v53 }
 0x249   :  { %v5363_v38 = vld [vmem:[#allocation4 + $0x6dc] sm:$0xf]  ;;  %v4839_v39 = vld [vmem:[#allocation4 + $0x6f4] sm:$0xf0]  ;;  %v4618_v40 = vor.u32 %v5307_v35, %v4615_v36  ;;  %v4590_v61 = vor.u32 %v5300_v54, %v4587_v55  ;;  %v5202_v52 = vld [vmem:[#allocation4 + $0x1d4] sm:$0xf] }
 0x24a   :  { %2329 = vmatpush.bf16.msra.mxu2 %v4414_v2  ;;  %2342 = vmatpush.bf16.msra.mxu3 %v4638_v3  ;;  %v4697_v2 = vld [vmem:[#allocation4 + $0x5c0] sm:$0xf]  ;;  %v5331_v3 = vld [vmem:[#allocation4 + $0x5d8] sm:$0xf0]  ;;  %v4842_v51 = vor.u32 %v5363_v38, %v4839_v39  ;;  %v5209_v38 = vld [vmem:[#allocation4 + $0x20c] sm:$0xf] }
 0x24b   :  { %v4698_v9 = vor.u32 %v5331_v3, %v4697_v2  ;;  %v5293_v2 = vld [vmem:[#allocation4 + $0x4ac] sm:$0xf]  ;;  %v4559_v3 = vld [vmem:[#allocation4 + $0x4c4] sm:$0xf0]  ;;  %v4195_v55 = vld [vmem:[#allocation4 + $0x1ec] sm:$0xf0] }
 0x24c   :  { %2349 = vmatpush.bf16.msrb.mxu0 %v4138_v63  ;;  %2362 = vmatpush.bf16.msrb.mxu1 %v4362_v0  ;;  %v4473_v63 = vld [vmem:[#allocation4 + $0x400] sm:$0xf]  ;;  %v5275_v0 = vld [vmem:[#allocation4 + $0x418] sm:$0xf0]  ;;  %v4223_v39 = vld [vmem:[#allocation4 + $0x224] sm:$0xf0] }
 0x24d   :  { %2330 = vmatmul.bf16.vlgmr.msra.gmra.mxu2 %v6128_v58  ;;  %2343 = vmatmul.bf16.vlgmr.msra.gmra.mxu3 %v6130_v1  ;;  %v4474_v8 = vor.u32 %v5275_v0, %v4473_v63  ;;  %v5230_v63 = vld [vmem:[#allocation4 + $0x2b4] sm:$0xf]  ;;  %v4307_v0 = vld [vmem:[#allocation4 + $0x2cc] sm:$0xf0] }
 0x24e   :  { %2374 = vmatpush.bf16.msrb.mxu2 %v4614_v47  ;;  %2387 = vmatpush.bf16.msrb.mxu3 %v4838_v7  ;;  %v3969_v47 = vld [vmem:[#allocation4 + $0x10] sm:$0xf]  ;;  %v5149_v7 = vld [vmem:[#allocation4 + $0x28] sm:$0xf0] }
 0x24f   :  { %v3970_v21 = vor.u32 %v5149_v7, %v3969_v47  ;;  %v4310_v7 = vor.u32 %v5230_v63, %v4307_v0  ;;  %v4198_v0 = vor.u32 %v5202_v52, %v4195_v55  ;;  %v5353_v52 = vld [vmem:[#allocation4 + $0x688] sm:$0xf0] }
 0x250   :  { %2350 = vmatpush.bf16.msrb.mxu0 %v4110_v14  ;;  %2363 = vmatpush.bf16.msrb.mxu1 %v4334_v15  ;;  %v5251_v14 = vld [vmem:[#allocation4 + $0x35c] sm:$0xf]  ;;  %v4391_v15 = vld [vmem:[#allocation4 + $0x374] sm:$0xf0] }
 0x251   :  { %v4394_v22 = vor.u32 %v5251_v14, %v4391_v15  ;;  %v5286_v14 = vld [vmem:[#allocation4 + $0x474] sm:$0xf]  ;;  %v4531_v15 = vld [vmem:[#allocation4 + $0x48c] sm:$0xf0] }
 0x252   :  { %2375 = vmatpush.bf16.msrb.mxu2 %v4586_v19  ;;  %2388 = vmatpush.bf16.msrb.mxu3 %v4810_v20  ;;  %v4669_v19 = vld [vmem:[#allocation4 + $0x588] sm:$0xf]  ;;  %v5324_v20 = vld [vmem:[#allocation4 + $0x5a0] sm:$0xf0] }
 0x253   :  { %v4670_v31 = vor.u32 %v5324_v20, %v4669_v19  ;;  %v4282_v20 = vor.u32 %v5223_v12, %v4279_v13  ;;  %v5314_v12 = vld [vmem:[#allocation4 + $0x554] sm:$0xf]  ;;  %v4643_v13 = vld [vmem:[#allocation4 + $0x56c] sm:$0xf0] }
 0x254   :  { %2351 = vmatpush.bf16.msrb.mxu0 %v4082_v26  ;;  %2364 = vmatpush.bf16.msrb.mxu1 %v4306_v27  ;;  %v5244_v26 = vld [vmem:[#allocation4 + $0x324] sm:$0xf]  ;;  %v4446_v27 = vor.u32 %v5268_v17, %v4445_v16  ;;  %v5342_v16 = vld [vmem:[#allocation4 + $0x634] sm:$0xf]  ;;  %v4755_v17 = vld [vmem:[#allocation4 + $0x64c] sm:$0xf0] }
 0x256   :  { %2376 = vmatpush.bf16.msrb.mxu2 %v4558_v32  ;;  %2389 = vmatpush.bf16.msrb.mxu3 %v4782_v33  ;;  %v4417_v32 = vld [vmem:[#allocation4 + $0x390] sm:$0xf]  ;;  %v5261_v33 = vld [vmem:[#allocation4 + $0x3a8] sm:$0xf0] }
 0x257   :  { %v4418_v43 = vor.u32 %v5261_v33, %v4417_v32 }
 0x258   :  { %2352 = vmatpush.bf16.msrb.mxu0 %v4054_v41  ;;  %2365 = vmatpush.bf16.msrb.mxu1 %v4278_v42  ;;  %v4142_v41 = vor.u32 %v5188_v25, %v4139_v18  ;;  %v4366_v42 = vor.u32 %v5244_v26, %v4363_v48  ;;  %v5216_v25 = vld [vmem:[#allocation4 + $0x244] sm:$0xf]  ;;  %v4251_v18 = vld [vmem:[#allocation4 + $0x25c] sm:$0xf0]  ;;  %v5279_v26 = vld [vmem:[#allocation4 + $0x43c] sm:$0xf] }
 0x259   :  { %v4727_v48 = vld [vmem:[#allocation4 + $0x614] sm:$0xf0]  ;;  %v4254_v33 = vor.u32 %v5216_v25, %v4251_v18 }
 0x25a   :  { %2377 = vmatpush.bf16.msrb.mxu2 %v4530_v46  ;;  %2390 = vmatpush.bf16.msrb.mxu3 %v4754_v49  ;;  %v5181_v46 = vld [vmem:[#allocation4 + $0x12c] sm:$0xf]  ;;  %v4111_v49 = vld [vmem:[#allocation4 + $0x144] sm:$0xf0] }
 0x25b   :  { %v4114_v37 = vor.u32 %v5181_v46, %v4111_v49  ;;  %v4002_v46 = vor.u32 %v5153_v50, %v3999_v34  ;;  %v4226_v49 = vor.u32 %v5209_v38, %v4223_v39  ;;  %v4089_v39 = vld [vmem:[#allocation4 + $0xf8] sm:$0xf] }
 0x25c   :  { %2353 = vmatpush.bf16.msrb.mxu0 %v4026_v56  ;;  %2366 = vmatpush.bf16.msrb.mxu1 %v4250_v57  ;;  %v5356_v56 = vld [vmem:[#allocation4 + $0x6a4] sm:$0xf]  ;;  %v4811_v57 = vld [vmem:[#allocation4 + $0x6bc] sm:$0xf0] }
 0x25d   :  { %v4814_v62 = vor.u32 %v5356_v56, %v4811_v57  ;;  %v4173_v56 = vld [vmem:[#allocation4 + $0x1a0] sm:$0xf]  ;;  %v5199_v57 = vld [vmem:[#allocation4 + $0x1b8] sm:$0xf0] }
 0x25e   :  { %2378 = vmatpush.bf16.msrb.mxu2 %v4502_v59  ;;  %2391 = vmatpush.bf16.msrb.mxu3 %v4726_v60  ;;  %v5174_v59 = vld [vmem:[#allocation4 + $0xf4] sm:$0xf]  ;;  %v4083_v60 = vld [vmem:[#allocation4 + $0x10c] sm:$0xf0] }
 0x25f   :  { %v4086_v47 = vor.u32 %v5174_v59, %v4083_v60  ;;  %v5265_v59 = vld [vmem:[#allocation4 + $0x3cc] sm:$0xf]  ;;  %v4447_v60 = vld [vmem:[#allocation4 + $0x3e4] sm:$0xf0] }
 0x260   :  { %2354 = vmatpush.bf16.msrb.mxu0 %v3998_v4  ;;  %2367 = vmatpush.bf16.msrb.mxu1 %v4222_v6  ;;  %v5349_v4 = vld [vmem:[#allocation4 + $0x66c] sm:$0xf]  ;;  %v4783_v6 = vld [vmem:[#allocation4 + $0x684] sm:$0xf0] }
 0x261   :  { %v4786_v11 = vor.u32 %v5349_v4, %v4783_v6  ;;  %v4145_v4 = vld [vmem:[#allocation4 + $0x168] sm:$0xf]  ;;  %v5192_v6 = vld [vmem:[#allocation4 + $0x180] sm:$0xf0] }
 0x262   :  { %2379 = vmatpush.bf16.msrb.mxu2 %v4474_v8  ;;  %2392 = vmatpush.bf16.msrb.mxu3 %v4698_v9  ;;  %v4055_v8 = vld [vmem:[#allocation4 + $0xd4] sm:$0xf0]  ;;  %v4562_v9 = vor.u32 %v5293_v2, %v4559_v3  ;;  %v4174_v2 = vor.u32 %v5199_v57, %v4173_v56  ;;  %v4061_v56 = vld [vmem:[#allocation4 + $0xc0] sm:$0xf]  ;;  %v5171_v57 = vld [vmem:[#allocation4 + $0xd8] sm:$0xf0] }
 0x263   :  { %v4058_v19 = vor.u32 %v5167_v10, %v4055_v8  ;;  %v5248_v8 = vld [vmem:[#allocation4 + $0x340] sm:$0xf0] }
 0x264   :  { %2355 = vmatpush.bf16.msrb.mxu0 %v3970_v21  ;;  %2368 = vmatpush.bf16.msrb.mxu1 %v4194_v23  ;;  %v5160_v21 = vld [vmem:[#allocation4 + $0x84] sm:$0xf]  ;;  %v4027_v23 = vld [vmem:[#allocation4 + $0x9c] sm:$0xf0] }
 0x265   :  { %v4030_v32 = vor.u32 %v5160_v21, %v4027_v23  ;;  %v4646_v23 = vor.u32 %v5314_v12, %v4643_v13  ;;  %v5220_v12 = vld [vmem:[#allocation4 + $0x260] sm:$0xf0]  ;;  %v4509_v13 = vld [vmem:[#allocation4 + $0x440] sm:$0xf] }
 0x266   :  { %2380 = vmatpush.bf16.msrb.mxu2 %v4446_v27  ;;  %2393 = vmatpush.bf16.msrb.mxu3 %v4670_v31  ;;  %v4503_v27 = vld [vmem:[#allocation4 + $0x454] sm:$0xf0]  ;;  %v5335_v31 = vld [vmem:[#allocation4 + $0x5fc] sm:$0xf] }
 0x267   :  { %2356 = vmatmul.bf16.vlgmr.msrb.gmra.mxu0 %v6120_v28  ;;  %2369 = vmatmul.bf16.vlgmr.msrb.gmra.mxu1 %v6122_v30  ;;  %v4506_v35 = vor.u32 %v5279_v26, %v4503_v27  ;;  %v4730_v36 = vor.u32 %v5335_v31, %v4727_v48  ;;  %v4341_v26 = vld [vmem:[#allocation4 + $0x2f0] sm:$0xf]  ;;  %v5241_v27 = vld [vmem:[#allocation4 + $0x308] sm:$0xf0]  ;;  %v4593_v31 = vld [vmem:[#allocation4 + $0x4e8] sm:$0xf] }
 0x268   :  { %2400 = vmatpush.bf16.msra.mxu0 %v4170_v24  ;;  %2413 = vmatpush.bf16.msra.mxu1 %v4394_v22  ;;  %v4534_v24 = vor.u32 %v5286_v14, %v4531_v15  ;;  %v4758_v22 = vor.u32 %v5342_v16, %v4755_v17  ;;  %v4621_v14 = vld [vmem:[#allocation4 + $0x520] sm:$0xf]  ;;  %v5311_v15 = vld [vmem:[#allocation4 + $0x538] sm:$0xf0]  ;;  %v5304_v48 = vld [vmem:[#allocation4 + $0x500] sm:$0xf0]  ;;  %v4342_v34 = vor.u32 %v5241_v27, %v4341_v26 }
 0x269   :  { %v4845_v16 = vld [vmem:[#allocation4 + $0x6e0] sm:$0xf]  ;;  %v5367_v17 = vld [vmem:[#allocation4 + $0x6f8] sm:$0xf0]  ;;  %v4622_v25 = vor.u32 %v5311_v15, %v4621_v14  ;;  %v4229_v26 = vld [vmem:[#allocation4 + $0x210] sm:$0xf] }
 0x26a   :  { %2381 = vmatpush.bf16.msrb.mxu2 %v4418_v43  ;;  %2394 = vmatpush.bf16.msrb.mxu3 %v4642_v45  ;;  %v5328_v43 = vld [vmem:[#allocation4 + $0x5c4] sm:$0xf]  ;;  %v4699_v45 = vld [vmem:[#allocation4 + $0x5dc] sm:$0xf0]  ;;  %v4846_v18 = vor.u32 %v5367_v17, %v4845_v16  ;;  %v5283_v14 = vld [vmem:[#allocation4 + $0x458] sm:$0xf0] }
 0x26b   :  { %v4702_v54 = vor.u32 %v5328_v43, %v4699_v45  ;;  %v4313_v45 = vld [vmem:[#allocation4 + $0x2b8] sm:$0xf]  ;;  %v4733_v15 = vld [vmem:[#allocation4 + $0x600] sm:$0xf]  ;;  %v5339_v16 = vld [vmem:[#allocation4 + $0x618] sm:$0xf0] }
 0x26c   :  { %2401 = vmatpush.bf16.msra.mxu0 %v4142_v41  ;;  %2414 = vmatpush.bf16.msra.mxu1 %v4366_v42  ;;  %v5272_v41 = vld [vmem:[#allocation4 + $0x404] sm:$0xf]  ;;  %v4475_v42 = vld [vmem:[#allocation4 + $0x41c] sm:$0xf0]  ;;  %v5213_v27 = vld [vmem:[#allocation4 + $0x228] sm:$0xf0] }
 0x26d   :  { %2382 = vmatmul.bf16.vlgmr.msrb.gmra.mxu2 %v6128_v58  ;;  %2395 = vmatmul.bf16.vlgmr.msrb.gmra.mxu3 %v6130_v1  ;;  %v4478_v53 = vor.u32 %v5272_v41, %v4475_v42  ;;  %v5178_v41 = vld [vmem:[#allocation4 + $0x110] sm:$0xf0]  ;;  %v4594_v42 = vor.u32 %v5304_v48, %v4593_v31  ;;  %v4481_v31 = vld [vmem:[#allocation4 + $0x408] sm:$0xf] }
 0x26e   :  { %2426 = vmatpush.bf16.msra.mxu2 %v4618_v40  ;;  %2439 = vmatpush.bf16.msra.mxu3 %v4842_v51  ;;  %v5146_v40 = vld [vmem:[#allocation4 + $0x14] sm:$0xf]  ;;  %v3971_v51 = vld [vmem:[#allocation4 + $0x2c] sm:$0xf0] }
 0x26f   :  { %v3974_v63 = vor.u32 %v5146_v40, %v3971_v51  ;;  %v5297_v40 = vld [vmem:[#allocation4 + $0x4c8] sm:$0xf0]  ;;  %v4789_v51 = vld [vmem:[#allocation4 + $0x670] sm:$0xf] }
 0x270   :  { %2402 = vmatpush.bf16.msra.mxu0 %v4114_v37  ;;  %2415 = vmatpush.bf16.msra.mxu1 %v4338_v5  ;;  %v4397_v37 = vld [vmem:[#allocation4 + $0x360] sm:$0xf]  ;;  %v5255_v5 = vld [vmem:[#allocation4 + $0x378] sm:$0xf0] }
 0x271   :  { %v4398_v3 = vor.u32 %v5255_v5, %v4397_v37  ;;  %v4790_v5 = vor.u32 %v5353_v52, %v4789_v51  ;;  %v4453_v51 = vld [vmem:[#allocation4 + $0x3d0] sm:$0xf]  ;;  %v5269_v52 = vld [vmem:[#allocation4 + $0x3e8] sm:$0xf0] }
 0x272   :  { %2427 = vmatpush.bf16.msra.mxu2 %v4590_v61  ;;  %2440 = vmatpush.bf16.msra.mxu3 %v4814_v62  ;;  %v5321_v61 = vld [vmem:[#allocation4 + $0x58c] sm:$0xf]  ;;  %v4671_v62 = vld [vmem:[#allocation4 + $0x5a4] sm:$0xf0] }
 0x273   :  { %v4674_v10 = vor.u32 %v5321_v61, %v4671_v62  ;;  %v4537_v61 = vld [vmem:[#allocation4 + $0x478] sm:$0xf]  ;;  %v5290_v62 = vld [vmem:[#allocation4 + $0x490] sm:$0xf0] }
 0x274   :  { %2403 = vmatpush.bf16.msra.mxu0 %v4086_v47  ;;  %2416 = vmatpush.bf16.msra.mxu1 %v4310_v7  ;;  %v4369_v47 = vld [vmem:[#allocation4 + $0x328] sm:$0xf]  ;;  %v4450_v7 = vor.u32 %v5265_v59, %v4447_v60  ;;  %v4285_v59 = vld [vmem:[#allocation4 + $0x280] sm:$0xf]  ;;  %v5227_v60 = vld [vmem:[#allocation4 + $0x298] sm:$0xf0] }
 0x276   :  { %2428 = vmatpush.bf16.msra.mxu2 %v4562_v9  ;;  %2441 = vmatpush.bf16.msra.mxu3 %v4786_v11  ;;  %v5258_v9 = vld [vmem:[#allocation4 + $0x394] sm:$0xf]  ;;  %v4419_v11 = vld [vmem:[#allocation4 + $0x3ac] sm:$0xf0] }
 0x277   :  { %v4422_v21 = vor.u32 %v5258_v9, %v4419_v11  ;;  %v4257_v11 = vld [vmem:[#allocation4 + $0x248] sm:$0xf] }
 0x278   :  { %2404 = vmatpush.bf16.msra.mxu0 %v4058_v19  ;;  %2417 = vmatpush.bf16.msra.mxu1 %v4282_v20  ;;  %v4146_v19 = vor.u32 %v5192_v6, %v4145_v4  ;;  %v4370_v20 = vor.u32 %v5248_v8, %v4369_v47  ;;  %v4286_v4 = vor.u32 %v5227_v60, %v4285_v59 }
 0x279   :  { %v4538_v8 = vor.u32 %v5290_v62, %v4537_v61  ;;  %v4454_v60 = vor.u32 %v5269_v52, %v4453_v51  ;;  %v2526_v61 = vld [vmem:[%s6883_s13 + $0x78] sm:$0xff] }
 0x27a   :  { %2429 = vmatpush.bf16.msra.mxu2 %v4534_v24  ;;  %2442 = vmatpush.bf16.msra.mxu3 %v4758_v22  ;;  %v4117_v24 = vld [vmem:[#allocation4 + $0x130] sm:$0xf]  ;;  %v5185_v22 = vld [vmem:[#allocation4 + $0x148] sm:$0xf0] }
 0x27b   :  { %v4118_v50 = vor.u32 %v5185_v22, %v4117_v24 }
 0x27c   :  { %2405 = vmatpush.bf16.msra.mxu0 %v4030_v32  ;;  %2418 = vmatpush.bf16.msra.mxu1 %v4254_v33  ;;  %v4817_v32 = vld [vmem:[#allocation4 + $0x6a8] sm:$0xf]  ;;  %v5360_v33 = vld [vmem:[#allocation4 + $0x6c0] sm:$0xf0] }
 0x27d   :  { %v4818_v43 = vor.u32 %v5360_v33, %v4817_v32  ;;  %v5276_v32 = vld [vmem:[#allocation4 + $0x420] sm:$0xf0]  ;;  %v4705_v33 = vld [vmem:[#allocation4 + $0x5c8] sm:$0xf] }
 0x27e   :  { %2430 = vmatpush.bf16.msra.mxu2 %v4506_v35  ;;  %2443 = vmatpush.bf16.msra.mxu3 %v4730_v36  ;;  %v6155_v35 = vld [vmem:[%s6880_s10] sm:$0xff] }
 0x280   :  { %2406 = vmatpush.bf16.msra.mxu0 %v4002_v46  ;;  %2419 = vmatpush.bf16.msra.mxu1 %v4226_v49  ;;  %v5234_v46 = vld [vmem:[#allocation4 + $0x2d0] sm:$0xf0]  ;;  %v4565_v49 = vld [vmem:[#allocation4 + $0x4b0] sm:$0xf] }
 0x281   :  { %v4314_v55 = vor.u32 %v5234_v46, %v4313_v45  ;;  %v4566_v37 = vor.u32 %v5297_v40, %v4565_v49  ;;  %v5150_v46 = vld [vmem:[#allocation4 + $0x30] sm:$0xf0]  ;;  %v4201_v49 = vld [vmem:[#allocation4 + $0x1d8] sm:$0xf] }
 0x282   :  { %2431 = vmatpush.bf16.msra.mxu2 %v4478_v53  ;;  %2444 = vmatpush.bf16.msra.mxu3 %v4702_v54  ;;  %v974_v53 = vperm.slane %v6155_v35, 0  ;;  %v4090_v54 = vor.u32 %v5178_v41, %v4089_v39  ;;  %v3977_v39 = vld [vmem:[#allocation4 + $0x18] sm:$0xf]  ;;  %v5206_v40 = vld [vmem:[#allocation4 + $0x1f0] sm:$0xf0] }
 0x283   :  { %v2149_v36 = vpop.f32.mrf.mxu0  ;;  %v2162_v38 = vpop.f32.mrf.mxu1 }
 0x284   :  { %2407 = vmatpush.bf16.msra.mxu0 %v3974_v63  ;;  %2420 = vmatpush.bf16.msra.mxu1 %v4198_v0  ;;  %v4761_v63 = vld [vmem:[#allocation4 + $0x638] sm:$0xf]  ;;  %v5346_v0 = vld [vmem:[#allocation4 + $0x650] sm:$0xf0] }
 0x285   :  { %v4762_v9 = vor.u32 %v5346_v0, %v4761_v63  ;;  %v4425_v63 = vld [vmem:[#allocation4 + $0x398] sm:$0xf]  ;;  %v5262_v0 = vld [vmem:[#allocation4 + $0x3b0] sm:$0xf0] }
 0x286   :  { %2432 = vmatpush.bf16.msra.mxu2 %v4450_v7  ;;  %2445 = vmatpush.bf16.msra.mxu3 %v4674_v10  ;;  %v4033_v7 = vld [vmem:[#allocation4 + $0x88] sm:$0xf]  ;;  %v5164_v10 = vld [vmem:[#allocation4 + $0xa0] sm:$0xf0] }
 0x287   :  { %2408 = vmatmul.bf16.vlgmr.msra.gmra.mxu0 %v6120_v28  ;;  %2421 = vmatmul.bf16.vlgmr.msra.gmra.mxu1 %v6122_v30 }
 0x288   :  { %2452 = vmatpush.bf16.msrb.mxu0 %v4174_v2  ;;  %2465 = vmatpush.bf16.msrb.mxu1 %v4398_v3  ;;  %v2150_v2 = vadd.f32 %v2149_v36, %v974_v53  ;;  %v4062_v3 = vor.u32 %v5171_v57, %v4061_v56  ;;  %v4677_v53 = vld [vmem:[#allocation4 + $0x590] sm:$0xf]  ;;  %v975_v56 = vperm.slane %v6155_v35, 1  ;;  %v3978_v57 = vor.u32 %v5150_v46, %v3977_v39 }
 0x28a   :  { %2433 = vmatpush.bf16.msra.mxu2 %v4422_v21  ;;  %2446 = vmatpush.bf16.msra.mxu3 %v4646_v23  ;;  %v2163_v17 = vadd.f32 %v2162_v38, %v2150_v2  ;;  %v4005_v21 = vld [vmem:[#allocation4 + $0x50] sm:$0xf]  ;;  %v5157_v23 = vld [vmem:[#allocation4 + $0x68] sm:$0xf0]  ;;  %v4230_v38 = vor.u32 %v5213_v27, %v4229_v26 }
 0x28b   :  { %v2151_v6 = vpop.f32.mrf.mxu0  ;;  %v2164_v47 = vpop.f32.mrf.mxu1  ;;  %v4006_v36 = vor.u32 %v5157_v23, %v4005_v21  ;;  %v2542_v2 = vld [vmem:[%s6883_s13 + $0xf8] sm:$0xff]  ;;  %v2521_v26 = vld [vmem:[%s6883_s13 + $0x50] sm:$0xff] }
 0x28c   :  { %2453 = vmatpush.bf16.msrb.mxu0 %v4146_v19  ;;  %2466 = vmatpush.bf16.msrb.mxu1 %v4370_v20  ;;  %v4034_v19 = vor.u32 %v5164_v10, %v4033_v7  ;;  %v4258_v20 = vor.u32 %v5220_v12, %v4257_v11  ;;  %v2525_v7 = vld [vmem:[%s6883_s13 + $0x70] sm:$0xff]  ;;  %v4426_v11 = vor.u32 %v5262_v0, %v4425_v63  ;;  %v2522_v23 = vld [vmem:[%s6883_s13 + $0x58] sm:$0xff] }
 0x28d   :  { %2434 = vmatmul.bf16.vlgmr.msra.gmra.mxu2 %v6128_v58  ;;  %2447 = vmatmul.bf16.vlgmr.msra.gmra.mxu3 %v6130_v1  ;;  %v2541_v10 = vld [vmem:[%s6883_s13 + $0xf0] sm:$0xff] }
 0x28e   :  { %2478 = vmatpush.bf16.msrb.mxu2 %v4622_v25  ;;  %2491 = vmatpush.bf16.msrb.mxu3 %v4846_v18  ;;  %v4510_v25 = vor.u32 %v5283_v14, %v4509_v13  ;;  %v4734_v18 = vor.u32 %v5339_v16, %v4733_v15  ;;  %v2524_v13 = vld [vmem:[%s6883_s13 + $0x68] sm:$0xff]  ;;  %v2517_v63 = vld [vmem:[%s6883_s13 + $0x30] sm:$0xff] }
 0x28f   :  { %v2540_v16 = vld [vmem:[%s6883_s13 + $0xe8] sm:$0xff] }
 0x290   :  { %2454 = vmatpush.bf16.msrb.mxu0 %v4118_v50  ;;  %2467 = vmatpush.bf16.msrb.mxu1 %v4342_v34  ;;  %v2175_v24 = vpop.f32.mrf.mxu2  ;;  %v2188_v22 = vpop.f32.mrf.mxu3  ;;  %v5332_v50 = vld [vmem:[#allocation4 + $0x5e0] sm:$0xf0] }
 0x291   :  { %v2176_v48 = vadd.f32 %v2175_v24, %v2163_v17  ;;  %v4706_v45 = vor.u32 %v5332_v50, %v4705_v33  ;;  %v2557_v24 = vld [vmem:[%s6883_s13 + $0x170] sm:$0xff]  ;;  %v2574_v33 = vld [vmem:[%s6883_s13 + $0x1f8] sm:$0xff] }
 0x292   :  { %2479 = vmatpush.bf16.msrb.mxu2 %v4594_v42  ;;  %2492 = vmatpush.bf16.msrb.mxu3 %v4818_v43  ;;  %v4482_v43 = vor.u32 %v5276_v32, %v4481_v31  ;;  %v2573_v50 = vld [vmem:[%s6883_s13 + $0x1f0] sm:$0xff] }
 0x293   :  { %v2189_v34 = vadd.f32 %v2188_v22, %v2176_v48  ;;  %v2556_v48 = vld [vmem:[%s6883_s13 + $0x168] sm:$0xff] }
 0x294   :  { %2455 = vmatpush.bf16.msrb.mxu0 %v4090_v54  ;;  %2468 = vmatpush.bf16.msrb.mxu1 %v4314_v55  ;;  %v2201_v41 = vpop.f32.mrf.mxu0  ;;  %v2214_v42 = vpop.f32.mrf.mxu1  ;;  %v5325_v54 = vld [vmem:[#allocation4 + $0x5a8] sm:$0xf0] }
 0x295   :  { %v6160_v55 = vmax.f32 %v2189_v34, 0.0  ;;  %v4678_v62 = vor.u32 %v5325_v54, %v4677_v53  ;;  %v2202_v47 = vadd.f32 %v2201_v41, %v975_v56  ;;  %v2520_v34 = vld [vmem:[%s6883_s13 + $0x48] sm:$0xff]  ;;  %v2535_v53 = vld [vmem:[%s6883_s13 + $0xc0] sm:$0xff] }
 0x296   :  { %2480 = vmatpush.bf16.msrb.mxu2 %v4566_v37  ;;  %2493 = vmatpush.bf16.msrb.mxu3 %v4790_v5  ;;  %v4202_v37 = vor.u32 %v5206_v40, %v4201_v49  ;;  %v2536_v41 = vld [vmem:[%s6883_s13 + $0xc8] sm:$0xff]  ;;  %v2554_v49 = vld [vmem:[%s6883_s13 + $0x158] sm:$0xff]  ;;  %v2571_v56 = vld [vmem:[%s6883_s13 + $0x1e0] sm:$0xff] }
 0x297   :  { %v6171_v6 = vmul.f32 %v6004_v44, %v6160_v55  ;;  %v2215_v15 = vadd.f32 %v2214_v42, %v2202_v47  ;;  %v976_v42 = vperm.slane %v6155_v35, 2  ;;  %v2572_v54 = vld [vmem:[%s6883_s13 + $0x1e8] sm:$0xff] }
 0x298   :  { %2456 = vmatpush.bf16.msrb.mxu0 %v4062_v3  ;;  %2469 = vmatpush.bf16.msrb.mxu1 %v4286_v4  ;;  %v2177_v5 = vpop.f32.mrf.mxu2  ;;  %v2190_v59 = vpop.f32.mrf.mxu3  ;;  %v4649_v3 = vld [vmem:[#allocation4 + $0x558] sm:$0xf]  ;;  %v5318_v4 = vld [vmem:[#allocation4 + $0x570] sm:$0xf0] }
 0x299   :  { %v4650_v12 = vor.u32 %v5318_v4, %v4649_v3  ;;  %v2702_v14 = vmul.f32 %v6171_v6, %v6160_v55  ;;  %v2552_v3 = vld [vmem:[%s6883_s13 + $0x148] sm:$0xff] }
 0x29a   :  { %2481 = vmatpush.bf16.msrb.mxu2 %v4538_v8  ;;  %2494 = vmatpush.bf16.msrb.mxu3 %v4762_v9 }
 0x29b   :  { %v2709_v22 = vrot.slane %v2702_v14, 4 }
 0x29c   :  { %2457 = vmatpush.bf16.msrb.mxu0 %v4034_v19  ;;  %2470 = vmatpush.bf16.msrb.mxu1 %v4258_v20  ;;  %v2203_v8 = vpop.f32.mrf.mxu0  ;;  %v2216_v9 = vpop.f32.mrf.mxu1  ;;  %v2539_v20 = vld [vmem:[%s6883_s13 + $0xe0] sm:$0xff] }
 0x29d   :  { %v2551_v8 = vld [vmem:[%s6883_s13 + $0x140] sm:$0xff] }
 0x29e   :  { %2482 = vmatpush.bf16.msrb.mxu2 %v4510_v25  ;;  %2495 = vmatpush.bf16.msrb.mxu3 %v4734_v18  ;;  %v2538_v18 = vld [vmem:[%s6883_s13 + $0xd8] sm:$0xff] }
 0x2a0   :  { %2458 = vmatpush.bf16.msrb.mxu0 %v4006_v36  ;;  %2471 = vmatpush.bf16.msrb.mxu1 %v4230_v38  ;;  %v2227_v17 = vpop.f32.mrf.mxu2  ;;  %v2240_v19 = vpop.f32.mrf.mxu3  ;;  %v2555_v36 = vld [vmem:[%s6883_s13 + $0x160] sm:$0xff]  ;;  %v2710_v38 = vadd.f32 %v2709_v22, %v2702_v14  ;;  %v2549_v22 = vld [vmem:[%s6883_s13 + $0x130] sm:$0xff] }
 0x2a1   :  { %v2228_v21 = vadd.f32 %v2227_v17, %v2215_v15  ;;  %v2515_v14 = vld [vmem:[%s6883_s13 + $0x20] sm:$0xff] }
 0x2a2   :  { %2483 = vmatpush.bf16.msrb.mxu2 %v4482_v43  ;;  %2496 = vmatpush.bf16.msrb.mxu3 %v4706_v45  ;;  %v2519_v43 = vld [vmem:[%s6883_s13 + $0x40] sm:$0xff]  ;;  %v2711_v5 = vrot.slane %v2710_v38, 2 }
 0x2a3   :  { %v2241_v25 = vadd.f32 %v2240_v19, %v2228_v21  ;;  %v2570_v21 = vld [vmem:[%s6883_s13 + $0x1d8] sm:$0xff] }
 0x2a4   :  { %2459 = vmatpush.bf16.msrb.mxu0 %v3978_v57  ;;  %2472 = vmatpush.bf16.msrb.mxu1 %v4202_v37  ;;  %v2253_v27 = vpop.f32.mrf.mxu0  ;;  %v6212_v31 = vpop.f32.mrf.mxu1  ;;  %v2518_v57 = vld [vmem:[%s6883_s13 + $0x38] sm:$0xff]  ;;  %v2553_v37 = vld [vmem:[%s6883_s13 + $0x150] sm:$0xff]  ;;  %v2712_v9 = vadd.f32 %v2711_v5, %v2710_v38  ;;  %v2512_v38 = vld [vmem:[%s6883_s13 + $0x8] sm:$0xff] }
 0x2a5   :  { %v6218_v32 = vmax.f32 %v2241_v25, 0.0  ;;  %v2530_v25 = vld [vmem:[%s6883_s13 + $0x98] sm:$0xff] }
 0x2a6   :  { %2484 = vmatpush.bf16.msrb.mxu2 %v4454_v60  ;;  %2497 = vmatpush.bf16.msrb.mxu3 %v4678_v62  ;;  %v2254_v62 = vadd.f32 %v2253_v27, %v976_v42  ;;  %v2569_v27 = vld [vmem:[%s6883_s13 + $0x1d0] sm:$0xff]  ;;  %v2528_v42 = vld [vmem:[%s6883_s13 + $0x88] sm:$0xff] }
 0x2a7   :  { %2460 = vmatmul.bf16.vlgmr.msrb.gmra.mxu0 %v6120_v28  ;;  %2473 = vmatmul.bf16.vlgmr.msrb.gmra.mxu1 %v6122_v30  ;;  %v2558_v28 = vld [vmem:[%s6883_s13 + $0x178] sm:$0xff]  ;;  %v2523_v30 = vld [vmem:[%s6883_s13 + $0x60] sm:$0xff]  ;;  %v2654_v39 = vmul.f32 %v6004_v44, %v6218_v32 }
 0x2a8   :  { %2758 = vmatpush.msra.mxu0 %v2526_v61  ;;  %2778 = vmatpush.msra.mxu1 %v2542_v2  ;;  %v2229_v45 = vpop.f32.mrf.mxu2  ;;  %v2242_v46 = vpop.f32.mrf.mxu3  ;;  %v2534_v61 = vld [vmem:[%s6883_s13 + $0xb8] sm:$0xff] }
 0x2a9   :  { %v2666_v51 = vrot.slane %v2654_v39, 4  ;;  %v2703_v52 = vmul.f32 %v2654_v39, %v6218_v32  ;;  %v2567_v45 = vld [vmem:[%s6883_s13 + $0x1c0] sm:$0xff] }
 0x2aa   :  { %2759 = vmatpush.msra.mxu0 %v2525_v7  ;;  %2779 = vmatpush.msra.mxu1 %v2541_v10  ;;  %v2516_v10 = vld [vmem:[%s6883_s13 + $0x28] sm:$0xff] }
 0x2ab   :  { %2485 = vmatpush.bf16.msrb.mxu2 %v4426_v11  ;;  %2498 = vmatpush.bf16.msrb.mxu3 %v4650_v12  ;;  %v2667_v59 = vadd.f32 %v2666_v51, %v2654_v39  ;;  %v2715_v60 = vrot.slane %v2703_v52, 4  ;;  %v2532_v12 = vld [vmem:[%s6883_s13 + $0xa8] sm:$0xff]  ;;  %v2546_v51 = vld [vmem:[%s6883_s13 + $0x118] sm:$0xff] }
 0x2ac   :  { %2760 = vmatpush.msra.mxu0 %v2524_v13  ;;  %2780 = vmatpush.msra.mxu1 %v2540_v16  ;;  %v2255_v0 = vpop.f32.mrf.mxu0  ;;  %v2268_v2 = vpop.f32.mrf.mxu1  ;;  %v2267_v13 = vadd.f32 %v6212_v31, %v2254_v62  ;;  %v2550_v16 = vld [vmem:[%s6883_s13 + $0x138] sm:$0xff]  ;;  %v2565_v62 = vld [vmem:[%s6883_s13 + $0x1b0] sm:$0xff] }
 0x2ad   :  { %v2716_v4 = vadd.f32 %v2715_v60, %v2703_v52  ;;  %v2668_v7 = vrot.slane %v2667_v59, 2  ;;  %v2545_v60 = vld [vmem:[%s6883_s13 + $0x110] sm:$0xff]  ;;  %v2544_v2 = vld [vmem:[%s6883_s13 + $0x108] sm:$0xff] }
 0x2ae   :  { %2761 = vmatpush.msra.mxu0 %v2523_v30  ;;  %2486 = vmatmul.bf16.vlgmr.msrb.gmra.mxu2 %v6128_v58  ;;  %v2660_v58 = vrot.slane %v6171_v6, 4  ;;  %v2531_v30 = vld [vmem:[%s6883_s13 + $0xa0] sm:$0xff] }
 0x2af   :  { %2798 = vmatpush.msra.mxu2 %v2558_v28  ;;  %2781 = vmatpush.msra.mxu1 %v2539_v20  ;;  %v2717_v11 = vrot.slane %v2716_v4, 2  ;;  %v2669_v15 = vadd.f32 %v2668_v7, %v2667_v59  ;;  %v2563_v7 = vld [vmem:[%s6883_s13 + $0x1a0] sm:$0xff] }
 0x2b0   :  { %2499 = vmatmul.bf16.vlgmr.msrb.gmra.mxu3 %v6130_v1  ;;  %2762 = vmatpush.msra.mxu0 %v2522_v23  ;;  %v2537_v1 = vld [vmem:[%s6883_s13 + $0xd0] sm:$0xff]  ;;  %v2661_v40 = vadd.f32 %v2660_v58, %v6171_v6  ;;  %v2279_v17 = vpop.f32.mrf.mxu2  ;;  %v2292_v19 = vpop.f32.mrf.mxu3 }
 0x2b1   :  { %2799 = vmatpush.msra.mxu2 %v2557_v24  ;;  %2782 = vmatpush.msra.mxu1 %v2538_v18  ;;  %v2533_v6 = vld [vmem:[%s6883_s13 + $0xb0] sm:$0xff]  ;;  %v2718_v28 = vadd.f32 %v2717_v11, %v2716_v4  ;;  %v2280_v23 = vadd.f32 %v2279_v17, %v2267_v13  ;;  %v2514_v24 = vld [vmem:[%s6883_s13 + $0x18] sm:$0xff]  ;;  %v2713_v18 = vrot.slane %v2712_v9, 1  ;;  %v2670_v58 = vrot.slane %v2669_v15, 1  ;;  %v2560_v17 = vld [vmem:[%s6883_s13 + $0x188] sm:$0xff] }
 0x2b2   :  { %2818 = vmatpush.msra.mxu3 %v2574_v33  ;;  %2763 = vmatpush.msra.mxu0 %v2521_v26  ;;  %v2662_v47 = vrot.slane %v2661_v40, 2  ;;  %v2529_v33 = vld [vmem:[%s6883_s13 + $0x90] sm:$0xff] }
 0x2b3   :  { %2800 = vmatpush.msra.mxu2 %v2556_v48  ;;  %2783 = vmatpush.msra.mxu1 %v2537_v1  ;;  %v2719_v26 = vrot.slane %v2718_v28, 1  ;;  %v2293_v31 = vadd.f32 %v2292_v19, %v2280_v23  ;;  %v2513_v48 = vld [vmem:[%s6883_s13 + $0x10] sm:$0xff]  ;;  %v2548_v1 = vld [vmem:[%s6883_s13 + $0x128] sm:$0xff]  ;;  %v2559_v23 = vld [vmem:[%s6883_s13 + $0x180] sm:$0xff] }
 0x2b4   :  { %2819 = vmatpush.msra.mxu3 %v2573_v50  ;;  %2764 = vmatpush.msra.mxu0 %v2520_v34  ;;  %v2663_v20 = vadd.f32 %v2662_v47, %v2661_v40  ;;  %v2568_v34 = vld [vmem:[%s6883_s13 + $0x1c8] sm:$0xff]  ;;  %v2671_v40 = vadd.f32 %v2670_v58, %v2669_v15  ;;  %v2590_v15 = vld [vmem:[%s6883_s13 + $0x278] sm:$0xff]  ;;  %v2589_v19 = vld [vmem:[%s6883_s13 + $0x270] sm:$0xff] }
 0x2b5   :  { %2801 = vmatpush.msra.mxu2 %v2555_v36  ;;  %2784 = vmatpush.msra.mxu1 %v2536_v41  ;;  %v6322_v36 = vmax.f32 %v2293_v31, 0.0  ;;  %v2720_v39 = vadd.f32 %v2719_v26, %v2718_v28  ;;  %v2547_v41 = vld [vmem:[%s6883_s13 + $0x120] sm:$0xff]  ;;  %v977_v28 = vperm.slane %v6155_v35, 3 }
 0x2b6   :  { %2820 = vmatpush.msra.mxu3 %v2572_v54  ;;  %2765 = vmatpush.msra.mxu0 %v2519_v43  ;;  %v2664_v50 = vrot.slane %v2663_v20, 1  ;;  %v2714_v43 = vadd.f32 %v2713_v18, %v2712_v9 }
 0x2b7   :  { %2802 = vmatpush.msra.mxu2 %v2554_v49  ;;  %2785 = vmatpush.msra.mxu1 %v2535_v53  ;;  %v2655_v46 = vmul.f32 %v6004_v44, %v6322_v36  ;;  %v2511_v49 = vld [vmem:[%s6883_s13] sm:$0xff]  ;;  %v2752_v59 = vsel %vm480_vm3, %v2671_v40, %v2720_v39  ;;  %v2584_v39 = vld [vmem:[%s6883_s13 + $0x248] sm:$0xff]  ;;  %v2582_v40 = vld [vmem:[%s6883_s13 + $0x238] sm:$0xff] }
 0x2b8   :  { %2821 = vmatpush.msra.mxu3 %v2571_v56  ;;  %2766 = vmatpush.msra.mxu0 %v2518_v57  ;;  %v2665_v52 = vadd.f32 %v2664_v50, %v2663_v20  ;;  %v2527_v53 = vld [vmem:[%s6883_s13 + $0x80] sm:$0xff]  ;;  %v2281_v54 = vpop.f32.mrf.mxu2  ;;  %v2294_v56 = vpop.f32.mrf.mxu3  ;;  %v2566_v57 = vld [vmem:[%s6883_s13 + $0x1b8] sm:$0xff] }
 0x2b9   :  { %2803 = vmatpush.msra.mxu2 %v2553_v37  ;;  %2786 = vmatpush.msra.mxu1 %v2534_v61  ;;  %v2672_v37 = vrot.slane %v2655_v46, 4  ;;  %v2704_v5 = vmul.f32 %v2655_v46, %v6322_v36 }
 0x2ba   :  { %2767 = vmatpush.msra.mxu0 %v2517_v63  ;;  %2822 = vmatpush.msra.mxu3 %v2570_v21  ;;  %v2751_v61 = vsel %vm480_vm3, %v2665_v52, %v2714_v43 }
 0x2bb   :  { %2804 = vmatpush.msra.mxu2 %v2552_v3  ;;  %2787 = vmatpush.msra.mxu1 %v2533_v6  ;;  %v2673_v63 = vadd.f32 %v2672_v37, %v2655_v46  ;;  %v2721_v0 = vrot.slane %v2704_v5, 4  ;;  %v2564_v3 = vld [vmem:[%s6883_s13 + $0x1a8] sm:$0xff]  ;;  %v2543_v6 = vld [vmem:[%s6883_s13 + $0x100] sm:$0xff] }
 0x2bc   :  { %2768 = vmatpush.msra.mxu0 %v2516_v10  ;;  %2823 = vmatpush.msra.mxu3 %v2569_v27 }
 0x2bd   :  { %2805 = vmatpush.msra.mxu2 %v2551_v8  ;;  %2788 = vmatpush.msra.mxu1 %v2532_v12  ;;  %v2722_v4 = vadd.f32 %v2721_v0, %v2704_v5  ;;  %v2674_v47 = vrot.slane %v2673_v63, 2  ;;  %v2562_v12 = vld [vmem:[%s6883_s13 + $0x198] sm:$0xff] }
 0x2be   :  { %2769 = vmatpush.msra.mxu0 %v2515_v14  ;;  %2824 = vmatpush.msra.mxu3 %v2568_v34  ;;  %v2585_v34 = vld [vmem:[%s6883_s13 + $0x250] sm:$0xff] }
 0x2bf   :  { %2806 = vmatpush.msra.mxu2 %v2550_v16  ;;  %2789 = vmatpush.msra.mxu1 %v2531_v30  ;;  %v2723_v10 = vrot.slane %v2722_v4, 2  ;;  %v2675_v8 = vadd.f32 %v2674_v47, %v2673_v63  ;;  %v2561_v16 = vld [vmem:[%s6883_s13 + $0x190] sm:$0xff]  ;;  %v978_v47 = vperm.slane %v6155_v35, 4 }
 0x2c0   :  { %2770 = vmatpush.msra.mxu0 %v2514_v24  ;;  %2825 = vmatpush.msra.mxu3 %v2567_v45  ;;  %v2588_v24 = vld [vmem:[%s6883_s13 + $0x268] sm:$0xff] }
 0x2c1   :  { %2807 = vmatpush.msra.mxu2 %v2549_v22  ;;  %2790 = vmatpush.msra.mxu1 %v2530_v25  ;;  %v2724_v13 = vadd.f32 %v2723_v10, %v2722_v4  ;;  %v2676_v14 = vrot.slane %v2675_v8, 1  ;;  %v2587_v22 = vld [vmem:[%s6883_s13 + $0x260] sm:$0xff]  ;;  %v2576_v4 = vld [vmem:[%s6883_s13 + $0x208] sm:$0xff] }
 0x2c2   :  { %2771 = vmatpush.msra.mxu0 %v2513_v48  ;;  %2826 = vmatpush.msra.mxu3 %v2566_v57  ;;  %v2580_v57 = vld [vmem:[%s6883_s13 + $0x228] sm:$0xff] }
 0x2c3   :  { %2808 = vmatpush.msra.mxu2 %v2548_v1  ;;  %2791 = vmatpush.msra.mxu1 %v2529_v33  ;;  %v2725_v30 = vrot.slane %v2724_v13, 1  ;;  %v2677_v20 = vadd.f32 %v2676_v14, %v2675_v8  ;;  %v2586_v33 = vld [vmem:[%s6883_s13 + $0x258] sm:$0xff]  ;;  %v2575_v8 = vld [vmem:[%s6883_s13 + $0x200] sm:$0xff] }
 0x2c4   :  { %2772 = vmatpush.msra.mxu0 %v2512_v38  ;;  %2827 = vmatpush.msra.mxu3 %v2565_v62  ;;  %v2305_v9 = vpop.f32.mrf.mxu0  ;;  %v2318_v11 = vpop.f32.mrf.mxu1  ;;  %v2578_v62 = vld [vmem:[%s6883_s13 + $0x218] sm:$0xff] }
 0x2c5   :  { %2809 = vmatpush.msra.mxu2 %v2547_v41  ;;  %2792 = vmatpush.msra.mxu1 %v2528_v42  ;;  %v2726_v21 = vadd.f32 %v2725_v30, %v2724_v13  ;;  %v2306_v25 = vadd.f32 %v2305_v9, %v977_v28  ;;  %v2583_v42 = vld [vmem:[%s6883_s13 + $0x240] sm:$0xff]  ;;  %v2605_v9 = vld [vmem:[%s6883_s13 + $0x2f0] sm:$0xff] }
 0x2c6   :  { %2773 = vmatpush.msra.mxu0 %v2511_v49  ;;  %2828 = vmatpush.msra.mxu3 %v2564_v3  ;;  %v2577_v3 = vld [vmem:[%s6883_s13 + $0x210] sm:$0xff]  ;;  %v2603_v13 = vld [vmem:[%s6883_s13 + $0x2e0] sm:$0xff] }
 0x2c7   :  { %2810 = vmatpush.msra.mxu2 %v2546_v51  ;;  %2774 = vmatmul.f32.vlgmr.msra.gmra.mxu0 %v2751_v61  ;;  %v2753_v18 = vsel %vm480_vm3, %v2677_v20, %v2726_v21  ;;  %v2319_v31 = vadd.f32 %v2318_v11, %v2306_v25  ;;  %v2601_v21 = vld [vmem:[%s6883_s13 + $0x2d0] sm:$0xff]  ;;  %v2599_v25 = vld [vmem:[%s6883_s13 + $0x2c0] sm:$0xff] }
 0x2c8   :  { %2793 = vmatpush.msra.mxu1 %v2527_v53  ;;  %2829 = vmatpush.msra.mxu3 %v2563_v7  ;;  %v2581_v53 = vld [vmem:[%s6883_s13 + $0x230] sm:$0xff] }
 0x2c9   :  { %2794 = vmatmul.f32.vlgmr.msra.gmra.mxu1 %v2752_v59  ;;  %2811 = vmatpush.msra.mxu2 %v2545_v60  ;;  %v2579_v59 = vld [vmem:[%s6883_s13 + $0x220] sm:$0xff] }
 0x2ca   :  { %2838 = vmatpush.msrb.mxu0 %v2590_v15  ;;  %2830 = vmatpush.msra.mxu3 %v2562_v12  ;;  %v2604_v12 = vld [vmem:[%s6883_s13 + $0x2e8] sm:$0xff] }
 0x2cb   :  { %2812 = vmatpush.msra.mxu2 %v2544_v2 }
 0x2cc   :  { %2831 = vmatpush.msra.mxu3 %v2561_v16  ;;  %2839 = vmatpush.msrb.mxu0 %v2589_v19  ;;  %v2307_v26 = vpop.f32.mrf.mxu0  ;;  %v2320_v27 = vpop.f32.mrf.mxu1  ;;  %v2602_v19 = vld [vmem:[%s6883_s13 + $0x2d8] sm:$0xff] }
 0x2cd   :  { %2813 = vmatpush.msra.mxu2 %v2543_v6  ;;  %v2606_v6 = vld [vmem:[%s6883_s13 + $0x2f8] sm:$0xff] }
 0x2ce   :  { %2832 = vmatpush.msra.mxu3 %v2560_v17  ;;  %2840 = vmatpush.msrb.mxu0 %v2588_v24  ;;  %v2600_v24 = vld [vmem:[%s6883_s13 + $0x2c8] sm:$0xff] }
 0x2cf   :  { %2814 = vmatmul.f32.vlgmr.msra.gmra.mxu2 %v2753_v18  ;;  %2858 = vmatpush.msrb.mxu1 %v2606_v6 }
 0x2d0   :  { %2833 = vmatpush.msra.mxu3 %v2559_v23  ;;  %2841 = vmatpush.msrb.mxu0 %v2587_v22  ;;  %v2331_v48 = vpop.f32.mrf.mxu2  ;;  %v2344_v58 = vpop.f32.mrf.mxu3 }
 0x2d1   :  { %v2332_v1 = vadd.f32 %v2331_v48, %v2319_v31  ;;  %2859 = vmatpush.msrb.mxu1 %v2605_v9  ;;  %v2598_v31 = vld [vmem:[%s6883_s13 + $0x2b8] sm:$0xff]  ;;  %v2617_v9 = vld [vmem:[%s6883_s13 + $0x350] sm:$0xff] }
 0x2d2   :  { %2842 = vmatpush.msrb.mxu0 %v2586_v33 }
 0x2d3   :  { %v2345_v50 = vadd.f32 %v2344_v58, %v2332_v1  ;;  %2860 = vmatpush.msrb.mxu1 %v2604_v12  ;;  %v2597_v1 = vld [vmem:[%s6883_s13 + $0x2b0] sm:$0xff]  ;;  %v2616_v12 = vld [vmem:[%s6883_s13 + $0x348] sm:$0xff] }
 0x2d4   :  { %2843 = vmatpush.msrb.mxu0 %v2585_v34  ;;  %v2596_v34 = vld [vmem:[%s6883_s13 + $0x2a8] sm:$0xff] }
 0x2d5   :  { %v6403_v38 = vmax.f32 %v2345_v50, 0.0  ;;  %2861 = vmatpush.msrb.mxu1 %v2603_v13 }
 0x2d6   :  { %2844 = vmatpush.msrb.mxu0 %v2584_v39 }
 0x2d7   :  { %v2656_v41 = vmul.f32 %v6004_v44, %v6403_v38  ;;  %2862 = vmatpush.msrb.mxu1 %v2602_v19 }
 0x2d8   :  { %v2333_v43 = vpop.f32.mrf.mxu2  ;;  %v2346_v45 = vpop.f32.mrf.mxu3  ;;  %2845 = vmatpush.msrb.mxu0 %v2583_v42  ;;  %v2595_v42 = vld [vmem:[%s6883_s13 + $0x2a0] sm:$0xff] }
 0x2d9   :  { %v2678_v46 = vrot.slane %v2656_v41, 4  ;;  %v2705_v49 = vmul.f32 %v2656_v41, %v6403_v38  ;;  %2863 = vmatpush.msrb.mxu1 %v2601_v21 }
 0x2da   :  { %2846 = vmatpush.msrb.mxu0 %v2582_v40 }
 0x2db   :  { %v2679_v51 = vadd.f32 %v2678_v46, %v2656_v41  ;;  %v2727_v52 = vrot.slane %v2705_v49, 4  ;;  %2864 = vmatpush.msrb.mxu1 %v2600_v24  ;;  %v2594_v46 = vld [vmem:[%s6883_s13 + $0x298] sm:$0xff]  ;;  %v2612_v24 = vld [vmem:[%s6883_s13 + $0x328] sm:$0xff] }
 0x2dc   :  { %2847 = vmatpush.msrb.mxu0 %v2581_v53  ;;  %v2593_v53 = vld [vmem:[%s6883_s13 + $0x290] sm:$0xff] }
 0x2dd   :  { %v2728_v54 = vadd.f32 %v2727_v52, %v2705_v49  ;;  %v2680_v56 = vrot.slane %v2679_v51, 2  ;;  %2865 = vmatpush.msrb.mxu1 %v2599_v25 }
 0x2de   :  { %2848 = vmatpush.msrb.mxu0 %v2580_v57  ;;  %v2622_v57 = vld [vmem:[%s6883_s13 + $0x378] sm:$0xff] }
 0x2df   :  { %v2729_v37 = vrot.slane %v2728_v54, 2  ;;  %v2681_v5 = vadd.f32 %v2680_v56, %v2679_v51  ;;  %2866 = vmatpush.msrb.mxu1 %v2598_v31  ;;  %v2592_v56 = vld [vmem:[%s6883_s13 + $0x288] sm:$0xff]  ;;  %2878 = vmatpush.msrb.mxu2 %v2622_v57 }
 0x2e0   :  { %2849 = vmatpush.msrb.mxu0 %v2579_v59 }
 0x2e1   :  { %v2730_v60 = vadd.f32 %v2729_v37, %v2728_v54  ;;  %v2682_v61 = vrot.slane %v2681_v5, 1  ;;  %2867 = vmatpush.msrb.mxu1 %v2597_v1  ;;  %v2591_v37 = vld [vmem:[%s6883_s13 + $0x280] sm:$0xff] }
 0x2e2   :  { %2850 = vmatpush.msrb.mxu0 %v2578_v62 }
 0x2e3   :  { %v2731_v2 = vrot.slane %v2730_v60, 1  ;;  %v2683_v7 = vadd.f32 %v2682_v61, %v2681_v5  ;;  %2868 = vmatpush.msrb.mxu1 %v2596_v34  ;;  %v979_v5 = vperm.slane %v6155_v35, 5  ;;  %v2621_v61 = vld [vmem:[%s6883_s13 + $0x370] sm:$0xff] }
 0x2e4   :  { %v2357_v63 = vpop.f32.mrf.mxu0  ;;  %v2370_v0 = vpop.f32.mrf.mxu1  ;;  %2851 = vmatpush.msrb.mxu0 %v2577_v3  ;;  %2879 = vmatpush.msrb.mxu2 %v2621_v61 }
 0x2e5   :  { %v2732_v10 = vadd.f32 %v2731_v2, %v2730_v60  ;;  %v2358_v14 = vadd.f32 %v2357_v63, %v978_v47  ;;  %2869 = vmatpush.msrb.mxu1 %v2595_v42  ;;  %v2620_v63 = vld [vmem:[%s6883_s13 + $0x368] sm:$0xff]  ;;  %v2618_v47 = vld [vmem:[%s6883_s13 + $0x358] sm:$0xff]  ;;  %v2607_v42 = vld [vmem:[%s6883_s13 + $0x300] sm:$0xff] }
 0x2e6   :  { %2852 = vmatpush.msrb.mxu0 %v2576_v4  ;;  %2880 = vmatpush.msrb.mxu2 %v2620_v63 }
 0x2e7   :  { %v2754_v11 = vsel %vm480_vm3, %v2683_v7, %v2732_v10  ;;  %v2371_v28 = vadd.f32 %v2370_v0, %v2358_v14  ;;  %2870 = vmatpush.msrb.mxu1 %v2594_v46  ;;  %v2619_v0 = vld [vmem:[%s6883_s13 + $0x360] sm:$0xff] }
 0x2e8   :  { %2834 = vmatmul.f32.vlgmr.msra.gmra.mxu3 %v2754_v11  ;;  %2853 = vmatpush.msrb.mxu0 %v2575_v8  ;;  %v2615_v14 = vld [vmem:[%s6883_s13 + $0x340] sm:$0xff] }
 0x2e9   :  { %2871 = vmatpush.msrb.mxu1 %v2593_v53  ;;  %2881 = vmatpush.msrb.mxu2 %v2619_v0 }
 0x2eb   :  { %2872 = vmatpush.msrb.mxu1 %v2592_v56  ;;  %2882 = vmatpush.msrb.mxu2 %v2618_v47 }
 0x2ec   :  { %v2359_v15 = vpop.f32.mrf.mxu0  ;;  %v2372_v16 = vpop.f32.mrf.mxu1 }
 0x2ed   :  { %2873 = vmatpush.msrb.mxu1 %v2591_v37  ;;  %2883 = vmatpush.msrb.mxu2 %v2617_v9  ;;  %v2614_v16 = vld [vmem:[%s6883_s13 + $0x338] sm:$0xff] }
 0x2ef   :  { %2884 = vmatpush.msrb.mxu2 %v2616_v12 }
 0x2f0   :  { %v2383_v30 = vpop.f32.mrf.mxu2  ;;  %v2396_v17 = vpop.f32.mrf.mxu3 }
 0x2f1   :  { %v2384_v20 = vadd.f32 %v2383_v30, %v2371_v28  ;;  %2885 = vmatpush.msrb.mxu2 %v2615_v14 }
 0x2f3   :  { %v2397_v23 = vadd.f32 %v2396_v17, %v2384_v20  ;;  %2886 = vmatpush.msrb.mxu2 %v2614_v16  ;;  %v2613_v20 = vld [vmem:[%s6883_s13 + $0x330] sm:$0xff] }
 0x2f5   :  { %v6461_v22 = vmax.f32 %v2397_v23, 0.0  ;;  %2887 = vmatpush.msrb.mxu2 %v2613_v20 }
 0x2f7   :  { %v2657_v18 = vmul.f32 %v6004_v44, %v6461_v22  ;;  %2888 = vmatpush.msrb.mxu2 %v2612_v24 }
 0x2f8   :  { %v2385_v26 = vpop.f32.mrf.mxu2  ;;  %v2398_v27 = vpop.f32.mrf.mxu3 }
 0x2f9   :  { %v2684_v48 = vrot.slane %v2657_v18, 4  ;;  %v2706_v58 = vmul.f32 %v2657_v18, %v6461_v22  ;;  %v2611_v26 = vld [vmem:[%s6883_s13 + $0x320] sm:$0xff] }
 0x2fa   :  { %2889 = vmatpush.msrb.mxu2 %v2611_v26 }
 0x2fb   :  { %v2685_v33 = vadd.f32 %v2684_v48, %v2657_v18  ;;  %v2733_v50 = vrot.slane %v2706_v58, 4  ;;  %v2610_v48 = vld [vmem:[%s6883_s13 + $0x318] sm:$0xff] }
 0x2fc   :  { %2890 = vmatpush.msrb.mxu2 %v2610_v48 }
 0x2fd   :  { %v2734_v39 = vadd.f32 %v2733_v50, %v2706_v58  ;;  %v2686_v41 = vrot.slane %v2685_v33, 2 }
 0x2ff   :  { %v2735_v43 = vrot.slane %v2734_v39, 2  ;;  %v2687_v45 = vadd.f32 %v2686_v41, %v2685_v33  ;;  %v2609_v33 = vld [vmem:[%s6883_s13 + $0x310] sm:$0xff] }
 0x300   :  { %2891 = vmatpush.msrb.mxu2 %v2609_v33 }
 0x301   :  { %v2736_v49 = vadd.f32 %v2735_v43, %v2734_v39  ;;  %v2688_v40 = vrot.slane %v2687_v45, 1  ;;  %v2608_v39 = vld [vmem:[%s6883_s13 + $0x308] sm:$0xff]  ;;  %v980_v43 = vperm.slane %v6155_v35, 6  ;;  %s2898_s13 = smul.f32 28.0, %s84_s23 }
 0x302   :  { %2892 = vmatpush.msrb.mxu2 %v2608_v39 }
 0x303   :  { %v2737_v54 = vrot.slane %v2736_v49, 1  ;;  %v2689_v59 = vadd.f32 %v2688_v40, %v2687_v45 }
 0x304   :  { %v2409_v51 = vpop.f32.mrf.mxu0  ;;  %v2422_v52 = vpop.f32.mrf.mxu1  ;;  %2893 = vmatpush.msrb.mxu2 %v2607_v42 }
 0x305   :  { %v2738_v60 = vadd.f32 %v2737_v54, %v2736_v49  ;;  %v2410_v2 = vadd.f32 %v2409_v51, %v979_v5 }
 0x307   :  { %v2755_v62 = vsel %vm480_vm3, %v2689_v59, %v2738_v60  ;;  %v2423_v6 = vadd.f32 %v2422_v52, %v2410_v2 }
 0x308   :  { %2854 = vmatmul.f32.vlgmr.msrb.gmra.mxu0 %v2755_v62 }
 0x30c   :  { %v2411_v3 = vpop.f32.mrf.mxu0  ;;  %v2424_v4 = vpop.f32.mrf.mxu1 }
 0x310   :  { %v2435_v7 = vpop.f32.mrf.mxu2  ;;  %v2448_v10 = vpop.f32.mrf.mxu3 }
 0x311   :  { %v2436_v8 = vadd.f32 %v2435_v7, %v2423_v6 }
 0x313   :  { %v2449_v11 = vadd.f32 %v2448_v10, %v2436_v8 }
 0x315   :  { %v6516_v13 = vmax.f32 %v2449_v11, 0.0 }
 0x317   :  { %v2658_v15 = vmul.f32 %v6004_v44, %v6516_v13 }
 0x318   :  { %v2437_v28 = vpop.f32.mrf.mxu2  ;;  %v2450_v30 = vpop.f32.mrf.mxu3 }
 0x319   :  { %v2690_v17 = vrot.slane %v2658_v15, 4  ;;  %v2707_v19 = vmul.f32 %v2658_v15, %v6516_v13 }
 0x31b   :  { %v2691_v21 = vadd.f32 %v2690_v17, %v2658_v15  ;;  %v2739_v23 = vrot.slane %v2707_v19, 4 }
 0x31d   :  { %v2740_v25 = vadd.f32 %v2739_v23, %v2707_v19  ;;  %v2692_v18 = vrot.slane %v2691_v21, 2 }
 0x31f   :  { %v2741_v27 = vrot.slane %v2740_v25, 2  ;;  %v2693_v31 = vadd.f32 %v2692_v18, %v2691_v21 }
 0x321   :  { %v2742_v58 = vadd.f32 %v2741_v27, %v2740_v25  ;;  %v2694_v1 = vrot.slane %v2693_v31, 1 }
 0x323   :  { %v2743_v41 = vrot.slane %v2742_v58, 1  ;;  %v2695_v45 = vadd.f32 %v2694_v1, %v2693_v31 }
 0x324   :  { %v2461_v50 = vpop.f32.mrf.mxu0  ;;  %v2474_v34 = vpop.f32.mrf.mxu1 }
 0x325   :  { %v2744_v46 = vadd.f32 %v2743_v41, %v2742_v58  ;;  %v2462_v40 = vadd.f32 %v2461_v50, %v980_v43 }
 0x327   :  { %v2756_v49 = vsel %vm480_vm3, %v2695_v45, %v2744_v46  ;;  %v2475_v53 = vadd.f32 %v2474_v34, %v2462_v40  ;;  %v2644_v46 = vld [vmem:[%s6884_s14 + $0xa8] sm:$0xff]  ;;  %v2649_v40 = vld [vmem:[%s6884_s14 + $0xd0] sm:$0xff] }
 0x328   :  { %2874 = vmatmul.f32.vlgmr.msrb.gmra.mxu1 %v2756_v49  ;;  %v2648_v49 = vld [vmem:[%s6884_s14 + $0xc8] sm:$0xff]  ;;  %2961 = vmatpush.msrb.mxu3 %v2644_v46 }
 0x329   :  { %3041 = vmatpush.msra.mxu0 %v2648_v49  ;;  %3061 = vmatpush.msra.mxu1 %v2649_v40  ;;  %v5373_v46 = vld [vmem:[%s6885_s15 + $0x28] sm:$0xff]  ;;  %v5372_v49 = vld [vmem:[%s6885_s15 + $0x20] sm:$0xff]  ;;  %v5371_v40 = vld [vmem:[%s6885_s15 + $0x18] sm:$0xff] }
 0x32c   :  { %v2463_v51 = vpop.f32.mrf.mxu0  ;;  %v2476_v52 = vpop.f32.mrf.mxu1 }
 0x32d   :  { %v2650_v52 = vld [vmem:[%s6884_s14 + $0xd8] sm:$0xff] }
 0x32e   :  { %3081 = vmatpush.msra.mxu2 %v2650_v52  ;;  %v5369_v52 = vld [vmem:[%s6885_s15 + $0x8] sm:$0xff] }
 0x331   :  { %v2487_v54 = vpop.f32.mrf.mxu2 }
 0x332   :  { %v2488_v56 = vadd.f32 %v2487_v54, %v2475_v53  ;;  %v2637_v53 = vld [vmem:[%s6884_s14 + $0x70] sm:$0xff] }
 0x333   :  { %v2500_v57 = vpop.f32.mrf.mxu3  ;;  %v2641_v54 = vld [vmem:[%s6884_s14 + $0x90] sm:$0xff]  ;;  %2962 = vmatpush.msrb.mxu3 %v2637_v53  ;;  %v5368_v53 = vld [vmem:[%s6885_s15] sm:$0xff] }
 0x334   :  { %v2501_v37 = vadd.f32 %v2500_v57, %v2488_v56  ;;  %v2642_v56 = vld [vmem:[%s6884_s14 + $0x98] sm:$0xff]  ;;  %3042 = vmatpush.msra.mxu0 %v2641_v54  ;;  %v2643_v57 = vld [vmem:[%s6884_s14 + $0xa0] sm:$0xff] }
 0x335   :  { %3062 = vmatpush.msra.mxu1 %v2642_v56  ;;  %3082 = vmatpush.msra.mxu2 %v2643_v57  ;;  %v5407_v54 = vld [vmem:[%s6885_s15 + $0x138] sm:$0xff]  ;;  %v5377_v56 = vld [vmem:[%s6885_s15 + $0x48] sm:$0xff] }
 0x336   :  { %v6550_v5 = vmax.f32 %v2501_v37, 0.0  ;;  %v2630_v37 = vld [vmem:[%s6884_s14 + $0x38] sm:$0xff] }
 0x337   :  { %2963 = vmatpush.msrb.mxu3 %v2630_v37  ;;  %v5387_v57 = vld [vmem:[%s6885_s15 + $0x98] sm:$0xff]  ;;  %v5406_v37 = vld [vmem:[%s6885_s15 + $0x130] sm:$0xff] }
 0x338   :  { %v2659_v35 = vmul.f32 %v6004_v44, %v6550_v5  ;;  %v2899_v44 = vstv %s2898_s13 }
 0x339   :  { %v2489_v59 = vpop.f32.mrf.mxu2  ;;  %5446 = vrcp.f32 %v2899_v44  ;;  %v2911_v15 = vand.u32 2147483648, %v2899_v44  ;;  %vm2905_vm10 = vweird.f32 %v2899_v44  ;;  %v2909_v28 = vand.u32 2147483647, %v2899_v44 }
 0x33a   :  { %v2696_v60 = vrot.slane %v2659_v35, 4  ;;  %v2708_v61 = vmul.f32 %v2659_v35, %v6550_v5  ;;  %v2635_v59 = vld [vmem:[%s6884_s14 + $0x60] sm:$0xff] }
 0x33b   :  { %v2502_v62 = vpop.f32.mrf.mxu3  ;;  %v2912_v17 = vor.u32 1.1754944e-38, %v2911_v15  ;;  %vm2910_vm13 = vcmp.eq.f32.partialorder %v2909_v28, 8.507059e+37  ;;  %3063 = vmatpush.msra.mxu1 %v2635_v59  ;;  %v5386_v59 = vld [vmem:[%s6885_s15 + $0x90] sm:$0xff] }
 0x33c   :  { %v2697_v63 = vadd.f32 %v2696_v60, %v2659_v35  ;;  %v2745_v0 = vrot.slane %v2708_v61, 4  ;;  %v2634_v35 = vld [vmem:[%s6884_s14 + $0x58] sm:$0xff]  ;;  %v2636_v60 = vld [vmem:[%s6884_s14 + $0x68] sm:$0xff]  ;;  %v2627_v62 = vld [vmem:[%s6884_s14 + $0x20] sm:$0xff] }
 0x33d   :  { %3043 = vmatpush.msra.mxu0 %v2634_v35  ;;  %3083 = vmatpush.msra.mxu2 %v2636_v60  ;;  %v5376_v35 = vld [vmem:[%s6885_s15 + $0x40] sm:$0xff]  ;;  %v5399_v60 = vld [vmem:[%s6885_s15 + $0xf8] sm:$0xff] }
 0x33e   :  { %v2746_v2 = vadd.f32 %v2745_v0, %v2708_v61  ;;  %v2698_v3 = vrot.slane %v2697_v63, 2  ;;  %v2623_v61 = vld [vmem:[%s6884_s14] sm:$0xff]  ;;  %v2629_v0 = vld [vmem:[%s6884_s14 + $0x30] sm:$0xff] }
 0x33f   :  { %v5447_v12 = vpop.eup %5446  ;;  %2964 = vmatpush.msrb.mxu3 %v2623_v61  ;;  %3044 = vmatpush.msra.mxu0 %v2627_v62  ;;  %v5405_v61 = vld [vmem:[%s6885_s15 + $0x128] sm:$0xff]  ;;  %v5415_v62 = vld [vmem:[%s6885_s15 + $0x178] sm:$0xff] }
 0x340   :  { %v2747_v4 = vrot.slane %v2746_v2, 2  ;;  %v2699_v6 = vadd.f32 %v2698_v3, %v2697_v63  ;;  %v2901_v14 = vmul.f32 %v5447_v12, %v2899_v44  ;;  %vm2906_vm11 = vweird.f32 %v5447_v12  ;;  %v2628_v63 = vld [vmem:[%s6884_s14 + $0x28] sm:$0xff]  ;;  %3084 = vmatpush.msra.mxu2 %v2629_v0  ;;  %v2638_v3 = vld [vmem:[%s6884_s14 + $0x78] sm:$0xff]  ;;  %v5398_v0 = vld [vmem:[%s6885_s15 + $0xf0] sm:$0xff] }
 0x341   :  { %vm2907_vm12 = vmor %vm2905_vm10, %vm2906_vm11  ;;  %3064 = vmatpush.msra.mxu1 %v2628_v63  ;;  %v5385_v63 = vld [vmem:[%s6885_s15 + $0x88] sm:$0xff] }
 0x342   :  { %v2748_v47 = vadd.f32 %v2747_v4, %v2746_v2  ;;  %v2700_v7 = vrot.slane %v2699_v6, 1  ;;  %v2902_v16 = vsub.f32 1.0, %v2901_v14  ;;  %v2645_v2 = vld [vmem:[%s6884_s14 + $0xb0] sm:$0xff] }
 0x343   :  { %2981 = vmatpush.msra.mxu3 %v2645_v2  ;;  %v5404_v2 = vld [vmem:[%s6885_s15 + $0x120] sm:$0xff] }
 0x344   :  { %v2749_v10 = vrot.slane %v2748_v47, 1  ;;  %v2701_v8 = vadd.f32 %v2700_v7, %v2699_v6  ;;  %v2903_v30 = vmul.f32 %v5447_v12, %v2902_v16  ;;  %v2775_v23 = vpop.f32.mrf.mxu0  ;;  %v2652_v16 = vld [vmem:[%s6882_s12] sm:$0x1] }
 0x345   :  { %2982 = vmatpush.msra.mxu3 %v2638_v3  ;;  %v5414_v3 = vld [vmem:[%s6885_s15 + $0x170] sm:$0xff] }
 0x346   :  { %v2750_v9 = vadd.f32 %v2749_v10, %v2748_v47  ;;  %v2904_v19 = vadd.f32 %v5447_v12, %v2903_v30  ;;  %v2795_v24 = vpop.f32.mrf.mxu1  ;;  %v2631_v47 = vld [vmem:[%s6884_s14 + $0x40] sm:$0xff]  ;;  %v2624_v10 = vld [vmem:[%s6884_s14 + $0x8] sm:$0xff]  ;;  %v5383_v30 = vld [vmem:[%s6885_s15 + $0x78] sm:$0xff] }
 0x347   :  { %v2796_v18 = vadd.f32 %v2795_v24, %v2775_v23  ;;  %2983 = vmatpush.msra.mxu3 %v2631_v47  ;;  %3589 = vmatpush.bf16.msrb.mxu0 %v5383_v30  ;;  %v2646_v23 = vld [vmem:[%s6884_s14 + $0xb8] sm:$0xff]  ;;  %v2639_v24 = vld [vmem:[%s6884_s14 + $0x80] sm:$0xff] }
 0x348   :  { %v2757_v11 = vsel %vm480_vm3, %v2701_v8, %v2750_v9  ;;  %v2908_v20 = vsel %vm2907_vm12, %v5447_v12, %v2904_v19  ;;  %v2651_v12 = vld [vmem:[%s6881_s11] sm:$0x1]  ;;  %v5403_v47 = vld [vmem:[%s6885_s15 + $0x118] sm:$0xff] }
 0x349   :  { %2894 = vmatmul.f32.vlgmr.msrb.gmra.mxu2 %v2757_v11  ;;  %v2913_v21 = vsel %vm2910_vm13, %v2912_v17, %v2908_v20  ;;  %2984 = vmatpush.msra.mxu3 %v2624_v10  ;;  %v5382_v20 = vld [vmem:[%s6885_s15 + $0x70] sm:$0xff]  ;;  %v5423_v10 = vld [vmem:[%s6885_s15 + $0x1b8] sm:$0xff]  ;;  %v5400_v30 = vld [vmem:[%s6885_s15 + $0x100] sm:$0xff] }
 0x34a   :  { %5434 = vpush %v2913_v21  ;;  %3615 = vmatpush.bf16.msrb.mxu2 %v5399_v60 }
 0x34b   :  { %3590 = vmatpush.bf16.msrb.mxu0 %v5382_v20  ;;  %v5393_v20 = vld [vmem:[%s6885_s15 + $0xc8] sm:$0xff] }
 0x34e   :  { %3616 = vmatpush.bf16.msrb.mxu2 %v5398_v0 }
 0x352   :  { %v2815_v25 = vpop.f32.mrf.mxu2 }
 0x353   :  { %v2816_v27 = vadd.f32 %v2815_v25, %v2796_v18  ;;  %v5381_v25 = vld [vmem:[%s6885_s15 + $0x68] sm:$0xff]  ;;  %v5391_v18 = vld [vmem:[%s6885_s15 + $0xb8] sm:$0xff] }
 0x354   :  { %3602 = vmatpush.bf16.msrb.mxu1 %v5391_v18  ;;  %3591 = vmatpush.bf16.msrb.mxu0 %v5381_v25  ;;  %v5408_v25 = vld [vmem:[%s6885_s15 + $0x140] sm:$0xff]  ;;  %v5418_v18 = vld [vmem:[%s6885_s15 + $0x190] sm:$0xff] }
 0x36b   :  { %v2835_v26 = vpop.f32.mrf.mxu3 }
 0x36c   :  { %v2836_v48 = vadd.f32 %v2835_v26, %v2816_v27  ;;  %v2632_v26 = vld [vmem:[%s6884_s14 + $0x48] sm:$0xff]  ;;  %v2625_v27 = vld [vmem:[%s6884_s14 + $0x10] sm:$0xff] }
 0x37b   :  { %s5435_s28 = spop %5434 }
 0x37c   :  { %v2915_v34 = vstv %s5435_s28 }
 0x385   :  { %v2855_v31 = vpop.f32.mrf.mxu0 }
 0x386   :  { %v2856_v1 = vadd.f32 %v2855_v31, %v2836_v48  ;;  %v5380_v31 = vld [vmem:[%s6885_s15 + $0x60] sm:$0xff]  ;;  %v5390_v48 = vld [vmem:[%s6885_s15 + $0xb0] sm:$0xff] }
 0x387   :  { %3603 = vmatpush.bf16.msrb.mxu1 %v5390_v48  ;;  %3592 = vmatpush.bf16.msrb.mxu0 %v5380_v31  ;;  %v5417_v31 = vld [vmem:[%s6885_s15 + $0x188] sm:$0xff] }
 0x3a5   :  { %v2875_v58 = vpop.f32.mrf.mxu1 }
 0x3a6   :  { %v2876_v33 = vadd.f32 %v2875_v58, %v2856_v1  ;;  %v2647_v58 = vld [vmem:[%s6884_s14 + $0xc0] sm:$0xff]  ;;  %v2640_v1 = vld [vmem:[%s6884_s14 + $0x88] sm:$0xff] }
 0x3cc   :  { %v2895_v50 = vpop.f32.mrf.mxu2 }
 0x3cd   :  { %v2896_v39 = vadd.f32 %v2895_v50, %v2876_v33  ;;  %v5379_v33 = vld [vmem:[%s6885_s15 + $0x58] sm:$0xff]  ;;  %v5389_v50 = vld [vmem:[%s6885_s15 + $0xa8] sm:$0xff] }
 0x3ce   :  { %3604 = vmatpush.bf16.msrb.mxu1 %v5389_v50  ;;  %3593 = vmatpush.bf16.msrb.mxu0 %v5379_v33  ;;  %v5416_v33 = vld [vmem:[%s6885_s15 + $0x180] sm:$0xff] }
 0x3cf   :  { %v2916_v41 = vmul.f32 %v2915_v34, %v2896_v39  ;;  %v2633_v34 = vld [vmem:[%s6884_s14 + $0x50] sm:$0xff]  ;;  %v2626_v39 = vld [vmem:[%s6884_s14 + $0x18] sm:$0xff] }
 0x3d1   :  { %v2917_v42 = vmul.f32 %v2916_v41, %v2916_v41 }
 0x3d3   :  { %v2919_v43 = vrot.slane %v2917_v42, 7  ;;  %v5378_v42 = vld [vmem:[%s6885_s15 + $0x50] sm:$0xff] }
 0x3d4   :  { %3594 = vmatpush.bf16.msrb.mxu0 %v5378_v42 }
 0x3d5   :  { %v2921_v45 = vsub.f32 %v2916_v41, %v2919_v43  ;;  %v5388_v43 = vld [vmem:[%s6885_s15 + $0xa0] sm:$0xff] }
 0x3d6   :  { %3605 = vmatpush.bf16.msrb.mxu1 %v5388_v43 }
 0x3d7   :  { %v2922_v51 = vadd.f32 1e-05, %v2921_v45  ;;  %v5374_v45 = vld [vmem:[%s6885_s15 + $0x30] sm:$0xff] }
 0x3d8   :  { %3595 = vmatpush.bf16.msrb.mxu0 %v5377_v56 }
 0x3d9   :  { %5448 = vrsqrt.f32 %v2922_v51  ;;  %vm2929_vm15 = vweird.f32 %v2922_v51 }
 0x3da   :  { %3606 = vmatpush.bf16.msrb.mxu1 %v5387_v57 }
 0x3dc   :  { %3596 = vmatpush.bf16.msrb.mxu0 %v5376_v35 }
 0x3de   :  { %3607 = vmatpush.bf16.msrb.mxu1 %v5386_v59 }
 0x3df   :  { %v5449_v4 = vpop.eup %5448 }
 0x3e0   :  { %v2924_v6 = vmul.f32 %v5449_v4, %v2922_v51  ;;  %vm2930_vm14 = vweird.f32 %v5449_v4  ;;  %v5370_v51 = vld [vmem:[%s6885_s15 + $0x10] sm:$0xff] }
 0x3e1   :  { %vm2931_vm0 = vmor %vm2929_vm15, %vm2930_vm14 }
 0x3e2   :  { %v2925_v7 = vmul.f32 %v5449_v4, %v2924_v6  ;;  %3608 = vmatpush.bf16.msrb.mxu1 %v5385_v63  ;;  %v5397_v6 = vld [vmem:[%s6885_s15 + $0xe8] sm:$0xff] }
 0x3e3   :  { %3617 = vmatpush.bf16.msrb.mxu2 %v5397_v6 }
 0x3e4   :  { %v2926_v8 = vmul.f32 0.5, %v2925_v7  ;;  %v5413_v7 = vld [vmem:[%s6885_s15 + $0x168] sm:$0xff] }
 0x3e6   :  { %v2927_v9 = vsub.f32 1.5, %v2926_v8  ;;  %v5396_v8 = vld [vmem:[%s6885_s15 + $0xe0] sm:$0xff] }
 0x3e7   :  { %3618 = vmatpush.bf16.msrb.mxu2 %v5396_v8 }
 0x3e8   :  { %v2928_v11 = vmul.f32 %v5449_v4, %v2927_v9  ;;  %v5402_v9 = vld [vmem:[%s6885_s15 + $0x110] sm:$0xff] }
 0x3ea   :  { %v2932_v44 = vsel %vm2931_vm0, %v5449_v4, %v2928_v11  ;;  %v5384_v4 = vld [vmem:[%s6885_s15 + $0x80] sm:$0xff] }
 0x3eb   :  { %2934 = vst [vmem:[#allocation1] sm:$0xff] %v2932_v44  ;;  %3609 = vmatpush.bf16.msrb.mxu1 %v5384_v4  ;;  %v5412_v11 = vld [vmem:[%s6885_s15 + $0x160] sm:$0xff]  ;;  %v5422_v44 = vld [vmem:[%s6885_s15 + $0x1b0] sm:$0xff] }
 0x3f2   :  { %v2936_v14 = vld [vmem:[#allocation1 + $0x1] ss:$9 sm:$0xff] }
 0x3f3   :  { %v2938_v15 = vmul.f32 %v2936_v14, %v2651_v12  ;;  %v5395_v12 = vld [vmem:[%s6885_s15 + $0xd8] sm:$0xff]  ;;  %v5401_v14 = vld [vmem:[%s6885_s15 + $0x108] sm:$0xff] }
 0x3f4   :  { %3619 = vmatpush.bf16.msrb.mxu2 %v5395_v12  ;;  %v5426_v12 = vld [vmem:[%s6887_s17 + $0x10] sm:$0xff] }
 0x3f5   :  { %v2939_v28 = vmul.f32 %v2938_v15, %v2916_v41  ;;  %v5375_v41 = vld [vmem:[%s6885_s15 + $0x38] sm:$0xff] }
 0x3f7   :  { %v2940_v17 = vsub.f32 %v2652_v16, %v2939_v28  ;;  %v5421_v16 = vld [vmem:[%s6885_s15 + $0x1a8] sm:$0xff]  ;;  %v5394_v28 = vld [vmem:[%s6885_s15 + $0xd0] sm:$0xff] }
 0x3f8   :  { %3620 = vmatpush.bf16.msrb.mxu2 %v5394_v28  ;;  %v5424_v28 = vld [vmem:[%s6887_s17] sm:$0xff] }
 0x3f9   :  { %v2942_v19 = vperm.slane %v2940_v17, 0  ;;  %v5410_v17 = vld [vmem:[%s6885_s15 + $0x150] sm:$0xff] }
 0x3fb   :  { %v2944_v21 = vsel %vm480_vm3, %v2938_v15, %v2942_v19  ;;  %v5411_v15 = vld [vmem:[%s6885_s15 + $0x158] sm:$0xff]  ;;  %v5420_v19 = vld [vmem:[%s6885_s15 + $0x1a0] sm:$0xff] }
 0x3fc   :  { %4847 = vmatmul.msk.f32.vlgmr.msrb.gmra.mxu3 %vm2945_vm1, %v2944_v21  ;;  %4851 = vmatmul.msk.f32.vlgmr.msra.gmra.mxu0 %vm2945_vm1, %v2944_v21 }
 0x3fd   :  { %4852 = vmatmul.msk.f32.vlgmr.msra.gmra.mxu1 %vm2945_vm1, %v2944_v21  ;;  %4853 = vmatmul.msk.f32.vlgmr.msra.gmra.mxu2 %vm2945_vm1, %v2944_v21 }
 0x3fe   :  { %3001 = vmatpush.msrb.mxu3 %v2646_v23  ;;  %3641 = vmatpush.bf16.msra.mxu0 %v5415_v62  ;;  %v5419_v23 = vld [vmem:[%s6885_s15 + $0x198] sm:$0xff] }
 0x3ff   :  { %3654 = vmatpush.bf16.msra.mxu1 %v5423_v10  ;;  %3621 = vmatpush.bf16.msrb.mxu2 %v5393_v20  ;;  %v5440_v20 = vld [vmem:[%s6886_s16] ss:$0 sm:$0xff] }
 0x400   :  { %3002 = vmatpush.msrb.mxu3 %v2639_v24  ;;  %v5392_v24 = vld [vmem:[%s6885_s15 + $0xc0] sm:$0xff] }
 0x402   :  { %3003 = vmatpush.msrb.mxu3 %v2632_v26  ;;  %3642 = vmatpush.bf16.msra.mxu0 %v5414_v3 }
 0x403   :  { %3655 = vmatpush.bf16.msra.mxu1 %v5422_v44  ;;  %3622 = vmatpush.bf16.msrb.mxu2 %v5392_v24  ;;  %v5427_v44 = vld [vmem:[%s6887_s17 + $0x18] sm:$0xff] }
 0x404   :  { %4848 = vmatmul.msk.f32.vlgmr.msra.gmra.mxu3 %vm2945_vm1, %v2944_v21 }
 0x405   :  { %3004 = vmatpush.msrb.mxu3 %v2625_v27 }
 0x406   :  { %3643 = vmatpush.bf16.msra.mxu0 %v5413_v7 }
 0x407   :  { %3021 = vmatpush.msra.mxu3 %v2647_v58  ;;  %3656 = vmatpush.bf16.msra.mxu1 %v5421_v16 }
 0x409   :  { %3022 = vmatpush.msra.mxu3 %v2640_v1 }
 0x40a   :  { %3644 = vmatpush.bf16.msra.mxu0 %v5412_v11  ;;  %v5428_v11 = vld [vmem:[%s6887_s17 + $0x20] sm:$0xff] }
 0x40b   :  { %3023 = vmatpush.msra.mxu3 %v2633_v34  ;;  %3657 = vmatpush.bf16.msra.mxu1 %v5420_v19 }
 0x40c   :  { %4849 = vmatmul.msk.f32.vlgmr.msrb.gmra.mxu3 %vm2945_vm1, %v2944_v21 }
 0x40d   :  { %3024 = vmatpush.msra.mxu3 %v2626_v39 }
 0x40e   :  { %3645 = vmatpush.bf16.msra.mxu0 %v5411_v15 }
 0x40f   :  { %3576 = vmatpush.bf16.msrb.mxu3 %v5375_v41  ;;  %3658 = vmatpush.bf16.msra.mxu1 %v5419_v23 }
 0x412   :  { %3646 = vmatpush.bf16.msra.mxu0 %v5410_v17 }
 0x413   :  { %3577 = vmatpush.bf16.msrb.mxu3 %v5374_v45  ;;  %3659 = vmatpush.bf16.msra.mxu1 %v5418_v18 }
 0x414   :  { %4850 = vmatmul.msk.f32.vlgmr.msra.gmra.mxu3 %vm2945_vm1, %v2944_v21  ;;  %v5409_v21 = vld [vmem:[%s6885_s15 + $0x148] sm:$0xff] }
 0x416   :  { %3647 = vmatpush.bf16.msra.mxu0 %v5409_v21 }
 0x417   :  { %3578 = vmatpush.bf16.msrb.mxu3 %v5373_v46  ;;  %3660 = vmatpush.bf16.msra.mxu1 %v5417_v31 }
 0x41a   :  { %3648 = vmatpush.bf16.msra.mxu0 %v5408_v25 }
 0x41b   :  { %3579 = vmatpush.bf16.msrb.mxu3 %v5372_v49  ;;  %3661 = vmatpush.bf16.msra.mxu1 %v5416_v33 }
 0x41f   :  { %3580 = vmatpush.bf16.msrb.mxu3 %v5371_v40 }
 0x423   :  { %3581 = vmatpush.bf16.msrb.mxu3 %v5370_v51 }
 0x427   :  { %3582 = vmatpush.bf16.msrb.mxu3 %v5369_v52 }
 0x42b   :  { %3583 = vmatpush.bf16.msrb.mxu3 %v5368_v53 }
 0x42f   :  { %3628 = vmatpush.bf16.msra.mxu3 %v5407_v54 }
 0x433   :  { %3629 = vmatpush.bf16.msra.mxu3 %v5406_v37 }
 0x437   :  { %3630 = vmatpush.bf16.msra.mxu3 %v5405_v61 }
 0x43b   :  { %3631 = vmatpush.bf16.msra.mxu3 %v5404_v2 }
 0x43f   :  { %3632 = vmatpush.bf16.msra.mxu3 %v5403_v47 }
 0x443   :  { %3633 = vmatpush.bf16.msra.mxu3 %v5402_v9  ;;  %v5431_v9 = vld [vmem:[%s6887_s17 + $0x38] sm:$0xff] }
 0x444   :  { %3737 = vmatpush.bf16.msra.mxu2 %v5431_v9 }
 0x447   :  { %3634 = vmatpush.bf16.msra.mxu3 %v5401_v14  ;;  %v5425_v14 = vld [vmem:[%s6887_s17 + $0x8] sm:$0xff] }
 0x44b   :  { %3635 = vmatpush.bf16.msra.mxu3 %v5400_v30 }
 0x479   :  { %v3046_v34 = vpop.f32.mrf.mxu0 }
 0x47a   :  { %v3093_v42 = vperm.slane %v3046_v34, 0  ;;  %v3066_v40 = vpop.f32.mrf.mxu1  ;;  %v3107_v52 = vperm.slane %v3046_v34, 1 }
 0x47b   :  { %v3094_v56 = vperm.slane %v3066_v40, 0  ;;  %v3108_v63 = vperm.slane %v3066_v40, 1  ;;  %v3751_v40 = vand.u32 127, %v85_v29 }
 0x47d   :  { %v3101_v60 = vmul.f32 %v3094_v56, %v6516_v13  ;;  %vm3752_vm4 = vcmp.lt.s32.totalorder %v3751_v40, 6  ;;  %vm3795_vm6 = vcmp.eq.s32.totalorder %v3751_v40, 6  ;;  %vm3800_vm10 = vcmp.eq.s32.totalorder %v3751_v40, 8 }
 0x47e   :  { %vm3803_vm11 = vcmp.eq.s32.totalorder %v3751_v40, 9  ;;  %vm3805_vm12 = vcmp.eq.s32.totalorder %v3751_v40, 10 }
 0x47f   :  { %v2966_v26 = vpop.f32.mrf.mxu3  ;;  %v3115_v0 = vadd.f32 %v3108_v63, %v3101_v60 }
 0x480   :  { %v3089_v27 = vperm.slane %v2966_v26, 0  ;;  %v3103_v58 = vperm.slane %v2966_v26, 1  ;;  %v3086_v61 = vpop.f32.mrf.mxu2 }
 0x481   :  { %v3095_v2 = vperm.slane %v3086_v61, 0  ;;  %v3122_v47 = vpack.c.bf16 %v3115_v0, %v3115_v0  ;;  %v3109_v10 = vperm.slane %v3086_v61, 1 }
 0x482   :  { %v3096_v48 = vmul.f32 %v3089_v27, %v6160_v55  ;;  %v3100_v55 = vmul.f32 %v3093_v42, %v6461_v22 }
 0x484   :  { %v3110_v1 = vadd.f32 %v3103_v58, %v3096_v48  ;;  %v3114_v54 = vadd.f32 %v3107_v52, %v3100_v55  ;;  %v3771_v52 = vld [vmem:[%s6905_s3] sm:$0xff] }
 0x486   :  { %v3117_v50 = vpack.c.bf16 %v3110_v1, %v3110_v1  ;;  %v3121_v59 = vpack.c.bf16 %v3114_v54, %v3114_v54 }
 0x487   :  { %v2986_v39 = vpop.f32.mrf.mxu3 }
 0x488   :  { %v3090_v41 = vperm.slane %v2986_v39, 0  ;;  %3584 = vmatmul.bf16.vlgmr.msrb.gmra.mxu3 %v3117_v50  ;;  %v3104_v45 = vperm.slane %v2986_v39, 1 }
 0x48a   :  { %v3097_v43 = vmul.f32 %v3090_v41, %v6218_v32 }
 0x48c   :  { %v3111_v46 = vadd.f32 %v3104_v45, %v3097_v43  ;;  %v5441_v45 = vld [vmem:[%s6888_s18] ss:$0 sm:$0xff] }
 0x48e   :  { %v3118_v49 = vpack.c.bf16 %v3111_v46, %v3111_v46 }
 0x48f   :  { %v3006_v51 = vpop.f32.mrf.mxu3 }
 0x490   :  { %v3091_v53 = vperm.slane %v3006_v51, 0  ;;  %3597 = vmatmul.bf16.vlgmr.msrb.gmra.mxu0 %v3118_v49  ;;  %v3105_v37 = vperm.slane %v3006_v51, 1 }
 0x492   :  { %v3098_v57 = vmul.f32 %v3091_v53, %v6322_v36  ;;  %v3102_v36 = vmul.f32 %v3095_v2, %v6550_v5  ;;  %v5429_v5 = vld [vmem:[%s6887_s17 + $0x28] sm:$0xff] }
 0x494   :  { %v3112_v35 = vadd.f32 %v3105_v37, %v3098_v57  ;;  %v3116_v13 = vadd.f32 %v3109_v10, %v3102_v36 }
 0x496   :  { %v3119_v32 = vpack.c.bf16 %v3112_v35, %v3112_v35  ;;  %v3123_v8 = vpack.c.bf16 %v3116_v13, %v3116_v13 }
 0x497   :  { %v3026_v62 = vpop.f32.mrf.mxu3 }
 0x498   :  { %v3092_v22 = vperm.slane %v3026_v62, 0  ;;  %3610 = vmatmul.bf16.vlgmr.msrb.gmra.mxu1 %v3119_v32  ;;  %3636 = vmatmul.bf16.vlgmr.msra.gmra.mxu3 %v3121_v59  ;;  %v3106_v4 = vperm.slane %v3026_v62, 1 }
 0x49a   :  { %v3099_v3 = vmul.f32 %v3092_v22, %v6403_v38  ;;  %v5430_v38 = vld [vmem:[%s6887_s17 + $0x30] sm:$0xff] }
 0x49b   :  { %3738 = vmatpush.bf16.msra.mxu2 %v5430_v38 }
 0x49c   :  { %v3113_v6 = vadd.f32 %v3106_v4, %v3099_v3 }
 0x49e   :  { %v3120_v7 = vpack.c.bf16 %v3113_v6, %v3113_v6 }
 0x49f   :  { %3739 = vmatpush.bf16.msra.mxu2 %v5429_v5 }
 0x4a0   :  { %3623 = vmatmul.bf16.vlgmr.msrb.gmra.mxu2 %v3120_v7  ;;  %3649 = vmatmul.bf16.vlgmr.msra.gmra.mxu0 %v3122_v47 }
 0x4a3   :  { %3740 = vmatpush.bf16.msra.mxu2 %v5428_v11 }
 0x4a7   :  { %3741 = vmatpush.bf16.msra.mxu2 %v5427_v44 }
 0x4a8   :  { %3662 = vmatmul.bf16.vlgmr.msra.gmra.mxu1 %v3123_v8 }
 0x4ab   :  { %3742 = vmatpush.bf16.msra.mxu2 %v5426_v12 }
 0x4af   :  { %3743 = vmatpush.bf16.msra.mxu2 %v5425_v14 }
 0x4b3   :  { %3744 = vmatpush.bf16.msra.mxu2 %v5424_v28 }
 0x50b   :  { %v3585_v15 = vpop.f32.mrf.mxu3 }
 0x50c   :  { %v3586_v23 = vadd.f32 %v5440_v20, %v3585_v15 }
 0x50d   :  { %v3598_v16 = vpop.f32.mrf.mxu0 }
 0x50e   :  { %v3599_v18 = vadd.f32 %v3598_v16, %v3586_v23 }
 0x513   :  { %v3587_v30 = vpop.f32.mrf.mxu3 }
 0x515   :  { %v3600_v17 = vpop.f32.mrf.mxu0  ;;  %v3611_v19 = vpop.f32.mrf.mxu1 }
 0x516   :  { %v3612_v26 = vadd.f32 %v3611_v19, %v3599_v18 }
 0x51b   :  { %v3637_v21 = vpop.f32.mrf.mxu3 }
 0x51d   :  { %v3613_v24 = vpop.f32.mrf.mxu1  ;;  %v3650_v25 = vpop.f32.mrf.mxu0 }
 0x523   :  { %v3624_v27 = vpop.f32.mrf.mxu2  ;;  %v3639_v31 = vpop.f32.mrf.mxu3 }
 0x524   :  { %v3625_v48 = vadd.f32 %v3624_v27, %v3612_v26 }
 0x525   :  { %v3652_v58 = vpop.f32.mrf.mxu0  ;;  %v3663_v1 = vpop.f32.mrf.mxu1 }
 0x526   :  { %v3638_v33 = vadd.f32 %v3637_v21, %v3625_v48 }
 0x528   :  { %v3651_v50 = vadd.f32 %v3650_v25, %v3638_v33 }
 0x52a   :  { %v3664_v34 = vadd.f32 %v3663_v1, %v3651_v50 }
 0x52b   :  { %v3626_v39 = vpop.f32.mrf.mxu2 }
 0x52c   :  { %v3667_v41 = vmax.f32 %v3664_v34, 0.0 }
 0x52d   :  { %v3665_v42 = vpop.f32.mrf.mxu1 }
 0x52e   :  { %v3668_v43 = vpack.c.bf16 %v3667_v41, %v3667_v41 }
 0x530   :  { %3745 = vmatmul.bf16.vlgmr.msra.gmra.mxu2 %v3668_v43 }
 0x5b3   :  { %v3746_v46 = vpop.f32.mrf.mxu2 }
 0x5b4   :  { %v3747_v55 = vadd.f32 %v5441_v45, %v3746_v46 }
 0x5b6   :  { %vm3753_vm2 = vcmp.ne.f32.partialorder %v3747_v55, %v3747_v55  ;;  %v3796_v37 = vsel %vm3795_vm6, %v3747_v55, 0.0 }
 0x5b7   :  { %v3754_v49 = vsel %vm3753_vm2, 0.0, %v3747_v55 }
 0x5b8   :  { %vm3755_vm3 = vcmp.eq.f32.partialorder %v3754_v49, inf }
 0x5b9   :  { %v3756_v51 = vsel %vm3755_vm3, 3.4028235e+38, %v3754_v49 }
 0x5ba   :  { %vm3757_vm5 = vcmp.eq.f32.partialorder %v3756_v51, -inf }
 0x5bb   :  { %v3748_v53 = vpop.f32.mrf.mxu2  ;;  %v3758_v54 = vsel %vm3757_vm5, -3.4028235e+38, %v3756_v51 }
 0x5bc   :  { %v3759_v56 = vsel %vm3752_vm4, %v3758_v54, -inf }
 0x5bd   :  { %v3772_v57 = vadd.f32 %v3771_v52, %v3759_v56 }
 0x5bf   :  { %3773 = vmax.xlane.f32.xlu0 %v3772_v57 }
 0x5c7   :  { %3760 = vmax.xlane.f32.xlu0 %v3759_v56 }
 0x5cf   :  { %3797 = vadd.xlane.f32.xlu0 %v3796_v37 }
 0x632   :  { %v3774_v35 = vpop.xlane.xlu0 %3773 }
 0x633   :  { %vm3775_vm7 = vcmp.ge.f32.partialorder %v3772_v57, %v3774_v35 }
 0x634   :  { %v3776_v29 = vsel %vm3775_vm7, %v3751_v40, 128 }
 0x635   :  { %v3778_v59 = vshra.s32 %v3776_v29, 16  ;;  %v3777_v22 = vand.u32 65535, %v3776_v29 }
 0x637   :  { %v3780_v60 = vcvt.s32.f32 %v3778_v59  ;;  %v3779_v2 = vcvt.s32.f32 %v3777_v22 }
 0x639   :  { %3781 = vmin.xlane.f32.xlu1 %v3780_v60 }
 0x63a   :  { %v3761_v32 = vpop.xlane.xlu0 %3760 }
 0x63b   :  { %v3762_v61 = vsub.f32 %v3759_v56, %v3761_v32 }
 0x63d   :  { %v3763_v62 = vmul.f32 1.442695, %v3762_v61 }
 0x63f   :  { %5450 = vpow2.f32 %v3763_v62 }
 0x642   :  { %v3798_v15 = vpop.xlane.xlu0 %3797 }
 0x645   :  { %v5451_v63 = vpop.eup %5450 }
 0x646   :  { %3765 = vadd.xlane.f32.xlu1 %v5451_v63 }
 0x6ac   :  { %v3782_v0 = vpop.xlane.xlu1 %3781 }
 0x6ad   :  { %vm3783_vm8 = vcmp.eq.f32.partialorder %v3780_v60, %v3782_v0  ;;  %v3788_v36 = vcvt.f32.s32 %v3782_v0 }
 0x6ae   :  { %v3784_v3 = vsel %vm3783_vm8, %v3779_v2, inf }
 0x6af   :  { %3785 = vmin.xlane.f32.xlu2 %v3784_v3  ;;  %v3789_v13 = vshll.u32 %v3788_v36, 16 }
 0x6b9   :  { %v3766_v4 = vpop.xlane.xlu1 %3765 }
 0x6ba   :  { %5452 = vlog2.f32 %v3766_v4 }
 0x6c0   :  { %v5453_v6 = vpop.eup %5452 }
 0x6c1   :  { %v3768_v47 = vmul.f32 0.6931472, %v5453_v6 }
 0x6c3   :  { %v3769_v7 = vadd.f32 %v3768_v47, %v3761_v32 }
 0x6c5   :  { %v3770_v38 = vsub.f32 %v3759_v56, %v3769_v7 }
 0x6c7   :  { %v3799_v44 = vsel %vm3752_vm4, %v3770_v38, 0.0 }
 0x722   :  { %v3786_v10 = vpop.xlane.xlu2 %3785 }
 0x723   :  { %v3787_v8 = vcvt.f32.s32 %v3786_v10 }
 0x725   :  { %v3790_v9 = vadd.s32 %v3789_v13, %v3787_v8 }
 0x727   :  { %vm3791_vm9 = vcmp.eq.s32.totalorder %v3751_v40, %v3790_v9  ;;  %v3801_v11 = vcvt.s32.f32 %v3790_v9 }
 0x728   :  { %v3792_v5 = vsel %vm3791_vm9, %v3770_v38, 0.0 }
 0x729   :  { %3793 = vadd.xlane.f32.xlu2 %v3792_v5  ;;  %v3802_v12 = vsel %vm3800_vm10, %v3801_v11, %v3799_v44 }
 0x79c   :  { %v3794_v14 = vpop.xlane.xlu2 %3793 }
 0x79d   :  { %v3804_v16 = vsel %vm3803_vm11, %v3794_v14, %v3802_v12 }
 0x79e   :  { %v3806_v28 = vsel %vm3805_vm12, %v3798_v15, %v3804_v16 }
 0x79f   :  { %3807 = vst [vmem:[%s6889_s19] sm:$0xff] %v3806_v28 }
 0x7a0   :  { %3812 = vsyncpa [#allocation5], 1 }

</bundles_post_ra>
